<compile_context>
chip_gen: v7x
topology: tpu7x:2x2x1
jax: 0.10.0
libtpu: 0.0.40
codegen_flags: <defaults>
</compile_context>

<pallas_src>
import functools

import jax
import jax.numpy as jnp
import numpy as np
from jax.experimental import pallas as pl
from jax.experimental.pallas import tpu as pltpu


def _lstm_gates(gates, c, H):
    """Gate nonlinearities + state update. gates: (Bp, 4H) f32 pre-activations."""
    i = jax.nn.sigmoid(gates[:, 0 * H:1 * H])
    f = jax.nn.sigmoid(gates[:, 1 * H:2 * H])
    g = jnp.tanh(gates[:, 2 * H:3 * H])
    o = jax.nn.sigmoid(gates[:, 3 * H:4 * H])
    c_new = f * c + i * g
    h_new = o * jnp.tanh(c_new)
    return h_new, c_new


def _decoder_kernel(x_ref, wih1_ref, whh1_ref, b1_ref,
                    wih2_hbm, whh2_hbm, b2_ref,        # layer-2 weights: manual DMA
                    o_ref,
                    gx1_ref, wih2_vmem, whh2_vmem, dma_sem,
                    *, T, Bp, H1, Op, Kc, mm_dtype):
    """Fused, wavefront-interleaved 2-layer LSTM decoder.

    x_ref:   (T*Bp, D)    time-major, batch-padded input (mm_dtype)
    o_ref:   (T*Bp, Op)   lane-dense (Op = 128-padded) layer-2 hidden sequence (f32)
    gx1_ref: (T*Bp, 4H1)  VMEM scratch for the hoisted layer-1 input projection
    wih2_vmem/whh2_vmem:  VMEM landing buffers for the async layer-2 weight copies
    """
    f32 = jnp.float32

    # ---- Start layer-2 weight DMA (HBM -> VMEM); hidden behind layer-1 start.
    cp_w = pltpu.make_async_copy(wih2_hbm, wih2_vmem, dma_sem.at[0])
    cp_u = pltpu.make_async_copy(whh2_hbm, whh2_vmem, dma_sem.at[1])
    cp_w.start()
    cp_u.start()

    # ---- Layer-1 input projection for ALL timesteps in one MXU pass, staged to
    # VMEM scratch (keeps it out of the vreg file across the unrolled loop).
    gx1_ref[...] = (jnp.dot(x_ref[...], wih1_ref[...], preferred_element_type=f32)
                    + b1_ref[...])

    b2 = b2_ref[...]                                     # (1, 4*Op) f32, tiny

    h1 = jnp.zeros((Bp, H1), f32)
    c1 = jnp.zeros((Bp, H1), f32)
    h2 = jnp.zeros((Bp, Op), f32)
    c2 = jnp.zeros((Bp, Op), f32)

    # ---- Wavefront: iteration t = layer-2 step (t-1)  +  layer-1 step t.
    # Both consume h1_{t-1} (the value of `h1` at iteration entry) and are
    # otherwise independent, so the scheduler can interleave their MXU/EUP work.
    for t in range(T + 1):
        h1m = h1.astype(mm_dtype)        # h1_{t-1}; shared by both layers this iter

        if t >= 1:                       # ---------------- layer-2 step (t-1)
            if t == 1:
                cp_w.wait()              # first use of the async-copied weights
                cp_u.wait()
            g2 = jnp.dot(h1m, wih2_vmem[...], preferred_element_type=f32) + b2
            if t >= 2:                   # h2 is exactly zero on the first step
                g2 = g2 + jnp.dot(h2[:, :Kc].astype(mm_dtype), whh2_vmem[...],
                                  preferred_element_type=f32)
            h2, c2 = _lstm_gates(g2, c2, Op)
            o_ref[(t - 1) * Bp:t * Bp, :] = h2           # full (8,128) unmasked store

        if t < T:                        # ---------------- layer-1 step t
            g1 = gx1_ref[t * Bp:(t + 1) * Bp, :]
            if t >= 1:                   # h1 is exactly zero on the first step
                g1 = g1 + jnp.dot(h1m, whh1_ref[...], preferred_element_type=f32)
            h1, c1 = _lstm_gates(g1, c1, H1)


def _round_up(x, m):
    return (x + m - 1) // m * m


def _pad_gate_cols(w_t, o, op):
    """(K, 4*o) -> (K, 4*op): zero-pad each of the 4 gate column-blocks o -> op."""
    chunks = jnp.split(w_t, 4, axis=1)
    return jnp.concatenate([jnp.pad(ch, ((0, 0), (0, op - o))) for ch in chunks], axis=1)


def decoder_forward_pallas(x_btd, params, *, matmul_dtype=jnp.float32):
    """x_btd: (B, T, latent_size) batch_first, like the PyTorch module.

    matmul_dtype: dtype of MXU operands (weights + activation copies fed to
    jnp.dot). float32 keeps <=1e-4 agreement with the f32 reference; bfloat16
    halves weight DMA and runs the v6e/v7x MXU at full rate (f32 accumulation,
    all gate/state math stays f32 -> safe on v5e too).
    """
    B, T, D = x_btd.shape
    H1 = params["w_hh1"].shape[1]
    O = params["w_hh2"].shape[1]
    assert H1 % 128 == 0, "layer-1 hidden size must be lane-aligned"
    Bp = _round_up(B, 8)            # sublane-pad batch
    Op = _round_up(O, 128)          # lane-pad layer-2 hidden (7 -> 128)
    Kc = 16                         # compact K for the layer-2 recurrence matmul
    assert O <= Kc
    mm = matmul_dtype

    # Time-major, batch-padded, flattened to 2-D (T*Bp, D).
    x_tbd = jnp.transpose(x_btd, (1, 0, 2)).astype(jnp.float32)
    x_2d = jnp.pad(x_tbd, ((0, 0), (0, Bp - B), (0, 0))).reshape(T * Bp, D).astype(mm)

    # Layer-1 weights (H1 = 128 already lane-aligned).
    wih1_t = jnp.transpose(params["w_ih1"]).astype(mm)                    # (D, 4*H1)
    whh1_t = jnp.transpose(params["w_hh1"]).astype(mm)                    # (H1, 4*H1)
    b1 = (params["b_ih1"] + params["b_hh1"]).astype(jnp.float32).reshape(1, 4 * H1)

    # Layer-2 weights: per-gate zero-pad O -> Op on the gate (lane) axis so gate
    # math and output stores are lane-dense; padded lanes provably stay exactly 0
    # through the recurrence (zero pre-activation -> h_pad = 0.5*tanh(0) = 0).
    # The recurrence weight keeps only Kc=16 K-rows (units 0..O-1 + zero pad):
    # saves ~240 KB of DMA vs a 128-row padded operand.
    wih2_t = _pad_gate_cols(jnp.transpose(params["w_ih2"]), O, Op).astype(mm)   # (H1, 4*Op)
    whh2_c = jnp.pad(_pad_gate_cols(jnp.transpose(params["w_hh2"]), O, Op),
                     ((0, Kc - O), (0, 0))).astype(mm)                          # (Kc, 4*Op)
    b2_chunks = jnp.split((params["b_ih2"] + params["b_hh2"]).astype(jnp.float32), 4)
    b2 = jnp.concatenate([jnp.pad(ch, (0, Op - O)) for ch in b2_chunks]).reshape(1, 4 * Op)

    kernel = functools.partial(_decoder_kernel, T=T, Bp=Bp, H1=H1, Op=Op, Kc=Kc,
                               mm_dtype=mm)
    vmem = pltpu.MemorySpace.VMEM
    out = pl.pallas_call(
        kernel,
        out_shape=jax.ShapeDtypeStruct((T * Bp, Op), jnp.float32),
        in_specs=[
            pl.BlockSpec(memory_space=vmem),     # x
            pl.BlockSpec(memory_space=vmem),     # wih1
            pl.BlockSpec(memory_space=vmem),     # whh1
            pl.BlockSpec(memory_space=vmem),     # b1
            pl.BlockSpec(memory_space=pl.ANY),   # wih2  (HBM; manual async copy)
            pl.BlockSpec(memory_space=pl.ANY),   # whh2c (HBM; manual async copy)
            pl.BlockSpec(memory_space=vmem),     # b2
        ],
        out_specs=pl.BlockSpec(memory_space=vmem),
        scratch_shapes=[
            pltpu.VMEM((T * Bp, 4 * H1), jnp.float32),   # gx1 staging
            pltpu.VMEM((H1, 4 * Op), mm),                # wih2 landing buffer
            pltpu.VMEM((Kc, 4 * Op), mm),                # whh2 landing buffer
            pltpu.SemaphoreType.DMA((2,)),
        ],
    )(x_2d, wih1_t, whh1_t, b1, wih2_t, whh2_c, b2)

    out = out.reshape(T, Bp, Op)[:, :B, :O]      # drop padded batch rows / lanes
    return jnp.transpose(out, (1, 0, 2))         # -> (B, T, O)


# ------------------------- pure-JAX reference ------------------------------

def lstm_layer_ref(x_tbd, w_ih, w_hh, b_ih, b_hh):
    T, B, _ = x_tbd.shape
    H = w_hh.shape[1]

    def step(carry, x_t):
        h, c = carry
        gates = x_t @ w_ih.T + h @ w_hh.T + b_ih + b_hh
        i, f, g, o = jnp.split(gates, 4, axis=-1)
        i = jax.nn.sigmoid(i)
        f = jax.nn.sigmoid(f)
        g = jnp.tanh(g)
        o = jax.nn.sigmoid(o)
        c = f * c + i * g
        h = o * jnp.tanh(c)
        return (h, c), h

    init = (jnp.zeros((B, H), jnp.float32), jnp.zeros((B, H), jnp.float32))
    _, ys = jax.lax.scan(step, init, x_tbd)
    return ys


def decoder_forward_ref(x_btd, params):
    x_tbd = jnp.transpose(x_btd, (1, 0, 2))
    h1 = lstm_layer_ref(x_tbd, params["w_ih1"], params["w_hh1"],
                        params["b_ih1"], params["b_hh1"])
    h2 = lstm_layer_ref(h1, params["w_ih2"], params["w_hh2"],
                        params["b_ih2"], params["b_hh2"])
    return jnp.transpose(h2, (1, 0, 2))


# ------------------------------ param init ---------------------------------

def init_decoder_params(key, latent_size, hidden_size, output_size):
    """Deterministic init matching PyTorch LSTM shapes (U(-1/sqrt(H), 1/sqrt(H)))."""
    keys = jax.random.split(key, 8)
    k1 = 1.0 / np.sqrt(hidden_size)
    k2 = 1.0 / np.sqrt(output_size)
    u = lambda k, shape, bound: jax.random.uniform(
        k, shape, jnp.float32, -bound, bound)
    return {
        # lstm1: input latent_size -> hidden hidden_size
        "w_ih1": u(keys[0], (4 * hidden_size, latent_size), k1),
        "w_hh1": u(keys[1], (4 * hidden_size, hidden_size), k1),
        "b_ih1": u(keys[2], (4 * hidden_size,), k1),
        "b_hh1": u(keys[3], (4 * hidden_size,), k1),
        # lstm2: input hidden_size -> hidden output_size
        "w_ih2": u(keys[4], (4 * output_size, hidden_size), k2),
        "w_hh2": u(keys[5], (4 * output_size, output_size), k2),
        "b_ih2": u(keys[6], (4 * output_size,), k2),
        "b_hh2": u(keys[7], (4 * output_size,), k2),
    }


if __name__ == "__main__":
    latent_size, hidden_size, output_size = 16, 128, 7
    B, T = 2, 8

    root = jax.random.PRNGKey(0)
    k_x, k_p = jax.random.split(root)
    x = jax.random.normal(k_x, (B, T, latent_size), jnp.float32)
    params = init_decoder_params(k_p, latent_size, hidden_size, output_size)

    ref = jax.block_until_ready(decoder_forward_ref(x, params))

    # f32 matmul operands: strict numerical check.
    out = jax.block_until_ready(decoder_forward_pallas(x, params))
    assert out.shape == (B, T, output_size), out.shape
    np.testing.assert_allclose(np.asarray(out), np.asarray(ref),
                               rtol=1e-4, atol=1e-4)

    # bf16 matmul operands (v6e/v7x MXU rate, half the weight DMA); accumulation
    # and gate/state math stay f32, so only a relaxed tolerance is needed.
    out_bf16 = jax.block_until_ready(
        decoder_forward_pallas(x, params, matmul_dtype=jnp.bfloat16))
    np.testing.assert_allclose(np.asarray(out_bf16), np.asarray(ref),
                               rtol=5e-2, atol=5e-2)

    print("KERNEL_OK")
</pallas_src>

<mosaic_0001>
module attributes {stable_mosaic.version = 11 : i64} {
  func.func @_decoder_kernel(%arg0: memref<64x16xf32, #tpu.memory_space<vmem>>, %arg1: memref<16x512xf32, #tpu.memory_space<vmem>>, %arg2: memref<128x512xf32, #tpu.memory_space<vmem>>, %arg3: memref<1x512xf32, #tpu.memory_space<vmem>>, %arg4: memref<128x512xf32, #tpu.memory_space<any>>, %arg5: memref<16x512xf32, #tpu.memory_space<any>>, %arg6: memref<1x512xf32, #tpu.memory_space<vmem>>, %arg7: memref<64x128xf32, #tpu.memory_space<vmem>>, %arg8: memref<64x512xf32, #tpu.memory_space<vmem>>, %arg9: memref<128x512xf32, #tpu.memory_space<vmem>>, %arg10: memref<16x512xf32, #tpu.memory_space<vmem>>, %arg11: memref<2x!tpu.dma_semaphore, #tpu.memory_space<semaphore_mem>>) attributes {dimension_semantics = [], scalar_prefetch = 0 : i64, scratch_operands = 4 : i64, tpu.core_type = #tpu.core_type<tc>} {
    %c0_i32 = arith.constant 0 : i32
    %0 = tpu.memref_slice %arg11[%c0_i32] : memref<2x!tpu.dma_semaphore, #tpu.memory_space<semaphore_mem>> -> memref<1x!tpu.dma_semaphore, #tpu.memory_space<semaphore_mem>>
    %1 = tpu.memref_squeeze %0 : memref<1x!tpu.dma_semaphore, #tpu.memory_space<semaphore_mem>> -> memref<!tpu.dma_semaphore, #tpu.memory_space<semaphore_mem>>
    tpu.enqueue_dma source(%arg4 : memref<128x512xf32, #tpu.memory_space<any>>) target(%arg9 : memref<128x512xf32, #tpu.memory_space<vmem>>) target_semaphore(%1 : memref<!tpu.dma_semaphore, #tpu.memory_space<semaphore_mem>>)
    %c1_i32 = arith.constant 1 : i32
    %2 = tpu.memref_slice %arg11[%c1_i32] : memref<2x!tpu.dma_semaphore, #tpu.memory_space<semaphore_mem>> -> memref<1x!tpu.dma_semaphore, #tpu.memory_space<semaphore_mem>>
    %3 = tpu.memref_squeeze %2 : memref<1x!tpu.dma_semaphore, #tpu.memory_space<semaphore_mem>> -> memref<!tpu.dma_semaphore, #tpu.memory_space<semaphore_mem>>
    tpu.enqueue_dma source(%arg5 : memref<16x512xf32, #tpu.memory_space<any>>) target(%arg10 : memref<16x512xf32, #tpu.memory_space<vmem>>) target_semaphore(%3 : memref<!tpu.dma_semaphore, #tpu.memory_space<semaphore_mem>>)
    %c0 = arith.constant 0 : index
    %c0_0 = arith.constant 0 : index
    %4 = vector.load %arg0[%c0, %c0_0] : memref<64x16xf32, #tpu.memory_space<vmem>>, vector<64x16xf32>
    %c0_1 = arith.constant 0 : index
    %c0_2 = arith.constant 0 : index
    %5 = vector.load %arg1[%c0_1, %c0_2] : memref<16x512xf32, #tpu.memory_space<vmem>>, vector<16x512xf32>
    %cst = arith.constant dense<0.000000e+00> : vector<64x512xf32>
    %6 = tpu.matmul %4, %5, %cst {dimension_numbers = #tpu.dot_dimension_numbers<[1], [0], [0], [1], [0, 0, 1, 1], [], []>} : vector<64x16xf32>, vector<16x512xf32>, vector<64x512xf32> -> vector<64x512xf32>
    %c0_3 = arith.constant 0 : index
    %c0_4 = arith.constant 0 : index
    %7 = vector.load %arg3[%c0_3, %c0_4] : memref<1x512xf32, #tpu.memory_space<vmem>>, vector<1x512xf32>
    %8 = vector.broadcast %7 : vector<1x512xf32> to vector<64x512xf32>
    %9 = arith.addf %6, %8 : vector<64x512xf32>
    %c0_5 = arith.constant 0 : index
    %c0_6 = arith.constant 0 : index
    %10 = vector.load %arg8[%c0_5, %c0_6] : memref<64x512xf32, #tpu.memory_space<vmem>>, vector<64x512xf32>
    tpu.vector_store %arg8[%c0_5, %c0_6], %9 {strides = array<i32>} : memref<64x512xf32, #tpu.memory_space<vmem>>, vector<64x512xf32>,
    %c0_7 = arith.constant 0 : index
    %c0_8 = arith.constant 0 : index
    %11 = vector.load %arg6[%c0_7, %c0_8] : memref<1x512xf32, #tpu.memory_space<vmem>>, vector<1x512xf32>
    %cst_9 = arith.constant 0.000000e+00 : f32
    %12 = vector.broadcast %cst_9 : f32 to vector<8x128xf32>
    %cst_10 = arith.constant 0.000000e+00 : f32
    %13 = vector.broadcast %cst_10 : f32 to vector<8x128xf32>
    %c0_11 = arith.constant 0 : index
    %c0_12 = arith.constant 0 : index
    %14 = vector.load %arg8[%c0_11, %c0_12] : memref<64x512xf32, #tpu.memory_space<vmem>>, vector<8x512xf32>
    %15 = vector.extract_strided_slice %14 {offsets = [0, 0], sizes = [8, 128], strides = [1, 1]} : vector<8x512xf32> to vector<8x128xf32>
    %16 = arith.negf %15 : vector<8x128xf32>
    %17 = math.exp %16 : vector<8x128xf32>
    %cst_13 = arith.constant 1.000000e+00 : f32
    %18 = vector.broadcast %cst_13 : f32 to vector<8x128xf32>
    %19 = arith.addf %18, %17 : vector<8x128xf32>
    %20 = arith.divf %18, %19 : vector<8x128xf32>
    %21 = vector.extract_strided_slice %14 {offsets = [0, 128], sizes = [8, 128], strides = [1, 1]} : vector<8x512xf32> to vector<8x128xf32>
    %22 = arith.negf %21 : vector<8x128xf32>
    %23 = math.exp %22 : vector<8x128xf32>
    %cst_14 = arith.constant 1.000000e+00 : f32
    %24 = vector.broadcast %cst_14 : f32 to vector<8x128xf32>
    %25 = arith.addf %24, %23 : vector<8x128xf32>
    %26 = arith.divf %24, %25 : vector<8x128xf32>
    %27 = vector.extract_strided_slice %14 {offsets = [0, 256], sizes = [8, 128], strides = [1, 1]} : vector<8x512xf32> to vector<8x128xf32>
    %28 = math.tanh %27 : vector<8x128xf32>
    %29 = vector.extract_strided_slice %14 {offsets = [0, 384], sizes = [8, 128], strides = [1, 1]} : vector<8x512xf32> to vector<8x128xf32>
    %30 = arith.negf %29 : vector<8x128xf32>
    %31 = math.exp %30 : vector<8x128xf32>
    %cst_15 = arith.constant 1.000000e+00 : f32
    %32 = vector.broadcast %cst_15 : f32 to vector<8x128xf32>
    %33 = arith.addf %32, %31 : vector<8x128xf32>
    %34 = arith.divf %32, %33 : vector<8x128xf32>
    %35 = arith.mulf %26, %12 : vector<8x128xf32>
    %36 = arith.mulf %20, %28 : vector<8x128xf32>
    %37 = arith.addf %35, %36 : vector<8x128xf32>
    %38 = math.tanh %37 : vector<8x128xf32>
    %39 = arith.mulf %34, %38 : vector<8x128xf32>
    %c0_i32_16 = arith.constant 0 : i32
    %40 = tpu.memref_slice %arg11[%c0_i32_16] : memref<2x!tpu.dma_semaphore, #tpu.memory_space<semaphore_mem>> -> memref<1x!tpu.dma_semaphore, #tpu.memory_space<semaphore_mem>>
    %41 = tpu.memref_squeeze %40 : memref<1x!tpu.dma_semaphore, #tpu.memory_space<semaphore_mem>> -> memref<!tpu.dma_semaphore, #tpu.memory_space<semaphore_mem>>
    tpu.wait_dma2 semaphore(%41 : memref<!tpu.dma_semaphore, #tpu.memory_space<semaphore_mem>>) src(%arg4 : memref<128x512xf32, #tpu.memory_space<any>>) dst(%arg9 : memref<128x512xf32, #tpu.memory_space<vmem>>)
    %c1_i32_17 = arith.constant 1 : i32
    %42 = tpu.memref_slice %arg11[%c1_i32_17] : memref<2x!tpu.dma_semaphore, #tpu.memory_space<semaphore_mem>> -> memref<1x!tpu.dma_semaphore, #tpu.memory_space<semaphore_mem>>
    %43 = tpu.memref_squeeze %42 : memref<1x!tpu.dma_semaphore, #tpu.memory_space<semaphore_mem>> -> memref<!tpu.dma_semaphore, #tpu.memory_space<semaphore_mem>>
    tpu.wait_dma2 semaphore(%43 : memref<!tpu.dma_semaphore, #tpu.memory_space<semaphore_mem>>) src(%arg5 : memref<16x512xf32, #tpu.memory_space<any>>) dst(%arg10 : memref<16x512xf32, #tpu.memory_space<vmem>>)
    %c0_18 = arith.constant 0 : index
    %c0_19 = arith.constant 0 : index
    %44 = vector.load %arg9[%c0_18, %c0_19] : memref<128x512xf32, #tpu.memory_space<vmem>>, vector<128x512xf32>
    %cst_20 = arith.constant dense<0.000000e+00> : vector<8x512xf32>
    %45 = tpu.matmul %39, %44, %cst_20 {dimension_numbers = #tpu.dot_dimension_numbers<[1], [0], [0], [1], [0, 0, 1, 1], [], []>} : vector<8x128xf32>, vector<128x512xf32>, vector<8x512xf32> -> vector<8x512xf32>
    %46 = vector.broadcast %11 : vector<1x512xf32> to vector<8x512xf32>
    %47 = arith.addf %45, %46 : vector<8x512xf32>
    %48 = vector.extract_strided_slice %47 {offsets = [0, 0], sizes = [8, 128], strides = [1, 1]} : vector<8x512xf32> to vector<8x128xf32>
    %49 = arith.negf %48 : vector<8x128xf32>
    %50 = math.exp %49 : vector<8x128xf32>
    %cst_21 = arith.constant 1.000000e+00 : f32
    %51 = vector.broadcast %cst_21 : f32 to vector<8x128xf32>
    %52 = arith.addf %51, %50 : vector<8x128xf32>
    %53 = arith.divf %51, %52 : vector<8x128xf32>
    %54 = vector.extract_strided_slice %47 {offsets = [0, 128], sizes = [8, 128], strides = [1, 1]} : vector<8x512xf32> to vector<8x128xf32>
    %55 = arith.negf %54 : vector<8x128xf32>
    %56 = math.exp %55 : vector<8x128xf32>
    %cst_22 = arith.constant 1.000000e+00 : f32
    %57 = vector.broadcast %cst_22 : f32 to vector<8x128xf32>
    %58 = arith.addf %57, %56 : vector<8x128xf32>
    %59 = arith.divf %57, %58 : vector<8x128xf32>
    %60 = vector.extract_strided_slice %47 {offsets = [0, 256], sizes = [8, 128], strides = [1, 1]} : vector<8x512xf32> to vector<8x128xf32>
    %61 = math.tanh %60 : vector<8x128xf32>
    %62 = vector.extract_strided_slice %47 {offsets = [0, 384], sizes = [8, 128], strides = [1, 1]} : vector<8x512xf32> to vector<8x128xf32>
    %63 = arith.negf %62 : vector<8x128xf32>
    %64 = math.exp %63 : vector<8x128xf32>
    %cst_23 = arith.constant 1.000000e+00 : f32
    %65 = vector.broadcast %cst_23 : f32 to vector<8x128xf32>
    %66 = arith.addf %65, %64 : vector<8x128xf32>
    %67 = arith.divf %65, %66 : vector<8x128xf32>
    %68 = arith.mulf %59, %13 : vector<8x128xf32>
    %69 = arith.mulf %53, %61 : vector<8x128xf32>
    %70 = arith.addf %68, %69 : vector<8x128xf32>
    %71 = math.tanh %70 : vector<8x128xf32>
    %72 = arith.mulf %67, %71 : vector<8x128xf32>
    %c0_24 = arith.constant 0 : index
    %c0_25 = arith.constant 0 : index
    %73 = vector.load %arg7[%c0_24, %c0_25] : memref<64x128xf32, #tpu.memory_space<vmem>>, vector<8x128xf32>
    tpu.vector_store %arg7[%c0_24, %c0_25], %72 {strides = array<i32>} : memref<64x128xf32, #tpu.memory_space<vmem>>, vector<8x128xf32>,
    %c8 = arith.constant 8 : index
    %c0_26 = arith.constant 0 : index
    %74 = vector.load %arg8[%c8, %c0_26] : memref<64x512xf32, #tpu.memory_space<vmem>>, vector<8x512xf32>
    %c0_27 = arith.constant 0 : index
    %c0_28 = arith.constant 0 : index
    %75 = vector.load %arg2[%c0_27, %c0_28] : memref<128x512xf32, #tpu.memory_space<vmem>>, vector<128x512xf32>
    %cst_29 = arith.constant dense<0.000000e+00> : vector<8x512xf32>
    %76 = tpu.matmul %39, %75, %cst_29 {dimension_numbers = #tpu.dot_dimension_numbers<[1], [0], [0], [1], [0, 0, 1, 1], [], []>} : vector<8x128xf32>, vector<128x512xf32>, vector<8x512xf32> -> vector<8x512xf32>
    %77 = arith.addf %74, %76 : vector<8x512xf32>
    %78 = vector.extract_strided_slice %77 {offsets = [0, 0], sizes = [8, 128], strides = [1, 1]} : vector<8x512xf32> to vector<8x128xf32>
    %79 = arith.negf %78 : vector<8x128xf32>
    %80 = math.exp %79 : vector<8x128xf32>
    %cst_30 = arith.constant 1.000000e+00 : f32
    %81 = vector.broadcast %cst_30 : f32 to vector<8x128xf32>
    %82 = arith.addf %81, %80 : vector<8x128xf32>
    %83 = arith.divf %81, %82 : vector<8x128xf32>
    %84 = vector.extract_strided_slice %77 {offsets = [0, 128], sizes = [8, 128], strides = [1, 1]} : vector<8x512xf32> to vector<8x128xf32>
    %85 = arith.negf %84 : vector<8x128xf32>
    %86 = math.exp %85 : vector<8x128xf32>
    %cst_31 = arith.constant 1.000000e+00 : f32
    %87 = vector.broadcast %cst_31 : f32 to vector<8x128xf32>
    %88 = arith.addf %87, %86 : vector<8x128xf32>
    %89 = arith.divf %87, %88 : vector<8x128xf32>
    %90 = vector.extract_strided_slice %77 {offsets = [0, 256], sizes = [8, 128], strides = [1, 1]} : vector<8x512xf32> to vector<8x128xf32>
    %91 = math.tanh %90 : vector<8x128xf32>
    %92 = vector.extract_strided_slice %77 {offsets = [0, 384], sizes = [8, 128], strides = [1, 1]} : vector<8x512xf32> to vector<8x128xf32>
    %93 = arith.negf %92 : vector<8x128xf32>
    %94 = math.exp %93 : vector<8x128xf32>
    %cst_32 = arith.constant 1.000000e+00 : f32
    %95 = vector.broadcast %cst_32 : f32 to vector<8x128xf32>
    %96 = arith.addf %95, %94 : vector<8x128xf32>
    %97 = arith.divf %95, %96 : vector<8x128xf32>
    %98 = arith.mulf %89, %37 : vector<8x128xf32>
    %99 = arith.mulf %83, %91 : vector<8x128xf32>
    %100 = arith.addf %98, %99 : vector<8x128xf32>
    %101 = math.tanh %100 : vector<8x128xf32>
    %102 = arith.mulf %97, %101 : vector<8x128xf32>
    %c0_33 = arith.constant 0 : index
    %c0_34 = arith.constant 0 : index
    %103 = vector.load %arg9[%c0_33, %c0_34] : memref<128x512xf32, #tpu.memory_space<vmem>>, vector<128x512xf32>
    %cst_35 = arith.constant dense<0.000000e+00> : vector<8x512xf32>
    %104 = tpu.matmul %102, %103, %cst_35 {dimension_numbers = #tpu.dot_dimension_numbers<[1], [0], [0], [1], [0, 0, 1, 1], [], []>} : vector<8x128xf32>, vector<128x512xf32>, vector<8x512xf32> -> vector<8x512xf32>
    %105 = vector.broadcast %11 : vector<1x512xf32> to vector<8x512xf32>
    %106 = arith.addf %104, %105 : vector<8x512xf32>
    %107 = vector.extract_strided_slice %72 {offsets = [0, 0], sizes = [8, 16], strides = [1, 1]} : vector<8x128xf32> to vector<8x16xf32>
    %c0_36 = arith.constant 0 : index
    %c0_37 = arith.constant 0 : index
    %108 = vector.load %arg10[%c0_36, %c0_37] : memref<16x512xf32, #tpu.memory_space<vmem>>, vector<16x512xf32>
    %cst_38 = arith.constant dense<0.000000e+00> : vector<8x512xf32>
    %109 = tpu.matmul %107, %108, %cst_38 {dimension_numbers = #tpu.dot_dimension_numbers<[1], [0], [0], [1], [0, 0, 1, 1], [], []>} : vector<8x16xf32>, vector<16x512xf32>, vector<8x512xf32> -> vector<8x512xf32>
    %110 = arith.addf %106, %109 : vector<8x512xf32>
    %111 = vector.extract_strided_slice %110 {offsets = [0, 0], sizes = [8, 128], strides = [1, 1]} : vector<8x512xf32> to vector<8x128xf32>
    %112 = arith.negf %111 : vector<8x128xf32>
    %113 = math.exp %112 : vector<8x128xf32>
    %cst_39 = arith.constant 1.000000e+00 : f32
    %114 = vector.broadcast %cst_39 : f32 to vector<8x128xf32>
    %115 = arith.addf %114, %113 : vector<8x128xf32>
    %116 = arith.divf %114, %115 : vector<8x128xf32>
    %117 = vector.extract_strided_slice %110 {offsets = [0, 128], sizes = [8, 128], strides = [1, 1]} : vector<8x512xf32> to vector<8x128xf32>
    %118 = arith.negf %117 : vector<8x128xf32>
    %119 = math.exp %118 : vector<8x128xf32>
    %cst_40 = arith.constant 1.000000e+00 : f32
    %120 = vector.broadcast %cst_40 : f32 to vector<8x128xf32>
    %121 = arith.addf %120, %119 : vector<8x128xf32>
    %122 = arith.divf %120, %121 : vector<8x128xf32>
    %123 = vector.extract_strided_slice %110 {offsets = [0, 256], sizes = [8, 128], strides = [1, 1]} : vector<8x512xf32> to vector<8x128xf32>
    %124 = math.tanh %123 : vector<8x128xf32>
    %125 = vector.extract_strided_slice %110 {offsets = [0, 384], sizes = [8, 128], strides = [1, 1]} : vector<8x512xf32> to vector<8x128xf32>
    %126 = arith.negf %125 : vector<8x128xf32>
    %127 = math.exp %126 : vector<8x128xf32>
    %cst_41 = arith.constant 1.000000e+00 : f32
    %128 = vector.broadcast %cst_41 : f32 to vector<8x128xf32>
    %129 = arith.addf %128, %127 : vector<8x128xf32>
    %130 = arith.divf %128, %129 : vector<8x128xf32>
    %131 = arith.mulf %122, %70 : vector<8x128xf32>
    %132 = arith.mulf %116, %124 : vector<8x128xf32>
    %133 = arith.addf %131, %132 : vector<8x128xf32>
    %134 = math.tanh %133 : vector<8x128xf32>
    %135 = arith.mulf %130, %134 : vector<8x128xf32>
    %c8_42 = arith.constant 8 : index
    %c0_43 = arith.constant 0 : index
    %136 = vector.load %arg7[%c8_42, %c0_43] : memref<64x128xf32, #tpu.memory_space<vmem>>, vector<8x128xf32>
    tpu.vector_store %arg7[%c8_42, %c0_43], %135 {strides = array<i32>} : memref<64x128xf32, #tpu.memory_space<vmem>>, vector<8x128xf32>,
    %c16 = arith.constant 16 : index
    %c0_44 = arith.constant 0 : index
    %137 = vector.load %arg8[%c16, %c0_44] : memref<64x512xf32, #tpu.memory_space<vmem>>, vector<8x512xf32>
    %c0_45 = arith.constant 0 : index
    %c0_46 = arith.constant 0 : index
    %138 = vector.load %arg2[%c0_45, %c0_46] : memref<128x512xf32, #tpu.memory_space<vmem>>, vector<128x512xf32>
    %cst_47 = arith.constant dense<0.000000e+00> : vector<8x512xf32>
    %139 = tpu.matmul %102, %138, %cst_47 {dimension_numbers = #tpu.dot_dimension_numbers<[1], [0], [0], [1], [0, 0, 1, 1], [], []>} : vector<8x128xf32>, vector<128x512xf32>, vector<8x512xf32> -> vector<8x512xf32>
    %140 = arith.addf %137, %139 : vector<8x512xf32>
    %141 = vector.extract_strided_slice %140 {offsets = [0, 0], sizes = [8, 128], strides = [1, 1]} : vector<8x512xf32> to vector<8x128xf32>
    %142 = arith.negf %141 : vector<8x128xf32>
    %143 = math.exp %142 : vector<8x128xf32>
    %cst_48 = arith.constant 1.000000e+00 : f32
    %144 = vector.broadcast %cst_48 : f32 to vector<8x128xf32>
    %145 = arith.addf %144, %143 : vector<8x128xf32>
    %146 = arith.divf %144, %145 : vector<8x128xf32>
    %147 = vector.extract_strided_slice %140 {offsets = [0, 128], sizes = [8, 128], strides = [1, 1]} : vector<8x512xf32> to vector<8x128xf32>
    %148 = arith.negf %147 : vector<8x128xf32>
    %149 = math.exp %148 : vector<8x128xf32>
    %cst_49 = arith.constant 1.000000e+00 : f32
    %150 = vector.broadcast %cst_49 : f32 to vector<8x128xf32>
    %151 = arith.addf %150, %149 : vector<8x128xf32>
    %152 = arith.divf %150, %151 : vector<8x128xf32>
    %153 = vector.extract_strided_slice %140 {offsets = [0, 256], sizes = [8, 128], strides = [1, 1]} : vector<8x512xf32> to vector<8x128xf32>
    %154 = math.tanh %153 : vector<8x128xf32>
    %155 = vector.extract_strided_slice %140 {offsets = [0, 384], sizes = [8, 128], strides = [1, 1]} : vector<8x512xf32> to vector<8x128xf32>
    %156 = arith.negf %155 : vector<8x128xf32>
    %157 = math.exp %156 : vector<8x128xf32>
    %cst_50 = arith.constant 1.000000e+00 : f32
    %158 = vector.broadcast %cst_50 : f32 to vector<8x128xf32>
    %159 = arith.addf %158, %157 : vector<8x128xf32>
    %160 = arith.divf %158, %159 : vector<8x128xf32>
    %161 = arith.mulf %152, %100 : vector<8x128xf32>
    %162 = arith.mulf %146, %154 : vector<8x128xf32>
    %163 = arith.addf %161, %162 : vector<8x128xf32>
    %164 = math.tanh %163 : vector<8x128xf32>
    %165 = arith.mulf %160, %164 : vector<8x128xf32>
    %c0_51 = arith.constant 0 : index
    %c0_52 = arith.constant 0 : index
    %166 = vector.load %arg9[%c0_51, %c0_52] : memref<128x512xf32, #tpu.memory_space<vmem>>, vector<128x512xf32>
    %cst_53 = arith.constant dense<0.000000e+00> : vector<8x512xf32>
    %167 = tpu.matmul %165, %166, %cst_53 {dimension_numbers = #tpu.dot_dimension_numbers<[1], [0], [0], [1], [0, 0, 1, 1], [], []>} : vector<8x128xf32>, vector<128x512xf32>, vector<8x512xf32> -> vector<8x512xf32>
    %168 = vector.broadcast %11 : vector<1x512xf32> to vector<8x512xf32>
    %169 = arith.addf %167, %168 : vector<8x512xf32>
    %170 = vector.extract_strided_slice %135 {offsets = [0, 0], sizes = [8, 16], strides = [1, 1]} : vector<8x128xf32> to vector<8x16xf32>
    %c0_54 = arith.constant 0 : index
    %c0_55 = arith.constant 0 : index
    %171 = vector.load %arg10[%c0_54, %c0_55] : memref<16x512xf32, #tpu.memory_space<vmem>>, vector<16x512xf32>
    %cst_56 = arith.constant dense<0.000000e+00> : vector<8x512xf32>
    %172 = tpu.matmul %170, %171, %cst_56 {dimension_numbers = #tpu.dot_dimension_numbers<[1], [0], [0], [1], [0, 0, 1, 1], [], []>} : vector<8x16xf32>, vector<16x512xf32>, vector<8x512xf32> -> vector<8x512xf32>
    %173 = arith.addf %169, %172 : vector<8x512xf32>
    %174 = vector.extract_strided_slice %173 {offsets = [0, 0], sizes = [8, 128], strides = [1, 1]} : vector<8x512xf32> to vector<8x128xf32>
    %175 = arith.negf %174 : vector<8x128xf32>
    %176 = math.exp %175 : vector<8x128xf32>
    %cst_57 = arith.constant 1.000000e+00 : f32
    %177 = vector.broadcast %cst_57 : f32 to vector<8x128xf32>
    %178 = arith.addf %177, %176 : vector<8x128xf32>
    %179 = arith.divf %177, %178 : vector<8x128xf32>
    %180 = vector.extract_strided_slice %173 {offsets = [0, 128], sizes = [8, 128], strides = [1, 1]} : vector<8x512xf32> to vector<8x128xf32>
    %181 = arith.negf %180 : vector<8x128xf32>
    %182 = math.exp %181 : vector<8x128xf32>
    %cst_58 = arith.constant 1.000000e+00 : f32
    %183 = vector.broadcast %cst_58 : f32 to vector<8x128xf32>
    %184 = arith.addf %183, %182 : vector<8x128xf32>
    %185 = arith.divf %183, %184 : vector<8x128xf32>
    %186 = vector.extract_strided_slice %173 {offsets = [0, 256], sizes = [8, 128], strides = [1, 1]} : vector<8x512xf32> to vector<8x128xf32>
    %187 = math.tanh %186 : vector<8x128xf32>
    %188 = vector.extract_strided_slice %173 {offsets = [0, 384], sizes = [8, 128], strides = [1, 1]} : vector<8x512xf32> to vector<8x128xf32>
    %189 = arith.negf %188 : vector<8x128xf32>
    %190 = math.exp %189 : vector<8x128xf32>
    %cst_59 = arith.constant 1.000000e+00 : f32
    %191 = vector.broadcast %cst_59 : f32 to vector<8x128xf32>
    %192 = arith.addf %191, %190 : vector<8x128xf32>
    %193 = arith.divf %191, %192 : vector<8x128xf32>
    %194 = arith.mulf %185, %133 : vector<8x128xf32>
    %195 = arith.mulf %179, %187 : vector<8x128xf32>
    %196 = arith.addf %194, %195 : vector<8x128xf32>
    %197 = math.tanh %196 : vector<8x128xf32>
    %198 = arith.mulf %193, %197 : vector<8x128xf32>
    %c16_60 = arith.constant 16 : index
    %c0_61 = arith.constant 0 : index
    %199 = vector.load %arg7[%c16_60, %c0_61] : memref<64x128xf32, #tpu.memory_space<vmem>>, vector<8x128xf32>
    tpu.vector_store %arg7[%c16_60, %c0_61], %198 {strides = array<i32>} : memref<64x128xf32, #tpu.memory_space<vmem>>, vector<8x128xf32>,
    %c24 = arith.constant 24 : index
    %c0_62 = arith.constant 0 : index
    %200 = vector.load %arg8[%c24, %c0_62] : memref<64x512xf32, #tpu.memory_space<vmem>>, vector<8x512xf32>
    %c0_63 = arith.constant 0 : index
    %c0_64 = arith.constant 0 : index
    %201 = vector.load %arg2[%c0_63, %c0_64] : memref<128x512xf32, #tpu.memory_space<vmem>>, vector<128x512xf32>
    %cst_65 = arith.constant dense<0.000000e+00> : vector<8x512xf32>
    %202 = tpu.matmul %165, %201, %cst_65 {dimension_numbers = #tpu.dot_dimension_numbers<[1], [0], [0], [1], [0, 0, 1, 1], [], []>} : vector<8x128xf32>, vector<128x512xf32>, vector<8x512xf32> -> vector<8x512xf32>
    %203 = arith.addf %200, %202 : vector<8x512xf32>
    %204 = vector.extract_strided_slice %203 {offsets = [0, 0], sizes = [8, 128], strides = [1, 1]} : vector<8x512xf32> to vector<8x128xf32>
    %205 = arith.negf %204 : vector<8x128xf32>
    %206 = math.exp %205 : vector<8x128xf32>
    %cst_66 = arith.constant 1.000000e+00 : f32
    %207 = vector.broadcast %cst_66 : f32 to vector<8x128xf32>
    %208 = arith.addf %207, %206 : vector<8x128xf32>
    %209 = arith.divf %207, %208 : vector<8x128xf32>
    %210 = vector.extract_strided_slice %203 {offsets = [0, 128], sizes = [8, 128], strides = [1, 1]} : vector<8x512xf32> to vector<8x128xf32>
    %211 = arith.negf %210 : vector<8x128xf32>
    %212 = math.exp %211 : vector<8x128xf32>
    %cst_67 = arith.constant 1.000000e+00 : f32
    %213 = vector.broadcast %cst_67 : f32 to vector<8x128xf32>
    %214 = arith.addf %213, %212 : vector<8x128xf32>
    %215 = arith.divf %213, %214 : vector<8x128xf32>
    %216 = vector.extract_strided_slice %203 {offsets = [0, 256], sizes = [8, 128], strides = [1, 1]} : vector<8x512xf32> to vector<8x128xf32>
    %217 = math.tanh %216 : vector<8x128xf32>
    %218 = vector.extract_strided_slice %203 {offsets = [0, 384], sizes = [8, 128], strides = [1, 1]} : vector<8x512xf32> to vector<8x128xf32>
    %219 = arith.negf %218 : vector<8x128xf32>
    %220 = math.exp %219 : vector<8x128xf32>
    %cst_68 = arith.constant 1.000000e+00 : f32
    %221 = vector.broadcast %cst_68 : f32 to vector<8x128xf32>
    %222 = arith.addf %221, %220 : vector<8x128xf32>
    %223 = arith.divf %221, %222 : vector<8x128xf32>
    %224 = arith.mulf %215, %163 : vector<8x128xf32>
    %225 = arith.mulf %209, %217 : vector<8x128xf32>
    %226 = arith.addf %224, %225 : vector<8x128xf32>
    %227 = math.tanh %226 : vector<8x128xf32>
    %228 = arith.mulf %223, %227 : vector<8x128xf32>
    %c0_69 = arith.constant 0 : index
    %c0_70 = arith.constant 0 : index
    %229 = vector.load %arg9[%c0_69, %c0_70] : memref<128x512xf32, #tpu.memory_space<vmem>>, vector<128x512xf32>
    %cst_71 = arith.constant dense<0.000000e+00> : vector<8x512xf32>
    %230 = tpu.matmul %228, %229, %cst_71 {dimension_numbers = #tpu.dot_dimension_numbers<[1], [0], [0], [1], [0, 0, 1, 1], [], []>} : vector<8x128xf32>, vector<128x512xf32>, vector<8x512xf32> -> vector<8x512xf32>
    %231 = vector.broadcast %11 : vector<1x512xf32> to vector<8x512xf32>
    %232 = arith.addf %230, %231 : vector<8x512xf32>
    %233 = vector.extract_strided_slice %198 {offsets = [0, 0], sizes = [8, 16], strides = [1, 1]} : vector<8x128xf32> to vector<8x16xf32>
    %c0_72 = arith.constant 0 : index
    %c0_73 = arith.constant 0 : index
    %234 = vector.load %arg10[%c0_72, %c0_73] : memref<16x512xf32, #tpu.memory_space<vmem>>, vector<16x512xf32>
    %cst_74 = arith.constant dense<0.000000e+00> : vector<8x512xf32>
    %235 = tpu.matmul %233, %234, %cst_74 {dimension_numbers = #tpu.dot_dimension_numbers<[1], [0], [0], [1], [0, 0, 1, 1], [], []>} : vector<8x16xf32>, vector<16x512xf32>, vector<8x512xf32> -> vector<8x512xf32>
    %236 = arith.addf %232, %235 : vector<8x512xf32>
    %237 = vector.extract_strided_slice %236 {offsets = [0, 0], sizes = [8, 128], strides = [1, 1]} : vector<8x512xf32> to vector<8x128xf32>
    %238 = arith.negf %237 : vector<8x128xf32>
    %239 = math.exp %238 : vector<8x128xf32>
    %cst_75 = arith.constant 1.000000e+00 : f32
    %240 = vector.broadcast %cst_75 : f32 to vector<8x128xf32>
    %241 = arith.addf %240, %239 : vector<8x128xf32>
    %242 = arith.divf %240, %241 : vector<8x128xf32>
    %243 = vector.extract_strided_slice %236 {offsets = [0, 128], sizes = [8, 128], strides = [1, 1]} : vector<8x512xf32> to vector<8x128xf32>
    %244 = arith.negf %243 : vector<8x128xf32>
    %245 = math.exp %244 : vector<8x128xf32>
    %cst_76 = arith.constant 1.000000e+00 : f32
    %246 = vector.broadcast %cst_76 : f32 to vector<8x128xf32>
    %247 = arith.addf %246, %245 : vector<8x128xf32>
    %248 = arith.divf %246, %247 : vector<8x128xf32>
    %249 = vector.extract_strided_slice %236 {offsets = [0, 256], sizes = [8, 128], strides = [1, 1]} : vector<8x512xf32> to vector<8x128xf32>
    %250 = math.tanh %249 : vector<8x128xf32>
    %251 = vector.extract_strided_slice %236 {offsets = [0, 384], sizes = [8, 128], strides = [1, 1]} : vector<8x512xf32> to vector<8x128xf32>
    %252 = arith.negf %251 : vector<8x128xf32>
    %253 = math.exp %252 : vector<8x128xf32>
    %cst_77 = arith.constant 1.000000e+00 : f32
    %254 = vector.broadcast %cst_77 : f32 to vector<8x128xf32>
    %255 = arith.addf %254, %253 : vector<8x128xf32>
    %256 = arith.divf %254, %255 : vector<8x128xf32>
    %257 = arith.mulf %248, %196 : vector<8x128xf32>
    %258 = arith.mulf %242, %250 : vector<8x128xf32>
    %259 = arith.addf %257, %258 : vector<8x128xf32>
    %260 = math.tanh %259 : vector<8x128xf32>
    %261 = arith.mulf %256, %260 : vector<8x128xf32>
    %c24_78 = arith.constant 24 : index
    %c0_79 = arith.constant 0 : index
    %262 = vector.load %arg7[%c24_78, %c0_79] : memref<64x128xf32, #tpu.memory_space<vmem>>, vector<8x128xf32>
    tpu.vector_store %arg7[%c24_78, %c0_79], %261 {strides = array<i32>} : memref<64x128xf32, #tpu.memory_space<vmem>>, vector<8x128xf32>,
    %c32 = arith.constant 32 : index
    %c0_80 = arith.constant 0 : index
    %263 = vector.load %arg8[%c32, %c0_80] : memref<64x512xf32, #tpu.memory_space<vmem>>, vector<8x512xf32>
    %c0_81 = arith.constant 0 : index
    %c0_82 = arith.constant 0 : index
    %264 = vector.load %arg2[%c0_81, %c0_82] : memref<128x512xf32, #tpu.memory_space<vmem>>, vector<128x512xf32>
    %cst_83 = arith.constant dense<0.000000e+00> : vector<8x512xf32>
    %265 = tpu.matmul %228, %264, %cst_83 {dimension_numbers = #tpu.dot_dimension_numbers<[1], [0], [0], [1], [0, 0, 1, 1], [], []>} : vector<8x128xf32>, vector<128x512xf32>, vector<8x512xf32> -> vector<8x512xf32>
    %266 = arith.addf %263, %265 : vector<8x512xf32>
    %267 = vector.extract_strided_slice %266 {offsets = [0, 0], sizes = [8, 128], strides = [1, 1]} : vector<8x512xf32> to vector<8x128xf32>
    %268 = arith.negf %267 : vector<8x128xf32>
    %269 = math.exp %268 : vector<8x128xf32>
    %cst_84 = arith.constant 1.000000e+00 : f32
    %270 = vector.broadcast %cst_84 : f32 to vector<8x128xf32>
    %271 = arith.addf %270, %269 : vector<8x128xf32>
    %272 = arith.divf %270, %271 : vector<8x128xf32>
    %273 = vector.extract_strided_slice %266 {offsets = [0, 128], sizes = [8, 128], strides = [1, 1]} : vector<8x512xf32> to vector<8x128xf32>
    %274 = arith.negf %273 : vector<8x128xf32>
    %275 = math.exp %274 : vector<8x128xf32>
    %cst_85 = arith.constant 1.000000e+00 : f32
    %276 = vector.broadcast %cst_85 : f32 to vector<8x128xf32>
    %277 = arith.addf %276, %275 : vector<8x128xf32>
    %278 = arith.divf %276, %277 : vector<8x128xf32>
    %279 = vector.extract_strided_slice %266 {offsets = [0, 256], sizes = [8, 128], strides = [1, 1]} : vector<8x512xf32> to vector<8x128xf32>
    %280 = math.tanh %279 : vector<8x128xf32>
    %281 = vector.extract_strided_slice %266 {offsets = [0, 384], sizes = [8, 128], strides = [1, 1]} : vector<8x512xf32> to vector<8x128xf32>
    %282 = arith.negf %281 : vector<8x128xf32>
    %283 = math.exp %282 : vector<8x128xf32>
    %cst_86 = arith.constant 1.000000e+00 : f32
    %284 = vector.broadcast %cst_86 : f32 to vector<8x128xf32>
    %285 = arith.addf %284, %283 : vector<8x128xf32>
    %286 = arith.divf %284, %285 : vector<8x128xf32>
    %287 = arith.mulf %278, %226 : vector<8x128xf32>
    %288 = arith.mulf %272, %280 : vector<8x128xf32>
    %289 = arith.addf %287, %288 : vector<8x128xf32>
    %290 = math.tanh %289 : vector<8x128xf32>
    %291 = arith.mulf %286, %290 : vector<8x128xf32>
    %c0_87 = arith.constant 0 : index
    %c0_88 = arith.constant 0 : index
    %292 = vector.load %arg9[%c0_87, %c0_88] : memref<128x512xf32, #tpu.memory_space<vmem>>, vector<128x512xf32>
    %cst_89 = arith.constant dense<0.000000e+00> : vector<8x512xf32>
    %293 = tpu.matmul %291, %292, %cst_89 {dimension_numbers = #tpu.dot_dimension_numbers<[1], [0], [0], [1], [0, 0, 1, 1], [], []>} : vector<8x128xf32>, vector<128x512xf32>, vector<8x512xf32> -> vector<8x512xf32>
    %294 = vector.broadcast %11 : vector<1x512xf32> to vector<8x512xf32>
    %295 = arith.addf %293, %294 : vector<8x512xf32>
    %296 = vector.extract_strided_slice %261 {offsets = [0, 0], sizes = [8, 16], strides = [1, 1]} : vector<8x128xf32> to vector<8x16xf32>
    %c0_90 = arith.constant 0 : index
    %c0_91 = arith.constant 0 : index
    %297 = vector.load %arg10[%c0_90, %c0_91] : memref<16x512xf32, #tpu.memory_space<vmem>>, vector<16x512xf32>
    %cst_92 = arith.constant dense<0.000000e+00> : vector<8x512xf32>
    %298 = tpu.matmul %296, %297, %cst_92 {dimension_numbers = #tpu.dot_dimension_numbers<[1], [0], [0], [1], [0, 0, 1, 1], [], []>} : vector<8x16xf32>, vector<16x512xf32>, vector<8x512xf32> -> vector<8x512xf32>
    %299 = arith.addf %295, %298 : vector<8x512xf32>
    %300 = vector.extract_strided_slice %299 {offsets = [0, 0], sizes = [8, 128], strides = [1, 1]} : vector<8x512xf32> to vector<8x128xf32>
    %301 = arith.negf %300 : vector<8x128xf32>
    %302 = math.exp %301 : vector<8x128xf32>
    %cst_93 = arith.constant 1.000000e+00 : f32
    %303 = vector.broadcast %cst_93 : f32 to vector<8x128xf32>
    %304 = arith.addf %303, %302 : vector<8x128xf32>
    %305 = arith.divf %303, %304 : vector<8x128xf32>
    %306 = vector.extract_strided_slice %299 {offsets = [0, 128], sizes = [8, 128], strides = [1, 1]} : vector<8x512xf32> to vector<8x128xf32>
    %307 = arith.negf %306 : vector<8x128xf32>
    %308 = math.exp %307 : vector<8x128xf32>
    %cst_94 = arith.constant 1.000000e+00 : f32
    %309 = vector.broadcast %cst_94 : f32 to vector<8x128xf32>
    %310 = arith.addf %309, %308 : vector<8x128xf32>
    %311 = arith.divf %309, %310 : vector<8x128xf32>
    %312 = vector.extract_strided_slice %299 {offsets = [0, 256], sizes = [8, 128], strides = [1, 1]} : vector<8x512xf32> to vector<8x128xf32>
    %313 = math.tanh %312 : vector<8x128xf32>
    %314 = vector.extract_strided_slice %299 {offsets = [0, 384], sizes = [8, 128], strides = [1, 1]} : vector<8x512xf32> to vector<8x128xf32>
    %315 = arith.negf %314 : vector<8x128xf32>
    %316 = math.exp %315 : vector<8x128xf32>
    %cst_95 = arith.constant 1.000000e+00 : f32
    %317 = vector.broadcast %cst_95 : f32 to vector<8x128xf32>
    %318 = arith.addf %317, %316 : vector<8x128xf32>
    %319 = arith.divf %317, %318 : vector<8x128xf32>
    %320 = arith.mulf %311, %259 : vector<8x128xf32>
    %321 = arith.mulf %305, %313 : vector<8x128xf32>
    %322 = arith.addf %320, %321 : vector<8x128xf32>
    %323 = math.tanh %322 : vector<8x128xf32>
    %324 = arith.mulf %319, %323 : vector<8x128xf32>
    %c32_96 = arith.constant 32 : index
    %c0_97 = arith.constant 0 : index
    %325 = vector.load %arg7[%c32_96, %c0_97] : memref<64x128xf32, #tpu.memory_space<vmem>>, vector<8x128xf32>
    tpu.vector_store %arg7[%c32_96, %c0_97], %324 {strides = array<i32>} : memref<64x128xf32, #tpu.memory_space<vmem>>, vector<8x128xf32>,
    %c40 = arith.constant 40 : index
    %c0_98 = arith.constant 0 : index
    %326 = vector.load %arg8[%c40, %c0_98] : memref<64x512xf32, #tpu.memory_space<vmem>>, vector<8x512xf32>
    %c0_99 = arith.constant 0 : index
    %c0_100 = arith.constant 0 : index
    %327 = vector.load %arg2[%c0_99, %c0_100] : memref<128x512xf32, #tpu.memory_space<vmem>>, vector<128x512xf32>
    %cst_101 = arith.constant dense<0.000000e+00> : vector<8x512xf32>
    %328 = tpu.matmul %291, %327, %cst_101 {dimension_numbers = #tpu.dot_dimension_numbers<[1], [0], [0], [1], [0, 0, 1, 1], [], []>} : vector<8x128xf32>, vector<128x512xf32>, vector<8x512xf32> -> vector<8x512xf32>
    %329 = arith.addf %326, %328 : vector<8x512xf32>
    %330 = vector.extract_strided_slice %329 {offsets = [0, 0], sizes = [8, 128], strides = [1, 1]} : vector<8x512xf32> to vector<8x128xf32>
    %331 = arith.negf %330 : vector<8x128xf32>
    %332 = math.exp %331 : vector<8x128xf32>
    %cst_102 = arith.constant 1.000000e+00 : f32
    %333 = vector.broadcast %cst_102 : f32 to vector<8x128xf32>
    %334 = arith.addf %333, %332 : vector<8x128xf32>
    %335 = arith.divf %333, %334 : vector<8x128xf32>
    %336 = vector.extract_strided_slice %329 {offsets = [0, 128], sizes = [8, 128], strides = [1, 1]} : vector<8x512xf32> to vector<8x128xf32>
    %337 = arith.negf %336 : vector<8x128xf32>
    %338 = math.exp %337 : vector<8x128xf32>
    %cst_103 = arith.constant 1.000000e+00 : f32
    %339 = vector.broadcast %cst_103 : f32 to vector<8x128xf32>
    %340 = arith.addf %339, %338 : vector<8x128xf32>
    %341 = arith.divf %339, %340 : vector<8x128xf32>
    %342 = vector.extract_strided_slice %329 {offsets = [0, 256], sizes = [8, 128], strides = [1, 1]} : vector<8x512xf32> to vector<8x128xf32>
    %343 = math.tanh %342 : vector<8x128xf32>
    %344 = vector.extract_strided_slice %329 {offsets = [0, 384], sizes = [8, 128], strides = [1, 1]} : vector<8x512xf32> to vector<8x128xf32>
    %345 = arith.negf %344 : vector<8x128xf32>
    %346 = math.exp %345 : vector<8x128xf32>
    %cst_104 = arith.constant 1.000000e+00 : f32
    %347 = vector.broadcast %cst_104 : f32 to vector<8x128xf32>
    %348 = arith.addf %347, %346 : vector<8x128xf32>
    %349 = arith.divf %347, %348 : vector<8x128xf32>
    %350 = arith.mulf %341, %289 : vector<8x128xf32>
    %351 = arith.mulf %335, %343 : vector<8x128xf32>
    %352 = arith.addf %350, %351 : vector<8x128xf32>
    %353 = math.tanh %352 : vector<8x128xf32>
    %354 = arith.mulf %349, %353 : vector<8x128xf32>
    %c0_105 = arith.constant 0 : index
    %c0_106 = arith.constant 0 : index
    %355 = vector.load %arg9[%c0_105, %c0_106] : memref<128x512xf32, #tpu.memory_space<vmem>>, vector<128x512xf32>
    %cst_107 = arith.constant dense<0.000000e+00> : vector<8x512xf32>
    %356 = tpu.matmul %354, %355, %cst_107 {dimension_numbers = #tpu.dot_dimension_numbers<[1], [0], [0], [1], [0, 0, 1, 1], [], []>} : vector<8x128xf32>, vector<128x512xf32>, vector<8x512xf32> -> vector<8x512xf32>
    %357 = vector.broadcast %11 : vector<1x512xf32> to vector<8x512xf32>
    %358 = arith.addf %356, %357 : vector<8x512xf32>
    %359 = vector.extract_strided_slice %324 {offsets = [0, 0], sizes = [8, 16], strides = [1, 1]} : vector<8x128xf32> to vector<8x16xf32>
    %c0_108 = arith.constant 0 : index
    %c0_109 = arith.constant 0 : index
    %360 = vector.load %arg10[%c0_108, %c0_109] : memref<16x512xf32, #tpu.memory_space<vmem>>, vector<16x512xf32>
    %cst_110 = arith.constant dense<0.000000e+00> : vector<8x512xf32>
    %361 = tpu.matmul %359, %360, %cst_110 {dimension_numbers = #tpu.dot_dimension_numbers<[1], [0], [0], [1], [0, 0, 1, 1], [], []>} : vector<8x16xf32>, vector<16x512xf32>, vector<8x512xf32> -> vector<8x512xf32>
    %362 = arith.addf %358, %361 : vector<8x512xf32>
    %363 = vector.extract_strided_slice %362 {offsets = [0, 0], sizes = [8, 128], strides = [1, 1]} : vector<8x512xf32> to vector<8x128xf32>
    %364 = arith.negf %363 : vector<8x128xf32>
    %365 = math.exp %364 : vector<8x128xf32>
    %cst_111 = arith.constant 1.000000e+00 : f32
    %366 = vector.broadcast %cst_111 : f32 to vector<8x128xf32>
    %367 = arith.addf %366, %365 : vector<8x128xf32>
    %368 = arith.divf %366, %367 : vector<8x128xf32>
    %369 = vector.extract_strided_slice %362 {offsets = [0, 128], sizes = [8, 128], strides = [1, 1]} : vector<8x512xf32> to vector<8x128xf32>
    %370 = arith.negf %369 : vector<8x128xf32>
    %371 = math.exp %370 : vector<8x128xf32>
    %cst_112 = arith.constant 1.000000e+00 : f32
    %372 = vector.broadcast %cst_112 : f32 to vector<8x128xf32>
    %373 = arith.addf %372, %371 : vector<8x128xf32>
    %374 = arith.divf %372, %373 : vector<8x128xf32>
    %375 = vector.extract_strided_slice %362 {offsets = [0, 256], sizes = [8, 128], strides = [1, 1]} : vector<8x512xf32> to vector<8x128xf32>
    %376 = math.tanh %375 : vector<8x128xf32>
    %377 = vector.extract_strided_slice %362 {offsets = [0, 384], sizes = [8, 128], strides = [1, 1]} : vector<8x512xf32> to vector<8x128xf32>
    %378 = arith.negf %377 : vector<8x128xf32>
    %379 = math.exp %378 : vector<8x128xf32>
    %cst_113 = arith.constant 1.000000e+00 : f32
    %380 = vector.broadcast %cst_113 : f32 to vector<8x128xf32>
    %381 = arith.addf %380, %379 : vector<8x128xf32>
    %382 = arith.divf %380, %381 : vector<8x128xf32>
    %383 = arith.mulf %374, %322 : vector<8x128xf32>
    %384 = arith.mulf %368, %376 : vector<8x128xf32>
    %385 = arith.addf %383, %384 : vector<8x128xf32>
    %386 = math.tanh %385 : vector<8x128xf32>
    %387 = arith.mulf %382, %386 : vector<8x128xf32>
    %c40_114 = arith.constant 40 : index
    %c0_115 = arith.constant 0 : index
    %388 = vector.load %arg7[%c40_114, %c0_115] : memref<64x128xf32, #tpu.memory_space<vmem>>, vector<8x128xf32>
    tpu.vector_store %arg7[%c40_114, %c0_115], %387 {strides = array<i32>} : memref<64x128xf32, #tpu.memory_space<vmem>>, vector<8x128xf32>,
    %c48 = arith.constant 48 : index
    %c0_116 = arith.constant 0 : index
    %389 = vector.load %arg8[%c48, %c0_116] : memref<64x512xf32, #tpu.memory_space<vmem>>, vector<8x512xf32>
    %c0_117 = arith.constant 0 : index
    %c0_118 = arith.constant 0 : index
    %390 = vector.load %arg2[%c0_117, %c0_118] : memref<128x512xf32, #tpu.memory_space<vmem>>, vector<128x512xf32>
    %cst_119 = arith.constant dense<0.000000e+00> : vector<8x512xf32>
    %391 = tpu.matmul %354, %390, %cst_119 {dimension_numbers = #tpu.dot_dimension_numbers<[1], [0], [0], [1], [0, 0, 1, 1], [], []>} : vector<8x128xf32>, vector<128x512xf32>, vector<8x512xf32> -> vector<8x512xf32>
    %392 = arith.addf %389, %391 : vector<8x512xf32>
    %393 = vector.extract_strided_slice %392 {offsets = [0, 0], sizes = [8, 128], strides = [1, 1]} : vector<8x512xf32> to vector<8x128xf32>
    %394 = arith.negf %393 : vector<8x128xf32>
    %395 = math.exp %394 : vector<8x128xf32>
    %cst_120 = arith.constant 1.000000e+00 : f32
    %396 = vector.broadcast %cst_120 : f32 to vector<8x128xf32>
    %397 = arith.addf %396, %395 : vector<8x128xf32>
    %398 = arith.divf %396, %397 : vector<8x128xf32>
    %399 = vector.extract_strided_slice %392 {offsets = [0, 128], sizes = [8, 128], strides = [1, 1]} : vector<8x512xf32> to vector<8x128xf32>
    %400 = arith.negf %399 : vector<8x128xf32>
    %401 = math.exp %400 : vector<8x128xf32>
    %cst_121 = arith.constant 1.000000e+00 : f32
    %402 = vector.broadcast %cst_121 : f32 to vector<8x128xf32>
    %403 = arith.addf %402, %401 : vector<8x128xf32>
    %404 = arith.divf %402, %403 : vector<8x128xf32>
    %405 = vector.extract_strided_slice %392 {offsets = [0, 256], sizes = [8, 128], strides = [1, 1]} : vector<8x512xf32> to vector<8x128xf32>
    %406 = math.tanh %405 : vector<8x128xf32>
    %407 = vector.extract_strided_slice %392 {offsets = [0, 384], sizes = [8, 128], strides = [1, 1]} : vector<8x512xf32> to vector<8x128xf32>
    %408 = arith.negf %407 : vector<8x128xf32>
    %409 = math.exp %408 : vector<8x128xf32>
    %cst_122 = arith.constant 1.000000e+00 : f32
    %410 = vector.broadcast %cst_122 : f32 to vector<8x128xf32>
    %411 = arith.addf %410, %409 : vector<8x128xf32>
    %412 = arith.divf %410, %411 : vector<8x128xf32>
    %413 = arith.mulf %404, %352 : vector<8x128xf32>
    %414 = arith.mulf %398, %406 : vector<8x128xf32>
    %415 = arith.addf %413, %414 : vector<8x128xf32>
    %416 = math.tanh %415 : vector<8x128xf32>
    %417 = arith.mulf %412, %416 : vector<8x128xf32>
    %c0_123 = arith.constant 0 : index
    %c0_124 = arith.constant 0 : index
    %418 = vector.load %arg9[%c0_123, %c0_124] : memref<128x512xf32, #tpu.memory_space<vmem>>, vector<128x512xf32>
    %cst_125 = arith.constant dense<0.000000e+00> : vector<8x512xf32>
    %419 = tpu.matmul %417, %418, %cst_125 {dimension_numbers = #tpu.dot_dimension_numbers<[1], [0], [0], [1], [0, 0, 1, 1], [], []>} : vector<8x128xf32>, vector<128x512xf32>, vector<8x512xf32> -> vector<8x512xf32>
    %420 = vector.broadcast %11 : vector<1x512xf32> to vector<8x512xf32>
    %421 = arith.addf %419, %420 : vector<8x512xf32>
    %422 = vector.extract_strided_slice %387 {offsets = [0, 0], sizes = [8, 16], strides = [1, 1]} : vector<8x128xf32> to vector<8x16xf32>
    %c0_126 = arith.constant 0 : index
    %c0_127 = arith.constant 0 : index
    %423 = vector.load %arg10[%c0_126, %c0_127] : memref<16x512xf32, #tpu.memory_space<vmem>>, vector<16x512xf32>
    %cst_128 = arith.constant dense<0.000000e+00> : vector<8x512xf32>
    %424 = tpu.matmul %422, %423, %cst_128 {dimension_numbers = #tpu.dot_dimension_numbers<[1], [0], [0], [1], [0, 0, 1, 1], [], []>} : vector<8x16xf32>, vector<16x512xf32>, vector<8x512xf32> -> vector<8x512xf32>
    %425 = arith.addf %421, %424 : vector<8x512xf32>
    %426 = vector.extract_strided_slice %425 {offsets = [0, 0], sizes = [8, 128], strides = [1, 1]} : vector<8x512xf32> to vector<8x128xf32>
    %427 = arith.negf %426 : vector<8x128xf32>
    %428 = math.exp %427 : vector<8x128xf32>
    %cst_129 = arith.constant 1.000000e+00 : f32
    %429 = vector.broadcast %cst_129 : f32 to vector<8x128xf32>
    %430 = arith.addf %429, %428 : vector<8x128xf32>
    %431 = arith.divf %429, %430 : vector<8x128xf32>
    %432 = vector.extract_strided_slice %425 {offsets = [0, 128], sizes = [8, 128], strides = [1, 1]} : vector<8x512xf32> to vector<8x128xf32>
    %433 = arith.negf %432 : vector<8x128xf32>
    %434 = math.exp %433 : vector<8x128xf32>
    %cst_130 = arith.constant 1.000000e+00 : f32
    %435 = vector.broadcast %cst_130 : f32 to vector<8x128xf32>
    %436 = arith.addf %435, %434 : vector<8x128xf32>
    %437 = arith.divf %435, %436 : vector<8x128xf32>
    %438 = vector.extract_strided_slice %425 {offsets = [0, 256], sizes = [8, 128], strides = [1, 1]} : vector<8x512xf32> to vector<8x128xf32>
    %439 = math.tanh %438 : vector<8x128xf32>
    %440 = vector.extract_strided_slice %425 {offsets = [0, 384], sizes = [8, 128], strides = [1, 1]} : vector<8x512xf32> to vector<8x128xf32>
    %441 = arith.negf %440 : vector<8x128xf32>
    %442 = math.exp %441 : vector<8x128xf32>
    %cst_131 = arith.constant 1.000000e+00 : f32
    %443 = vector.broadcast %cst_131 : f32 to vector<8x128xf32>
    %444 = arith.addf %443, %442 : vector<8x128xf32>
    %445 = arith.divf %443, %444 : vector<8x128xf32>
    %446 = arith.mulf %437, %385 : vector<8x128xf32>
    %447 = arith.mulf %431, %439 : vector<8x128xf32>
    %448 = arith.addf %446, %447 : vector<8x128xf32>
    %449 = math.tanh %448 : vector<8x128xf32>
    %450 = arith.mulf %445, %449 : vector<8x128xf32>
    %c48_132 = arith.constant 48 : index
    %c0_133 = arith.constant 0 : index
    %451 = vector.load %arg7[%c48_132, %c0_133] : memref<64x128xf32, #tpu.memory_space<vmem>>, vector<8x128xf32>
    tpu.vector_store %arg7[%c48_132, %c0_133], %450 {strides = array<i32>} : memref<64x128xf32, #tpu.memory_space<vmem>>, vector<8x128xf32>,
    %c56 = arith.constant 56 : index
    %c0_134 = arith.constant 0 : index
    %452 = vector.load %arg8[%c56, %c0_134] : memref<64x512xf32, #tpu.memory_space<vmem>>, vector<8x512xf32>
    %c0_135 = arith.constant 0 : index
    %c0_136 = arith.constant 0 : index
    %453 = vector.load %arg2[%c0_135, %c0_136] : memref<128x512xf32, #tpu.memory_space<vmem>>, vector<128x512xf32>
    %cst_137 = arith.constant dense<0.000000e+00> : vector<8x512xf32>
    %454 = tpu.matmul %417, %453, %cst_137 {dimension_numbers = #tpu.dot_dimension_numbers<[1], [0], [0], [1], [0, 0, 1, 1], [], []>} : vector<8x128xf32>, vector<128x512xf32>, vector<8x512xf32> -> vector<8x512xf32>
    %455 = arith.addf %452, %454 : vector<8x512xf32>
    %456 = vector.extract_strided_slice %455 {offsets = [0, 0], sizes = [8, 128], strides = [1, 1]} : vector<8x512xf32> to vector<8x128xf32>
    %457 = arith.negf %456 : vector<8x128xf32>
    %458 = math.exp %457 : vector<8x128xf32>
    %cst_138 = arith.constant 1.000000e+00 : f32
    %459 = vector.broadcast %cst_138 : f32 to vector<8x128xf32>
    %460 = arith.addf %459, %458 : vector<8x128xf32>
    %461 = arith.divf %459, %460 : vector<8x128xf32>
    %462 = vector.extract_strided_slice %455 {offsets = [0, 128], sizes = [8, 128], strides = [1, 1]} : vector<8x512xf32> to vector<8x128xf32>
    %463 = arith.negf %462 : vector<8x128xf32>
    %464 = math.exp %463 : vector<8x128xf32>
    %cst_139 = arith.constant 1.000000e+00 : f32
    %465 = vector.broadcast %cst_139 : f32 to vector<8x128xf32>
    %466 = arith.addf %465, %464 : vector<8x128xf32>
    %467 = arith.divf %465, %466 : vector<8x128xf32>
    %468 = vector.extract_strided_slice %455 {offsets = [0, 256], sizes = [8, 128], strides = [1, 1]} : vector<8x512xf32> to vector<8x128xf32>
    %469 = math.tanh %468 : vector<8x128xf32>
    %470 = vector.extract_strided_slice %455 {offsets = [0, 384], sizes = [8, 128], strides = [1, 1]} : vector<8x512xf32> to vector<8x128xf32>
    %471 = arith.negf %470 : vector<8x128xf32>
    %472 = math.exp %471 : vector<8x128xf32>
    %cst_140 = arith.constant 1.000000e+00 : f32
    %473 = vector.broadcast %cst_140 : f32 to vector<8x128xf32>
    %474 = arith.addf %473, %472 : vector<8x128xf32>
    %475 = arith.divf %473, %474 : vector<8x128xf32>
    %476 = arith.mulf %467, %415 : vector<8x128xf32>
    %477 = arith.mulf %461, %469 : vector<8x128xf32>
    %478 = arith.addf %476, %477 : vector<8x128xf32>
    %479 = math.tanh %478 : vector<8x128xf32>
    %480 = arith.mulf %475, %479 : vector<8x128xf32>
    %c0_141 = arith.constant 0 : index
    %c0_142 = arith.constant 0 : index
    %481 = vector.load %arg9[%c0_141, %c0_142] : memref<128x512xf32, #tpu.memory_space<vmem>>, vector<128x512xf32>
    %cst_143 = arith.constant dense<0.000000e+00> : vector<8x512xf32>
    %482 = tpu.matmul %480, %481, %cst_143 {dimension_numbers = #tpu.dot_dimension_numbers<[1], [0], [0], [1], [0, 0, 1, 1], [], []>} : vector<8x128xf32>, vector<128x512xf32>, vector<8x512xf32> -> vector<8x512xf32>
    %483 = vector.broadcast %11 : vector<1x512xf32> to vector<8x512xf32>
    %484 = arith.addf %482, %483 : vector<8x512xf32>
    %485 = vector.extract_strided_slice %450 {offsets = [0, 0], sizes = [8, 16], strides = [1, 1]} : vector<8x128xf32> to vector<8x16xf32>
    %c0_144 = arith.constant 0 : index
    %c0_145 = arith.constant 0 : index
    %486 = vector.load %arg10[%c0_144, %c0_145] : memref<16x512xf32, #tpu.memory_space<vmem>>, vector<16x512xf32>
    %cst_146 = arith.constant dense<0.000000e+00> : vector<8x512xf32>
    %487 = tpu.matmul %485, %486, %cst_146 {dimension_numbers = #tpu.dot_dimension_numbers<[1], [0], [0], [1], [0, 0, 1, 1], [], []>} : vector<8x16xf32>, vector<16x512xf32>, vector<8x512xf32> -> vector<8x512xf32>
    %488 = arith.addf %484, %487 : vector<8x512xf32>
    %489 = vector.extract_strided_slice %488 {offsets = [0, 0], sizes = [8, 128], strides = [1, 1]} : vector<8x512xf32> to vector<8x128xf32>
    %490 = arith.negf %489 : vector<8x128xf32>
    %491 = math.exp %490 : vector<8x128xf32>
    %cst_147 = arith.constant 1.000000e+00 : f32
    %492 = vector.broadcast %cst_147 : f32 to vector<8x128xf32>
    %493 = arith.addf %492, %491 : vector<8x128xf32>
    %494 = arith.divf %492, %493 : vector<8x128xf32>
    %495 = vector.extract_strided_slice %488 {offsets = [0, 128], sizes = [8, 128], strides = [1, 1]} : vector<8x512xf32> to vector<8x128xf32>
    %496 = arith.negf %495 : vector<8x128xf32>
    %497 = math.exp %496 : vector<8x128xf32>
    %cst_148 = arith.constant 1.000000e+00 : f32
    %498 = vector.broadcast %cst_148 : f32 to vector<8x128xf32>
    %499 = arith.addf %498, %497 : vector<8x128xf32>
    %500 = arith.divf %498, %499 : vector<8x128xf32>
    %501 = vector.extract_strided_slice %488 {offsets = [0, 256], sizes = [8, 128], strides = [1, 1]} : vector<8x512xf32> to vector<8x128xf32>
    %502 = math.tanh %501 : vector<8x128xf32>
    %503 = vector.extract_strided_slice %488 {offsets = [0, 384], sizes = [8, 128], strides = [1, 1]} : vector<8x512xf32> to vector<8x128xf32>
    %504 = arith.negf %503 : vector<8x128xf32>
    %505 = math.exp %504 : vector<8x128xf32>
    %cst_149 = arith.constant 1.000000e+00 : f32
    %506 = vector.broadcast %cst_149 : f32 to vector<8x128xf32>
    %507 = arith.addf %506, %505 : vector<8x128xf32>
    %508 = arith.divf %506, %507 : vector<8x128xf32>
    %509 = arith.mulf %500, %448 : vector<8x128xf32>
    %510 = arith.mulf %494, %502 : vector<8x128xf32>
    %511 = arith.addf %509, %510 : vector<8x128xf32>
    %512 = math.tanh %511 : vector<8x128xf32>
    %513 = arith.mulf %508, %512 : vector<8x128xf32>
    %c56_150 = arith.constant 56 : index
    %c0_151 = arith.constant 0 : index
    %514 = vector.load %arg7[%c56_150, %c0_151] : memref<64x128xf32, #tpu.memory_space<vmem>>, vector<8x128xf32>
    tpu.vector_store %arg7[%c56_150, %c0_151], %513 {strides = array<i32>} : memref<64x128xf32, #tpu.memory_space<vmem>>, vector<8x128xf32>,
    return
  }
}

</mosaic_0001>

<bundles_post_ra>
// kernel: tpu_custom_call.1
= control target key start
LH: loop header
LB: loop body
LE: loop exit
PB: predicated region body
PF: predicated region fallthrough
CT: control target
= control target key end

     0   :  { %12 = vsyncpa [#allocation7], 0  ;;  %s8032_s0 = inlined_call_operand.vmem [shape: f32[64,16], index: 0, kind: input, shape index: {}]   ;;  %s8033_s1 = inlined_call_operand.vmem [shape: f32[16,512], index: 1, kind: input, shape index: {}]   ;;  %s8034_s2 = inlined_call_operand.hbm [shape: f32[128,512], index: 2, kind: input, shape index: {}]   ;;  %s8035_s3 = inlined_call_operand.vmem [shape: f32[1,512], index: 3, kind: input, shape index: {}]   ;;  %s8036_s4 = inlined_call_operand.hbm [shape: f32[128,512], index: 4, kind: input, shape index: {}]   ;;  %s8037_s5 = inlined_call_operand.hbm [shape: f32[16,512], index: 5, kind: input, shape index: {}]   ;;  %s8038_s6 = inlined_call_operand.vmem [shape: f32[1,512], index: 6, kind: input, shape index: {}]   ;;  %s8039_s7 = inlined_call_operand.hbm [shape: f32[64,128], index: 7, kind: output, shape index: {}]  }
   0x1   :  { %13 = vsyncpa [#allocation8], 0  ;;  %s6659_s24 = smov [#allocation6]   ;;  %s6563_s28 = scalar_lea.hbm %s8034_s2, 8192 }
   0x2   :  { %s23_s25 = sshll.u32 %s6659_s24, 4  ;;  %p6564_p0 = scmp.ne.s32.totalorder %s8034_s2, %s6563_s28  ;;  %s24_s25 = int_to_ptr.vmem [resolvable:$true] %s23_s25 }
   0x3   :  { %p6567_p1 = scmp.lt.u32.totalorder %s6563_s28, %s8034_s2 }
   0x5   :  { %p6569_p2 = pnand %p6567_p1, %p6564_p0 }
   0x7   :  { %6572 = shalt.err (!%p6569_p2)
}
   0x8   :  { %s6573_s10 = scalar_lea.vmem %s24_s25, 8192  ;;  %p6578_p4 = scmp.lt.s32.totalorder %s24_s25, %s24_s25 }
   0x9   :  { %p6574_p3 = scmp.ne.s32.totalorder %s24_s25, %s6573_s10  ;;  %p6579_p5 = scmp.lt.s32.totalorder %s6573_s10, %s6573_s10 }
   0xb   :  { %p6580_p6 = por %p6579_p5, %p6578_p4 }
   0xd   :  { %p6581_p7 = pnand %p6580_p6, %p6574_p3 }
   0xf   :  { %6584 = shalt.err (!%p6581_p7)
}
  0x10   :  { %s6660_s11 = smov 512   ;;  %s6661_s12 = smov 32  }
  0x11   :  { %29 = dma.hbm_to_vmem [thread:$0]  %s8034_s2, 8192, %s24_s25, [#allocation7], %s6660_s11, %s6660_s11, %s6661_s12  }
  0x12   :  { %6651 = dma.done.wait [#allocation7], 8192  }
  0x13   :  { %6652 = vsyncadd [#allocation7], 4294959104  ;;  %v8044_v0 = vmov 0.0   ;;  %v6725_v1 = vld [vmem:[%s8038_s6] sm:$0xf]  ;;  %v69_v2 = vld [vmem:[%s8033_s1 + $0x8] sm:$0xff] }
  0x14   :  { %187 = vmatprep.mubr.f32.mxu0 %v8044_v0  ;;  %300 = vmatprep.mubr.f32.mxu1 %v8044_v0  ;;  %v73_v3 = vld [vmem:[%s8033_s1 + $0x28] sm:$0xff]  ;;  %v68_v5 = vld [vmem:[%s8033_s1] sm:$0xff]  ;;  %v71_v8 = vld [vmem:[%s8033_s1 + $0x18] sm:$0xff]  ;;  %vm98_vm0 = vcmask 130048   ;;  %s6663_s2 = smov [#allocation3]   ;;  %s6664_s22 = smov [#allocation4]  }
  0x15   :  { %v5162_v4 = vpack.c.bf16 %v73_v3, %v69_v2  ;;  %v72_v6 = vld [vmem:[%s8033_s1 + $0x20] sm:$0xff]  ;;  %v75_v9 = vld [vmem:[%s8033_s1 + $0x38] sm:$0xff]  ;;  %v70_v10 = vld [vmem:[%s8033_s1 + $0x10] sm:$0xff]  ;;  %s44_s21 = sshll.u32 %s6663_s2, 4  ;;  %s56_s23 = sshll.u32 %s6664_s22, 4  ;;  %s45_s21 = int_to_ptr.vmem [resolvable:$true] %s44_s21  ;;  %s57_s23 = int_to_ptr.vmem [resolvable:$true] %s56_s23 }
  0x16   :  { %v5164_v7 = vpack.c.bf16 %v72_v6, %v68_v5  ;;  %v5166_v11 = vpack.c.bf16 %v75_v9, %v71_v8  ;;  %v74_v12 = vld [vmem:[%s8033_s1 + $0x30] sm:$0xff]  ;;  %v60_v13 = vld [vmem:[%s8032_s0] sm:$0xff]  ;;  %v61_v15 = vld [vmem:[%s8032_s0 + $0x8] sm:$0xff]  ;;  %s6585_s25 = scalar_lea.hbm %s8036_s4, 8192 }
  0x17   :  { %5163 = vmatprep.subr.bf16.mxu0 %v5162_v4  ;;  %v5168_v14 = vpack.c.bf16 %v74_v12, %v70_v10  ;;  %v62_v16 = vld [vmem:[%s8032_s0 + $0x10] sm:$0xff]  ;;  %v63_v17 = vld [vmem:[%s8032_s0 + $0x18] sm:$0xff]  ;;  %v64_v18 = vld [vmem:[%s8032_s0 + $0x20] sm:$0xff]  ;;  %p6586_p8 = scmp.ne.s32.totalorder %s8036_s4, %s6585_s25  ;;  %p6589_p9 = scmp.lt.u32.totalorder %s6585_s25, %s8036_s4 }
  0x18   :  { %5165 = vmatpush1.bf16.msra.mxu0 %v5164_v7  ;;  %5167 = vmatprep.subr.bf16.mxu1 %v5166_v11  ;;  %v65_v19 = vld [vmem:[%s8032_s0 + $0x28] sm:$0xff]  ;;  %v66_v20 = vld [vmem:[%s8032_s0 + $0x30] sm:$0xff] }
  0x19   :  { %5169 = vmatpush1.bf16.msra.mxu1 %v5168_v14  ;;  %p6591_p10 = pnand %p6589_p9, %p6586_p8 }
  0x1b   :  { %5082 = vmatmul.mubr.msk.f32.vlgmr.msra.gmra.mrb[0].mxu0 %vm98_vm0, %v60_v13 }
  0x1c   :  { %193 = vmatprep.mubr.f32.mxu0 %v8044_v0  ;;  %5090 = vmatmul.mubr.msk.f32.vlgmr.msra.gmra.mrb[0].mxu1 %vm98_vm0, %v60_v13 }
  0x1d   :  { %306 = vmatprep.mubr.f32.mxu1 %v8044_v0 }
  0x1f   :  { %5083 = vmatmul.mubr.msk.f32.gmra.mrb[2].mxu0 %vm98_vm0, %v61_v15 }
  0x20   :  { %5091 = vmatmul.mubr.msk.f32.gmra.mrb[2].mxu1 %vm98_vm0, %v61_v15  ;;  %199 = vmatprep.mubr.f32.mxu0 %v8044_v0 }
  0x21   :  { %312 = vmatprep.mubr.f32.mxu1 %v8044_v0 }
  0x23   :  { %5084 = vmatmul.mubr.msk.f32.gmra.mrb[4].mxu0 %vm98_vm0, %v62_v16 }
  0x24   :  { %5092 = vmatmul.mubr.msk.f32.gmra.mrb[4].mxu1 %vm98_vm0, %v62_v16  ;;  %205 = vmatprep.mubr.f32.mxu0 %v8044_v0 }
  0x25   :  { %318 = vmatprep.mubr.f32.mxu1 %v8044_v0 }
  0x27   :  { %5085 = vmatmul.mubr.msk.f32.gmra.mrb[6].mxu0 %vm98_vm0, %v63_v17 }
  0x28   :  { %5093 = vmatmul.mubr.msk.f32.gmra.mrb[6].mxu1 %vm98_vm0, %v63_v17  ;;  %211 = vmatprep.mubr.f32.mxu0 %v8044_v0 }
  0x29   :  { %324 = vmatprep.mubr.f32.mxu1 %v8044_v0 }
  0x2b   :  { %5086 = vmatmul.mubr.msk.f32.gmra.mrb[8].mxu0 %vm98_vm0, %v64_v18 }
  0x2c   :  { %5094 = vmatmul.mubr.msk.f32.gmra.mrb[8].mxu1 %vm98_vm0, %v64_v18  ;;  %217 = vmatprep.mubr.f32.mxu0 %v8044_v0 }
  0x2d   :  { %330 = vmatprep.mubr.f32.mxu1 %v8044_v0 }
  0x2f   :  { %5087 = vmatmul.mubr.msk.f32.gmra.mrb[10].mxu0 %vm98_vm0, %v65_v19 }
  0x30   :  { %5095 = vmatmul.mubr.msk.f32.gmra.mrb[10].mxu1 %vm98_vm0, %v65_v19  ;;  %223 = vmatprep.mubr.f32.mxu0 %v8044_v0 }
  0x31   :  { %336 = vmatprep.mubr.f32.mxu1 %v8044_v0 }
  0x33   :  { %5088 = vmatmul.mubr.msk.f32.gmra.mrb[12].mxu0 %vm98_vm0, %v66_v20 }
  0x34   :  { %5096 = vmatmul.mubr.msk.f32.gmra.mrb[12].mxu1 %vm98_vm0, %v66_v20  ;;  %229 = vmatprep.mubr.f32.mxu0 %v8044_v0 }
  0x35   :  { %342 = vmatprep.mubr.f32.mxu1 %v8044_v0 }
  0x36   :  { %6594 = shalt.err (!%p6591_p10)  }
  0x37   :  { %s6595_s30 = scalar_lea.vmem %s45_s21, 8192  ;;  %p6600_p12 = scmp.lt.s32.totalorder %s45_s21, %s45_s21 }
  0x38   :  { %p6596_p11 = scmp.ne.s32.totalorder %s45_s21, %s6595_s30  ;;  %p6601_p13 = scmp.lt.s32.totalorder %s6595_s30, %s6595_s30 }
  0x3a   :  { %p6602_p0 = por %p6601_p13, %p6600_p12 }
  0x3c   :  { %p6603_p1 = pnand %p6602_p0, %p6596_p11 }
  0x3e   :  { %6606 = shalt.err (!%p6603_p1)  }
  0x3f   :  { %47 = dma.hbm_to_vmem [thread:$0]  %s8036_s4, 8192, %s45_s21, [#allocation5]  ;;  %v67_v21 = vld [vmem:[%s8032_s0 + $0x38] sm:$0xff] }
  0x40   :  { %5089 = vmatmul.mubr.msk.f32.gmra.mrb[14].mxu0 %vm98_vm0, %v67_v21  ;;  %5097 = vmatmul.mubr.msk.f32.gmra.mrb[14].mxu1 %vm98_vm0, %v67_v21  ;;  %s6607_s13 = scalar_lea.hbm %s8037_s5, 1024 }
  0x41   :  { %p6608_p2 = scmp.ne.s32.totalorder %s8037_s5, %s6607_s13  ;;  %p6611_p3 = scmp.lt.u32.totalorder %s6607_s13, %s8037_s5 }
  0x43   :  { %p6613_p4 = pnand %p6611_p3, %p6608_p2 }
  0x45   :  { %6616 = shalt.err (!%p6613_p4)  }
  0x46   :  { %s6617_s0 = scalar_lea.vmem %s57_s23, 1024  ;;  %p6622_p6 = scmp.lt.s32.totalorder %s57_s23, %s57_s23 }
  0x47   :  { %p6618_p5 = scmp.ne.s32.totalorder %s57_s23, %s6617_s0  ;;  %p6623_p7 = scmp.lt.s32.totalorder %s6617_s0, %s6617_s0 }
  0x49   :  { %p6624_p8 = por %p6623_p7, %p6622_p6 }
  0x4b   :  { %p6625_p9 = pnand %p6624_p8, %p6618_p5 }
  0x4d   :  { %6628 = shalt.err (!%p6625_p9)  }
  0x4e   :  { %59 = dma.hbm_to_vmem [thread:$0]  %s8037_s5, 1024, %s57_s23, [#allocation5 + $0x1]  ;;  %v78_v22 = vlaneseq  ;;  %v76_v25 = vld [vmem:[%s8035_s3] sm:$0xf] }
  0x50   :  { %v6829_v23 = vshrl.u32 %v78_v22, 7 }
  0x52   :  { %v8043_v24 = vsub.s32 0, %v6829_v23  ;;  %v8042_v26 = vsub.s32 1, %v6829_v23  ;;  %v8041_v29 = vsub.s32 3, %v6829_v23  ;;  %v8040_v39 = vsub.s32 2, %v6829_v23 }
  0x54   :  { %v6838_v27 = vrot.slane %v76_v25, %v8043_v24  ;;  %v6842_v28 = vrot.slane %v76_v25, %v8042_v26  ;;  %v6849_v36 = vrot.slane %v76_v25, %v8041_v29  ;;  %v6855_v41 = vrot.slane %v76_v25, %v8040_v39 }
  0x56   :  { %8116 = vst [vmem:[#allocation20_spill] sm:$0xff] %v6838_v27  ;;  %8117 = vst [vmem:[#allocation21_spill] sm:$0xff] %v6842_v28 }
  0x57   :  { %8118 = vst [vmem:[#allocation22_spill] sm:$0xff] %v6849_v36  ;;  %8119 = vst [vmem:[#allocation23_spill] sm:$0xff] %v6855_v41 }
  0xee   :  { %v189_v30 = vpop.f32.mrb[0].mxu0 }
  0xef   :  { %v190_v31 = vadd.f32 %v189_v30, %v6838_v27  ;;  %v191_v32 = vpop.f32.mrb[1].mxu0  ;;  %v302_v34 = vpop.f32.mrb[0].mxu1 }
  0xf0   :  { %v192_v33 = vadd.f32 %v191_v32, %v6842_v28  ;;  %v304_v37 = vpop.f32.mrb[1].mxu1  ;;  %v303_v43 = vadd.f32 %v302_v34, %v6855_v41 }
  0xf1   :  { %v5098_v35 = vmul.f32 -1.442695, %v190_v31  ;;  %v305_v40 = vadd.f32 %v304_v37, %v6849_v36 }
  0xf2   :  { %v5099_v38 = vmul.f32 -1.442695, %v192_v33 }
  0xf3   :  { %6307 = vpow2.f32 %v5098_v35  ;;  %v5100_v42 = vmul.f32 -1.442695, %v305_v40 }
  0xf4   :  { %6309 = vpow2.f32 %v5099_v38 }
  0xf5   :  { %6311 = vpow2.f32 %v5100_v42 }
  0xf6   :  { %6313 = vtanh.f32 %v303_v43 }
  0xfd   :  { %v6308_v44 = vpop.eup %6307 }
  0xfe   :  { %v6310_v45 = vpop.eup %6309  ;;  %v389_v46 = vadd.f32 1.0, %v6308_v44 }
  0xff   :  { %v395_v47 = vadd.f32 1.0, %v6310_v45  ;;  %v6312_v48 = vpop.eup %6311 }
 0x100   :  { %6315 = vrcp.f32 %v389_v46  ;;  %v6314_v49 = vpop.eup %6313  ;;  %v402_v51 = vadd.f32 1.0, %v6312_v48 }
 0x101   :  { %6317 = vrcp.f32 %v395_v47 }
 0x102   :  { %6319 = vrcp.f32 %v402_v51 }
 0x10a   :  { %v6316_v50 = vpop.eup %6315 }
 0x10b   :  { %v6318_v52 = vpop.eup %6317  ;;  %v406_v53 = vmul.f32 %v6316_v50, %v6314_v49 }
 0x10c   :  { %v405_v54 = vmul.f32 0.0, %v6318_v52  ;;  %v6320_v56 = vpop.eup %6319 }
 0x10e   :  { %v6858_v55 = vadd.f32 %v406_v53, %v405_v54 }
 0x110   :  { %6321 = vtanh.f32 %v6858_v55 }
 0x11a   :  { %v6322_v57 = vpop.eup %6321 }
 0x11b   :  { %v6861_v58 = vmul.f32 %v6322_v57, %v6320_v56 }
 0x11c   :  { %6653 = dma.done.wait [#allocation5], 8192 }
 0x11d   :  { %6654 = vsyncadd [#allocation5], 4294959104 }
 0x11e   :  { %6655 = dma.done.wait [#allocation5 + $0x1], 1024 }
 0x11f   :  { %6656 = vsyncadd [#allocation5 + $0x1], 4294966272  ;;  %567 = vmatprep.mubr.f32.mxu0 %v8044_v0  ;;  %638 = vmatprep.mubr.f32.mxu1 %v8044_v0  ;;  %v419_v59 = vld [vmem:[#allocation3 + $0x8] sm:$0xff]  ;;  %v418_v61 = vld [vmem:[#allocation3] sm:$0xff]  ;;  %s6665_s3 = smov [#allocation9]  }
 0x120   :  { %v423_v60 = vld [vmem:[#allocation3 + $0x28] sm:$0xff]  ;;  %v422_v63 = vld [vmem:[#allocation3 + $0x20] sm:$0xff]  ;;  %v421_v15 = vld [vmem:[#allocation3 + $0x18] sm:$0xff]  ;;  %s5057_s5 = sshll.u32 %s6665_s3, 4  ;;  %s5058_s5 = int_to_ptr.vmem [resolvable:$true] %s5057_s5 }
 0x121   :  { %v6865_v62 = vpack.c.bf16 %v423_v60, %v419_v59  ;;  %v427_v2 = vld [vmem:[#allocation3 + $0x48] sm:$0xff]  ;;  %v6867_v4 = vpack.c.bf16 %v422_v63, %v418_v61  ;;  %v426_v6 = vld [vmem:[#allocation3 + $0x40] sm:$0xff]  ;;  %v425_v16 = vld [vmem:[#allocation3 + $0x38] sm:$0xff]  ;;  %s6629_s2 = scalar_lea.vmem %s5058_s5, 1024  ;;  %p6634_p11 = scmp.lt.s32.totalorder %s5058_s5, %s5058_s5 }
 0x122   :  { %v431_v3 = vld [vmem:[#allocation3 + $0x68] sm:$0xff]  ;;  %v430_v7 = vld [vmem:[#allocation3 + $0x60] sm:$0xff]  ;;  %v6878_v18 = vpack.c.bf16 %v425_v16, %v421_v15  ;;  %v420_v19 = vld [vmem:[#allocation3 + $0x10] sm:$0xff]  ;;  %p6630_p10 = scmp.ne.s32.totalorder %s5058_s5, %s6629_s2  ;;  %p6635_p12 = scmp.lt.s32.totalorder %s6629_s2, %s6629_s2 }
 0x123   :  { %v6869_v5 = vpack.c.bf16 %v431_v3, %v427_v2  ;;  %v435_v8 = vld [vmem:[#allocation3 + $0x88] sm:$0xff]  ;;  %5171 = vmatprep.subr.bf16.mxu0 %v6865_v62  ;;  %v6873_v10 = vpack.c.bf16 %v430_v7, %v426_v6  ;;  %v434_v11 = vld [vmem:[#allocation3 + $0x80] sm:$0xff]  ;;  %v424_v20 = vld [vmem:[#allocation3 + $0x30] sm:$0xff] }
 0x124   :  { %v439_v9 = vld [vmem:[#allocation3 + $0xa8] sm:$0xff]  ;;  %5173 = vmatpush1.bf16.msra.mxu0 %v6867_v4  ;;  %v438_v12 = vld [vmem:[#allocation3 + $0xa0] sm:$0xff]  ;;  %v6880_v21 = vpack.c.bf16 %v424_v20, %v420_v19  ;;  %5203 = vmatprep.subr.bf16.mxu1 %v6878_v18  ;;  %v429_v25 = vld [vmem:[#allocation3 + $0x58] sm:$0xff]  ;;  %p6636_p13 = por %p6635_p12, %p6634_p11 }
 0x125   :  { %5175 = vmatprep.subr.bf16.mxu0 %v6869_v5  ;;  %v6876_v13 = vpack.c.bf16 %v439_v9, %v435_v8  ;;  %v443_v14 = vld [vmem:[#allocation3 + $0xc8] sm:$0xff]  ;;  %v6883_v22 = vpack.c.bf16 %v438_v12, %v434_v11  ;;  %v433_v30 = vld [vmem:[#allocation3 + $0x78] sm:$0xff]  ;;  %v428_v31 = vld [vmem:[#allocation3 + $0x50] sm:$0xff] }
 0x126   :  { %v447_v17 = vld [vmem:[#allocation3 + $0xe8] sm:$0xff]  ;;  %v442_v33 = vld [vmem:[#allocation3 + $0xc0] sm:$0xff]  ;;  %5205 = vmatpush1.bf16.msra.mxu1 %v6880_v21  ;;  %v6890_v35 = vpack.c.bf16 %v433_v30, %v429_v25  ;;  %v432_v37 = vld [vmem:[#allocation3 + $0x70] sm:$0xff]  ;;  %p6637_p0 = pnand %p6636_p13, %p6630_p10 }
 0x127   :  { %v6887_v32 = vpack.c.bf16 %v447_v17, %v443_v14  ;;  %v446_v34 = vld [vmem:[#allocation3 + $0xe0] sm:$0xff]  ;;  %v451_v38 = vld [vmem:[#allocation3 + $0x108] sm:$0xff]  ;;  %v6892_v42 = vpack.c.bf16 %v432_v37, %v428_v31  ;;  %v437_v43 = vld [vmem:[#allocation3 + $0x98] sm:$0xff] }
 0x128   :  { %5177 = vmatpush1.bf16.msra.mxu0 %v6873_v10  ;;  %v455_v40 = vld [vmem:[#allocation3 + $0x128] sm:$0xff]  ;;  %5207 = vmatprep.subr.bf16.mxu1 %v6890_v35  ;;  %v441_v44 = vld [vmem:[#allocation3 + $0xb8] sm:$0xff]  ;;  %v436_v45 = vld [vmem:[#allocation3 + $0x90] sm:$0xff]  ;;  %v6896_v47 = vpack.c.bf16 %v446_v34, %v442_v33 }
 0x129   :  { %5179 = vmatprep.subr.bf16.mxu0 %v6876_v13  ;;  %v440_v46 = vld [vmem:[#allocation3 + $0xb0] sm:$0xff]  ;;  %v450_v48 = vld [vmem:[#allocation3 + $0x100] sm:$0xff]  ;;  %v6898_v50 = vpack.c.bf16 %v441_v44, %v437_v43  ;;  %v6901_v51 = vpack.c.bf16 %v455_v40, %v451_v38  ;;  %v459_v52 = vld [vmem:[#allocation3 + $0x148] sm:$0xff] }
 0x12a   :  { %v454_v49 = vld [vmem:[#allocation3 + $0x120] sm:$0xff]  ;;  %5209 = vmatpush1.bf16.msra.mxu1 %v6892_v42  ;;  %v6904_v53 = vpack.c.bf16 %v440_v46, %v436_v45  ;;  %v445_v54 = vld [vmem:[#allocation3 + $0xd8] sm:$0xff]  ;;  %v463_v57 = vld [vmem:[#allocation3 + $0x168] sm:$0xff] }
 0x12b   :  { %v449_v56 = vld [vmem:[#allocation3 + $0xf8] sm:$0xff]  ;;  %5211 = vmatprep.subr.bf16.mxu1 %v6898_v50  ;;  %v444_v60 = vld [vmem:[#allocation3 + $0xd0] sm:$0xff]  ;;  %v6910_v63 = vpack.c.bf16 %v454_v49, %v450_v48  ;;  %v6913_v6 = vpack.c.bf16 %v463_v57, %v459_v52  ;;  %v458_v7 = vld [vmem:[#allocation3 + $0x140] sm:$0xff] }
 0x12c   :  { %5181 = vmatpush1.bf16.msra.mxu0 %v6883_v22  ;;  %v6907_v59 = vpack.c.bf16 %v449_v56, %v445_v54  ;;  %v448_v61 = vld [vmem:[#allocation3 + $0xf0] sm:$0xff]  ;;  %v453_v2 = vld [vmem:[#allocation3 + $0x118] sm:$0xff]  ;;  %v462_v8 = vld [vmem:[#allocation3 + $0x160] sm:$0xff] }
 0x12d   :  { %5183 = vmatprep.subr.bf16.mxu0 %v6887_v32  ;;  %v457_v3 = vld [vmem:[#allocation3 + $0x138] sm:$0xff]  ;;  %v467_v9 = vld [vmem:[#allocation3 + $0x188] sm:$0xff]  ;;  %v6916_v11 = vpack.c.bf16 %v448_v61, %v444_v60  ;;  %v452_v15 = vld [vmem:[#allocation3 + $0x110] sm:$0xff]  ;;  %v6922_v20 = vpack.c.bf16 %v462_v8, %v458_v7 }
 0x12e   :  { %5213 = vmatpush1.bf16.msra.mxu1 %v6904_v53  ;;  %v471_v12 = vld [vmem:[#allocation3 + $0x1a8] sm:$0xff]  ;;  %v6919_v14 = vpack.c.bf16 %v457_v3, %v453_v2  ;;  %v456_v16 = vld [vmem:[#allocation3 + $0x130] sm:$0xff]  ;;  %v461_v17 = vld [vmem:[#allocation3 + $0x158] sm:$0xff] }
 0x12f   :  { %5215 = vmatprep.subr.bf16.mxu1 %v6907_v59  ;;  %v465_v19 = vld [vmem:[#allocation3 + $0x178] sm:$0xff]  ;;  %v6925_v25 = vpack.c.bf16 %v471_v12, %v467_v9  ;;  %v466_v30 = vld [vmem:[#allocation3 + $0x180] sm:$0xff]  ;;  %v475_v33 = vld [vmem:[#allocation3 + $0x1c8] sm:$0xff]  ;;  %v6928_v34 = vpack.c.bf16 %v456_v16, %v452_v15 }
 0x130   :  { %5185 = vmatpush1.bf16.msra.mxu0 %v6896_v47  ;;  %v470_v31 = vld [vmem:[#allocation3 + $0x1a0] sm:$0xff]  ;;  %v479_v37 = vld [vmem:[#allocation3 + $0x1e8] sm:$0xff]  ;;  %v6931_v38 = vpack.c.bf16 %v465_v19, %v461_v17  ;;  %v460_v40 = vld [vmem:[#allocation3 + $0x150] sm:$0xff] }
 0x131   :  { %5187 = vmatprep.subr.bf16.mxu0 %v6901_v51  ;;  %v464_v43 = vld [vmem:[#allocation3 + $0x170] sm:$0xff]  ;;  %v469_v44 = vld [vmem:[#allocation3 + $0x198] sm:$0xff]  ;;  %v6934_v46 = vpack.c.bf16 %v470_v31, %v466_v30  ;;  %v6937_v48 = vpack.c.bf16 %v479_v37, %v475_v33  ;;  %v474_v49 = vld [vmem:[#allocation3 + $0x1c0] sm:$0xff] }
 0x132   :  { %5217 = vmatpush1.bf16.msra.mxu1 %v6916_v11  ;;  %v473_v45 = vld [vmem:[#allocation3 + $0x1b8] sm:$0xff]  ;;  %v478_v52 = vld [vmem:[#allocation3 + $0x1e0] sm:$0xff]  ;;  %v675_v54 = vld [vmem:[#allocation6 + $0x8] sm:$0xff]  ;;  %v6940_v56 = vpack.c.bf16 %v464_v43, %v460_v40 }
 0x133   :  { %5219 = vmatprep.subr.bf16.mxu1 %v6919_v14  ;;  %v679_v57 = vld [vmem:[#allocation6 + $0x28] sm:$0xff]  ;;  %v6943_v60 = vpack.c.bf16 %v473_v45, %v469_v44  ;;  %v468_v61 = vld [vmem:[#allocation3 + $0x190] sm:$0xff]  ;;  %v477_v3 = vld [vmem:[#allocation3 + $0x1d8] sm:$0xff]  ;;  %v6946_v8 = vpack.c.bf16 %v478_v52, %v474_v49 }
 0x134   :  { %5189 = vmatpush1.bf16.msra.mxu0 %v6910_v63  ;;  %v472_v2 = vld [vmem:[#allocation3 + $0x1b0] sm:$0xff]  ;;  %v481_v7 = vld [vmem:[#allocation3 + $0x1f8] sm:$0xff]  ;;  %v6949_v9 = vpack.c.bf16 %v679_v57, %v675_v54  ;;  %v674_v12 = vld [vmem:[#allocation6] sm:$0xff] }
 0x135   :  { %5191 = vmatprep.subr.bf16.mxu0 %v6913_v6  ;;  %v678_v15 = vld [vmem:[#allocation6 + $0x20] sm:$0xff]  ;;  %v683_v16 = vld [vmem:[#allocation6 + $0x48] sm:$0xff]  ;;  %v6952_v17 = vpack.c.bf16 %v472_v2, %v468_v61  ;;  %v6955_v30 = vpack.c.bf16 %v481_v7, %v477_v3  ;;  %v476_v31 = vld [vmem:[#allocation3 + $0x1d0] sm:$0xff] }
 0x136   :  { %5221 = vmatpush1.bf16.msra.mxu1 %v6928_v34  ;;  %v687_v19 = vld [vmem:[#allocation6 + $0x68] sm:$0xff]  ;;  %v480_v33 = vld [vmem:[#allocation3 + $0x1f0] sm:$0xff]  ;;  %v677_v37 = vld [vmem:[#allocation6 + $0x18] sm:$0xff]  ;;  %v6958_v43 = vpack.c.bf16 %v678_v15, %v674_v12 }
 0x137   :  { %5223 = vmatprep.subr.bf16.mxu1 %v6931_v38  ;;  %v681_v40 = vld [vmem:[#allocation6 + $0x38] sm:$0xff]  ;;  %v6961_v44 = vpack.c.bf16 %v687_v19, %v683_v16  ;;  %v682_v45 = vld [vmem:[#allocation6 + $0x40] sm:$0xff]  ;;  %v691_v52 = vld [vmem:[#allocation6 + $0x88] sm:$0xff]  ;;  %v6964_v54 = vpack.c.bf16 %v480_v33, %v476_v31 }
 0x138   :  { %5193 = vmatpush1.bf16.msra.mxu0 %v6922_v20  ;;  %8120 = vst [vmem:[#allocation24_spill] sm:$0xff] %v6958_v43  ;;  %v686_v49 = vld [vmem:[#allocation6 + $0x60] sm:$0xff]  ;;  %v695_v57 = vld [vmem:[#allocation6 + $0xa8] sm:$0xff]  ;;  %v6967_v61 = vpack.c.bf16 %v681_v40, %v677_v37  ;;  %v676_v2 = vld [vmem:[#allocation6 + $0x10] sm:$0xff] }
 0x139   :  { %5195 = vmatprep.subr.bf16.mxu0 %v6925_v25  ;;  %8121 = vst [vmem:[#allocation25_spill] sm:$0xff] %v6961_v44  ;;  %v680_v3 = vld [vmem:[#allocation6 + $0x30] sm:$0xff]  ;;  %v685_v7 = vld [vmem:[#allocation6 + $0x58] sm:$0xff]  ;;  %v6971_v15 = vpack.c.bf16 %v686_v49, %v682_v45  ;;  %v6975_v16 = vpack.c.bf16 %v695_v57, %v691_v52  ;;  %v690_v19 = vld [vmem:[#allocation6 + $0x80] sm:$0xff] }
 0x13a   :  { %5225 = vmatpush1.bf16.msra.mxu1 %v6940_v56  ;;  %v689_v12 = vld [vmem:[#allocation6 + $0x78] sm:$0xff]  ;;  %v694_v31 = vld [vmem:[#allocation6 + $0xa0] sm:$0xff]  ;;  %v699_v33 = vld [vmem:[#allocation6 + $0xc8] sm:$0xff]  ;;  %v6978_v37 = vpack.c.bf16 %v680_v3, %v676_v2 }
 0x13b   :  { %5227 = vmatprep.subr.bf16.mxu1 %v6943_v60  ;;  %8122 = vst [vmem:[#allocation26_spill] sm:$0xff] %v6971_v15  ;;  %8123 = vst [vmem:[#allocation27_spill] sm:$0xff] %v6975_v16  ;;  %v703_v40 = vld [vmem:[#allocation6 + $0xe8] sm:$0xff]  ;;  %v6981_v39 = vpack.c.bf16 %v689_v12, %v685_v7  ;;  %v684_v45 = vld [vmem:[#allocation6 + $0x50] sm:$0xff]  ;;  %v6984_v52 = vpack.c.bf16 %v694_v31, %v690_v19 }
 0x13c   :  { %5197 = vmatpush1.bf16.msra.mxu0 %v6934_v46  ;;  %8124 = vst [vmem:[#allocation28_spill] sm:$0xff] %v6978_v37  ;;  %v688_v49 = vld [vmem:[#allocation6 + $0x70] sm:$0xff]  ;;  %v693_v29 = vld [vmem:[#allocation6 + $0x98] sm:$0xff]  ;;  %v6988_v57 = vpack.c.bf16 %v703_v40, %v699_v33  ;;  %v698_v2 = vld [vmem:[#allocation6 + $0xc0] sm:$0xff] }
 0x13d   :  { %5199 = vmatprep.subr.bf16.mxu0 %v6937_v48  ;;  %8125 = vst [vmem:[#allocation29_spill] sm:$0xff] %v6981_v39  ;;  %v697_v26 = vld [vmem:[#allocation6 + $0xb8] sm:$0xff]  ;;  %8126 = vst [vmem:[#allocation30_spill] sm:$0xff] %v6984_v52  ;;  %v702_v3 = vld [vmem:[#allocation6 + $0xe0] sm:$0xff]  ;;  %v6991_v12 = vpack.c.bf16 %v688_v49, %v684_v45 }
 0x13e   :  { %5229 = vmatpush1.bf16.msra.mxu1 %v6952_v17  ;;  %8127 = vst [vmem:[#allocation31_spill] sm:$0xff] %v6988_v57  ;;  %v707_v7 = vld [vmem:[#allocation6 + $0x108] sm:$0xff]  ;;  %v692_v19 = vld [vmem:[#allocation6 + $0x90] sm:$0xff]  ;;  %v6998_v33 = vpack.c.bf16 %v702_v3, %v698_v2  ;;  %v706_v45 = vld [vmem:[#allocation6 + $0x100] sm:$0xff] }
 0x13f   :  { %5231 = vmatprep.subr.bf16.mxu1 %v6955_v30  ;;  %8128 = vst [vmem:[#allocation32_spill] sm:$0xff] %v6991_v12  ;;  %v711_v24 = vld [vmem:[#allocation6 + $0x128] sm:$0xff]  ;;  %v696_v31 = vld [vmem:[#allocation6 + $0xb0] sm:$0xff]  ;;  %v710_v49 = vld [vmem:[#allocation6 + $0x120] sm:$0xff] }
 0x140   :  { %5201 = vmatpush1.bf16.msra.mxu0 %v6946_v8  ;;  %8131 = vst [vmem:[#allocation34_spill] sm:$0xff] %v6998_v33  ;;  %v7001_v40 = vpack.c.bf16 %v711_v24, %v707_v7  ;;  %v709_v2 = vld [vmem:[#allocation6 + $0x118] sm:$0xff]  ;;  %v7010_v24 = vpack.c.bf16 %v710_v49, %v706_v45 }
 0x141   :  { %5235 = vmatprep.subr.bf16.mxu0 %v6949_v9  ;;  %v713_v3 = vld [vmem:[#allocation6 + $0x138] sm:$0xff] }
 0x142   :  { %5233 = vmatpush1.bf16.msra.mxu1 %v6964_v54  ;;  %8132 = vst [vmem:[#allocation35_spill] sm:$0xff] %v7001_v40  ;;  %8135 = vst [vmem:[#allocation38_spill] sm:$0xff] %v7010_v24  ;;  %v717_v45 = vld [vmem:[#allocation6 + $0x158] sm:$0xff] }
 0x143   :  { %568 = vmatmul.mubr.f32.vlgmr.msra.gmra.mrb[16].mxu0 %v6861_v58  ;;  %5267 = vmatprep.subr.bf16.mxu1 %v6967_v61  ;;  %v721_v49 = vld [vmem:[#allocation6 + $0x178] sm:$0xff] }
 0x144   :  { %5237 = vmatpush1.bf16.msra.mxu0 %v6958_v43  ;;  %802 = vmatprep.mubr.f32.mxu0 %v8044_v0  ;;  %v6994_v0 = vpack.c.bf16 %v697_v26, %v693_v29  ;;  %v715_v26 = vld [vmem:[#allocation6 + $0x148] sm:$0xff]  ;;  %v7004_v29 = vpack.c.bf16 %v696_v31, %v692_v19  ;;  %v700_v43 = vld [vmem:[#allocation6 + $0xd0] sm:$0xff]  ;;  %v718_v19 = vld [vmem:[#allocation6 + $0x160] sm:$0xff] }
 0x145   :  { %5239 = vmatprep.subr.bf16.mxu0 %v6961_v44  ;;  %639 = vmatmul.mubr.f32.vlgmr.msra.gmra.mrb[16].mxu1 %v6861_v58  ;;  %v701_v44 = vld [vmem:[#allocation6 + $0xd8] sm:$0xff]  ;;  %v723_v31 = vld [vmem:[#allocation6 + $0x188] sm:$0xff] }
 0x146   :  { %5269 = vmatpush1.bf16.msra.mxu1 %v6978_v37  ;;  %8129 = vst [vmem:[#allocation33_spill] sm:$0xff] %v6994_v0  ;;  %8133 = vst [vmem:[#allocation36_spill] sm:$0xff] %v7004_v29 }
 0x147   :  { %5271 = vmatprep.subr.bf16.mxu1 %v6981_v39  ;;  %v719_v39 = vld [vmem:[#allocation6 + $0x168] sm:$0xff] }
 0x148   :  { %5241 = vmatpush1.bf16.msra.mxu0 %v6971_v15  ;;  %v8130_v15 = vmov 0.0   ;;  %v7013_v7 = vpack.c.bf16 %v719_v39, %v715_v26 }
 0x149   :  { %5243 = vmatprep.subr.bf16.mxu0 %v6975_v16  ;;  %873 = vmatprep.mubr.f32.mxu1 %v8130_v15  ;;  %v705_v16 = vld [vmem:[#allocation6 + $0xf8] sm:$0xff] }
 0x14a   :  { %5273 = vmatpush1.bf16.msra.mxu1 %v6991_v12  ;;  %v7007_v37 = vpack.c.bf16 %v705_v16, %v701_v44  ;;  %8136 = vst [vmem:[#allocation39_spill] sm:$0xff] %v7013_v7  ;;  %v727_v44 = vld [vmem:[#allocation6 + $0x1a8] sm:$0xff]  ;;  %v7019_v16 = vpack.c.bf16 %v713_v3, %v709_v2  ;;  %v708_v12 = vld [vmem:[#allocation6 + $0x110] sm:$0xff]  ;;  %v7031_v3 = vpack.c.bf16 %v721_v49, %v717_v45 }
 0x14b   :  { %5275 = vmatprep.subr.bf16.mxu1 %v6994_v0  ;;  %v7025_v26 = vpack.c.bf16 %v727_v44, %v723_v31  ;;  %v735_v2 = vld [vmem:[#allocation6 + $0x1e8] sm:$0xff]  ;;  %v724_v49 = vld [vmem:[#allocation6 + $0x190] sm:$0xff] }
 0x14c   :  { %5245 = vmatpush1.bf16.msra.mxu0 %v6984_v52  ;;  %8134 = vst [vmem:[#allocation37_spill] sm:$0xff] %v7007_v37  ;;  %v704_v52 = vld [vmem:[#allocation6 + $0xf0] sm:$0xff]  ;;  %8138 = vst [vmem:[#allocation41_spill] sm:$0xff] %v7019_v16 }
 0x14d   :  { %5247 = vmatprep.subr.bf16.mxu0 %v6988_v57  ;;  %v714_v57 = vld [vmem:[#allocation6 + $0x140] sm:$0xff]  ;;  %v7016_v0 = vpack.c.bf16 %v704_v52, %v700_v43  ;;  %v731_v52 = vld [vmem:[#allocation6 + $0x1c8] sm:$0xff] }
 0x14e   :  { %5277 = vmatpush1.bf16.msra.mxu1 %v7004_v29  ;;  %v7022_v39 = vpack.c.bf16 %v718_v19, %v714_v57  ;;  %v726_v43 = vld [vmem:[#allocation6 + $0x1a0] sm:$0xff]  ;;  %v716_v29 = vld [vmem:[#allocation6 + $0x150] sm:$0xff]  ;;  %v725_v57 = vld [vmem:[#allocation6 + $0x198] sm:$0xff]  ;;  %v7037_v44 = vpack.c.bf16 %v735_v2, %v731_v52 }
 0x14f   :  { %8137 = vst [vmem:[#allocation40_spill] sm:$0xff] %v7016_v0  ;;  %5279 = vmatprep.subr.bf16.mxu1 %v7007_v37  ;;  %v729_v19 = vld [vmem:[#allocation6 + $0x1b8] sm:$0xff]  ;;  %v736_v52 = vld [vmem:[#allocation6 + $0x1f0] sm:$0xff] }
 0x150   :  { %5249 = vmatpush1.bf16.msra.mxu0 %v6998_v33  ;;  %v712_v33 = vld [vmem:[#allocation6 + $0x130] sm:$0xff]  ;;  %8139 = vst [vmem:[#allocation42_spill] sm:$0xff] %v7022_v39  ;;  %v7043_v45 = vpack.c.bf16 %v729_v19, %v725_v57 }
 0x151   :  { %5251 = vmatprep.subr.bf16.mxu0 %v7001_v40  ;;  %v722_v40 = vld [vmem:[#allocation6 + $0x180] sm:$0xff]  ;;  %v7028_v37 = vpack.c.bf16 %v712_v33, %v708_v12 }
 0x152   :  { %5281 = vmatpush1.bf16.msra.mxu1 %v7016_v0  ;;  %v7034_v31 = vpack.c.bf16 %v726_v43, %v722_v40  ;;  %v734_v12 = vld [vmem:[#allocation6 + $0x1e0] sm:$0xff]  ;;  %v733_v0 = vld [vmem:[#allocation6 + $0x1d8] sm:$0xff] }
 0x153   :  { %5283 = vmatprep.subr.bf16.mxu1 %v7019_v16  ;;  %v728_v16 = vld [vmem:[#allocation6 + $0x1b0] sm:$0xff] }
 0x154   :  { %5253 = vmatpush1.bf16.msra.mxu0 %v7010_v24  ;;  %v720_v24 = vld [vmem:[#allocation6 + $0x170] sm:$0xff]  ;;  %v7050_v43 = vpack.c.bf16 %v728_v16, %v724_v49 }
 0x155   :  { %5255 = vmatprep.subr.bf16.mxu0 %v7013_v7  ;;  %v730_v7 = vld [vmem:[#allocation6 + $0x1c0] sm:$0xff]  ;;  %v7040_v33 = vpack.c.bf16 %v720_v24, %v716_v29  ;;  %v732_v24 = vld [vmem:[#allocation6 + $0x1d0] sm:$0xff] }
 0x156   :  { %5285 = vmatpush1.bf16.msra.mxu1 %v7028_v37  ;;  %v7046_v40 = vpack.c.bf16 %v734_v12, %v730_v7  ;;  %v7057_v2 = vpack.c.bf16 %v736_v52, %v732_v24 }
 0x157   :  { %5287 = vmatprep.subr.bf16.mxu1 %v7031_v3 }
 0x158   :  { %5257 = vmatpush1.bf16.msra.mxu0 %v7022_v39  ;;  %v737_v39 = vld [vmem:[#allocation6 + $0x1f8] sm:$0xff] }
 0x159   :  { %5259 = vmatprep.subr.bf16.mxu0 %v7025_v26  ;;  %v7053_v29 = vpack.c.bf16 %v737_v39, %v733_v0  ;;  %v1115_v0 = vld [vmem:[#allocation4 + $0x8] sm:$0xff] }
 0x15a   :  { %5289 = vmatpush1.bf16.msra.mxu1 %v7040_v33 }
 0x15b   :  { %5291 = vmatprep.subr.bf16.mxu1 %v7043_v45 }
 0x15c   :  { %5261 = vmatpush1.bf16.msra.mxu0 %v7034_v31 }
 0x15d   :  { %5263 = vmatprep.subr.bf16.mxu0 %v7037_v44 }
 0x15e   :  { %5293 = vmatpush1.bf16.msra.mxu1 %v7050_v43 }
 0x15f   :  { %5295 = vmatprep.subr.bf16.mxu1 %v7053_v29 }
 0x160   :  { %5265 = vmatpush1.bf16.msra.mxu0 %v7046_v40 }
 0x161   :  { %5299 = vmatprep.subr.bf16.mxu0 %v6865_v62 }
 0x162   :  { %5297 = vmatpush1.bf16.msra.mxu1 %v7057_v2 }
 0x163   :  { %803 = vmatmul.mubr.f32.vlgmr.msra.gmra.mrb[2].mxu0 %v6861_v58  ;;  %5331 = vmatprep.subr.bf16.mxu1 %v6878_v18 }
 0x164   :  { %5301 = vmatpush1.bf16.msra.mxu0 %v6867_v4  ;;  %1036 = vmatprep.mubr.f32.mxu0 %v8130_v15  ;;  %v1117_v4 = vld [vmem:[#allocation4 + $0x18] sm:$0xff] }
 0x165   :  { %5303 = vmatprep.subr.bf16.mxu0 %v6869_v5  ;;  %874 = vmatmul.mubr.f32.vlgmr.msra.gmra.mrb[2].mxu1 %v6861_v58  ;;  %v1119_v58 = vld [vmem:[#allocation4 + $0x28] sm:$0xff]  ;;  %v1121_v5 = vld [vmem:[#allocation4 + $0x38] sm:$0xff] }
 0x166   :  { %5333 = vmatpush1.bf16.msra.mxu1 %v6880_v21  ;;  %1107 = vmatprep.mubr.f32.mxu1 %v8130_v15  ;;  %v7097_v62 = vpack.c.bf16 %v1119_v58, %v1115_v0  ;;  %v8141_v21 = vsub.s32 1, %v6829_v23 }
 0x167   :  { %5335 = vmatprep.subr.bf16.mxu1 %v6890_v35 }
 0x168   :  { %5305 = vmatpush1.bf16.msra.mxu0 %v6873_v10  ;;  %v7100_v10 = vpack.c.bf16 %v1121_v5, %v1117_v4 }
 0x169   :  { %5307 = vmatprep.subr.bf16.mxu0 %v6876_v13  ;;  %v8140_v13 = vsub.s32 0, %v6829_v23 }
 0x16a   :  { %5337 = vmatpush1.bf16.msra.mxu1 %v6892_v42 }
 0x16b   :  { %5339 = vmatprep.subr.bf16.mxu1 %v6898_v50  ;;  %v7106_v18 = vrot.slane %v6725_v1, %v8140_v13 }
 0x16c   :  { %5309 = vmatpush1.bf16.msra.mxu0 %v6883_v22  ;;  %v7111_v22 = vrot.slane %v6725_v1, %v8141_v21 }
 0x16d   :  { %5311 = vmatprep.subr.bf16.mxu0 %v6887_v32 }
 0x16e   :  { %5341 = vmatpush1.bf16.msra.mxu1 %v6904_v53 }
 0x16f   :  { %5343 = vmatprep.subr.bf16.mxu1 %v6907_v59 }
 0x170   :  { %5313 = vmatpush1.bf16.msra.mxu0 %v6896_v47 }
 0x171   :  { %5315 = vmatprep.subr.bf16.mxu0 %v6901_v51  ;;  %v8142_v51 = vsub.s32 3, %v6829_v23 }
 0x172   :  { %5345 = vmatpush1.bf16.msra.mxu1 %v6916_v11 }
 0x173   :  { %5347 = vmatprep.subr.bf16.mxu1 %v6919_v14  ;;  %v7118_v53 = vrot.slane %v6725_v1, %v8142_v51  ;;  %v8143_v14 = vsub.s32 2, %v6829_v23 }
 0x174   :  { %5317 = vmatpush1.bf16.msra.mxu0 %v6910_v63 }
 0x175   :  { %5319 = vmatprep.subr.bf16.mxu0 %v6913_v6 }
 0x176   :  { %5349 = vmatpush1.bf16.msra.mxu1 %v6928_v34 }
 0x177   :  { %5351 = vmatprep.subr.bf16.mxu1 %v6931_v38 }
 0x178   :  { %5321 = vmatpush1.bf16.msra.mxu0 %v6922_v20  ;;  %v7124_v20 = vrot.slane %v6725_v1, %v8143_v14 }
 0x179   :  { %5323 = vmatprep.subr.bf16.mxu0 %v6925_v25 }
 0x17a   :  { %5353 = vmatpush1.bf16.msra.mxu1 %v6940_v56 }
 0x17b   :  { %5355 = vmatprep.subr.bf16.mxu1 %v6943_v60 }
 0x17c   :  { %5325 = vmatpush1.bf16.msra.mxu0 %v6934_v46 }
 0x17d   :  { %5327 = vmatprep.subr.bf16.mxu0 %v6937_v48 }
 0x17e   :  { %5357 = vmatpush1.bf16.msra.mxu1 %v6952_v17 }
 0x17f   :  { %5359 = vmatprep.subr.bf16.mxu1 %v6955_v30 }
 0x180   :  { %5329 = vmatpush1.bf16.msra.mxu0 %v6946_v8 }
 0x181   :  { %5363 = vmatprep.subr.bf16.mxu0 %v7097_v62 }
 0x182   :  { %5361 = vmatpush1.bf16.msra.mxu1 %v6964_v54 }
 0x183   :  { %5367 = vmatprep.subr.bf16.mxu1 %v7100_v10 }
 0x216   :  { %v569_v32 = vpop.f32.mrb[16].mxu0 }
 0x217   :  { %v570_v35 = vadd.f32 %v569_v32, %v7106_v18  ;;  %v571_v42 = vpop.f32.mrb[17].mxu0 }
 0x218   :  { %v572_v47 = vadd.f32 %v571_v42, %v7111_v22  ;;  %v640_v63 = vpop.f32.mrb[16].mxu1 }
 0x219   :  { %v5101_v50 = vmul.f32 -1.442695, %v570_v35  ;;  %v642_v6 = vpop.f32.mrb[17].mxu1  ;;  %v641_v34 = vadd.f32 %v640_v63, %v7124_v20 }
 0x21a   :  { %v5102_v59 = vmul.f32 -1.442695, %v572_v47  ;;  %v643_v11 = vadd.f32 %v642_v6, %v7118_v53 }
 0x21b   :  { %6323 = vpow2.f32 %v5101_v50 }
 0x21c   :  { %6325 = vpow2.f32 %v5102_v59  ;;  %v5103_v25 = vmul.f32 -1.442695, %v643_v11 }
 0x21e   :  { %6327 = vpow2.f32 %v5103_v25 }
 0x21f   :  { %6329 = vtanh.f32 %v641_v34  ;;  %v1114_v34 = vld [vmem:[#allocation4] sm:$0xff] }
 0x225   :  { %v6324_v38 = vpop.eup %6323 }
 0x226   :  { %v6326_v46 = vpop.eup %6325  ;;  %v648_v48 = vadd.f32 1.0, %v6324_v38  ;;  %v1118_v38 = vld [vmem:[#allocation4 + $0x20] sm:$0xff] }
 0x227   :  { %v654_v56 = vadd.f32 1.0, %v6326_v46  ;;  %v1116_v46 = vld [vmem:[#allocation4 + $0x10] sm:$0xff] }
 0x228   :  { %6331 = vrcp.f32 %v648_v48  ;;  %v6328_v60 = vpop.eup %6327  ;;  %v1120_v48 = vld [vmem:[#allocation4 + $0x30] sm:$0xff] }
 0x229   :  { %6333 = vrcp.f32 %v654_v56  ;;  %v6330_v8 = vpop.eup %6329  ;;  %v661_v30 = vadd.f32 1.0, %v6328_v60 }
 0x22b   :  { %6335 = vrcp.f32 %v661_v30 }
 0x232   :  { %v6332_v17 = vpop.eup %6331 }
 0x233   :  { %v6334_v54 = vpop.eup %6333  ;;  %v665_v23 = vmul.f32 %v6332_v17, %v6330_v8  ;;  %v7138_v8 = vpack.c.bf16 %v1118_v38, %v1114_v34  ;;  %v7140_v17 = vpack.c.bf16 %v1120_v48, %v1116_v46  ;;  %v1551_v38 = vld [vmem:[#allocation3 + $0x88] sm:$0xff]  ;;  %v1553_v48 = vld [vmem:[#allocation3 + $0x98] sm:$0xff] }
 0x234   :  { %v664_v7 = vmul.f32 0.0, %v6334_v54  ;;  %v8145_v54 = vld [vmem:[#allocation28_spill] sm:$0xff]  ;;  %v1555_v46 = vld [vmem:[#allocation3 + $0xa8] sm:$0xff] }
 0x235   :  { %v6336_v58 = vpop.eup %6335 }
 0x236   :  { %v7127_v1 = vadd.f32 %v665_v23, %v664_v7  ;;  %v804_v16 = vpop.f32.mrb[2].mxu0  ;;  %v8146_v23 = vld [vmem:[#allocation25_spill] sm:$0xff] }
 0x237   :  { %v6186_v39 = vadd.f32 %v804_v16, %v6838_v27  ;;  %v806_v57 = vpop.f32.mrb[3].mxu0  ;;  %v8147_v7 = vld [vmem:[#allocation29_spill] sm:$0xff]  ;;  %v8148_v16 = vld [vmem:[#allocation26_spill] sm:$0xff] }
 0x238   :  { %6337 = vtanh.f32 %v7127_v1  ;;  %v6187_v19 = vadd.f32 %v806_v57, %v6842_v28  ;;  %v875_v24 = vpop.f32.mrb[2].mxu1  ;;  %v8152_v57 = vld [vmem:[#allocation30_spill] sm:$0xff] }
 0x239   :  { %v5104_v12 = vmul.f32 -1.442695, %v6186_v39  ;;  %v877_v52 = vpop.f32.mrb[3].mxu1  ;;  %v6200_v13 = vadd.f32 %v875_v24, %v6855_v41  ;;  %v8151_v39 = vld [vmem:[#allocation33_spill] sm:$0xff]  ;;  %v8156_v24 = vld [vmem:[#allocation34_spill] sm:$0xff] }
 0x23a   :  { %v5105_v49 = vmul.f32 -1.442695, %v6187_v19  ;;  %v6201_v0 = vadd.f32 %v877_v52, %v6849_v36  ;;  %v8153_v19 = vld [vmem:[#allocation36_spill] sm:$0xff] }
 0x23b   :  { %6339 = vpow2.f32 %v5104_v12  ;;  %v8154_v12 = vld [vmem:[#allocation31_spill] sm:$0xff]  ;;  %v8157_v52 = vld [vmem:[#allocation40_spill] sm:$0xff] }
 0x23c   :  { %6341 = vpow2.f32 %v5105_v49  ;;  %v5106_v4 = vmul.f32 -1.442695, %v6201_v0  ;;  %v8155_v49 = vld [vmem:[#allocation37_spill] sm:$0xff]  ;;  %v8158_v0 = vld [vmem:[#allocation35_spill] sm:$0xff] }
 0x23e   :  { %6343 = vpow2.f32 %v5106_v4  ;;  %v8160_v4 = vld [vmem:[#allocation38_spill] sm:$0xff] }
 0x23f   :  { %6345 = vtanh.f32 %v6200_v13  ;;  %v8162_v13 = vld [vmem:[#allocation42_spill] sm:$0xff] }
 0x242   :  { %v6338_v5 = vpop.eup %6337 }
 0x243   :  { %v668_v21 = vmul.f32 %v6338_v5, %v6336_v58  ;;  %v8159_v58 = vld [vmem:[#allocation41_spill] sm:$0xff]  ;;  %v8161_v5 = vld [vmem:[#allocation39_spill] sm:$0xff] }
 0x245   :  { %v6340_v32 = vpop.eup %6339  ;;  %669 = vst [vmem:[#allocation9] sm:$0xff] %v668_v21 }
 0x246   :  { %v6342_v35 = vpop.eup %6341  ;;  %v887_v42 = vadd.f32 1.0, %v6340_v32  ;;  %v1543_v32 = vld [vmem:[#allocation3 + $0x48] sm:$0xff] }
 0x247   :  { %v893_v47 = vadd.f32 1.0, %v6342_v35  ;;  %v1547_v35 = vld [vmem:[#allocation3 + $0x68] sm:$0xff] }
 0x248   :  { %6347 = vrcp.f32 %v887_v42  ;;  %v6344_v50 = vpop.eup %6343  ;;  %v1545_v42 = vld [vmem:[#allocation3 + $0x58] sm:$0xff] }
 0x249   :  { %6349 = vrcp.f32 %v893_v47  ;;  %v6346_v51 = vpop.eup %6345  ;;  %v900_v63 = vadd.f32 1.0, %v6344_v50  ;;  %v7196_v47 = vpack.c.bf16 %v1547_v35, %v1543_v32  ;;  %v1542_v50 = vld [vmem:[#allocation3 + $0x40] sm:$0xff]  ;;  %v1568_v32 = vld [vmem:[#allocation3 + $0x110] sm:$0xff] }
 0x24a   :  { %v1572_v35 = vld [vmem:[#allocation3 + $0x130] sm:$0xff] }
 0x24b   :  { %6351 = vrcp.f32 %v900_v63 }
 0x252   :  { %v6348_v59 = vpop.eup %6347 }
 0x253   :  { %v6350_v6 = vpop.eup %6349  ;;  %v904_v11 = vmul.f32 %v6348_v59, %v6346_v51  ;;  %v1546_v51 = vld [vmem:[#allocation3 + $0x60] sm:$0xff]  ;;  %v1549_v59 = vld [vmem:[#allocation3 + $0x78] sm:$0xff] }
 0x254   :  { %v903_v14 = vmul.f32 %v6350_v6, %v6858_v55  ;;  %v8144_v55 = vld [vmem:[#allocation24_spill] sm:$0xff]  ;;  %v7198_v63 = vpack.c.bf16 %v1546_v51, %v1542_v50  ;;  %v7200_v6 = vpack.c.bf16 %v1549_v59, %v1545_v42  ;;  %v7239_v42 = vpack.c.bf16 %v1572_v35, %v1568_v32  ;;  %v1575_v50 = vld [vmem:[#allocation3 + $0x148] sm:$0xff] }
 0x255   :  { %v6352_v56 = vpop.eup %6351  ;;  %v1579_v51 = vld [vmem:[#allocation3 + $0x168] sm:$0xff]  ;;  %v1574_v59 = vld [vmem:[#allocation3 + $0x140] sm:$0xff] }
 0x256   :  { %v7135_v25 = vadd.f32 %v904_v11, %v903_v14  ;;  %v1544_v11 = vld [vmem:[#allocation3 + $0x50] sm:$0xff]  ;;  %v1590_v32 = vld [vmem:[#allocation3 + $0x1c0] sm:$0xff] }
 0x257   :  { %v1548_v14 = vld [vmem:[#allocation3 + $0x70] sm:$0xff]  ;;  %v1594_v35 = vld [vmem:[#allocation3 + $0x1e0] sm:$0xff] }
 0x258   :  { %6353 = vtanh.f32 %v7135_v25  ;;  %v7203_v34 = vpack.c.bf16 %v1548_v14, %v1544_v11  ;;  %v7243_v11 = vpack.c.bf16 %v1579_v51, %v1575_v50  ;;  %v1578_v14 = vld [vmem:[#allocation3 + $0x160] sm:$0xff]  ;;  %v1593_v50 = vld [vmem:[#allocation3 + $0x1d8] sm:$0xff] }
 0x259   :  { %v1597_v51 = vld [vmem:[#allocation3 + $0x1f8] sm:$0xff] }
 0x262   :  { %v6354_v60 = vpop.eup %6353 }
 0x263   :  { %v907_v30 = vmul.f32 %v6354_v60, %v6352_v56  ;;  %v7208_v56 = vpack.c.bf16 %v1555_v46, %v1551_v38  ;;  %v1550_v60 = vld [vmem:[#allocation3 + $0x80] sm:$0xff]  ;;  %v1577_v38 = vld [vmem:[#allocation3 + $0x158] sm:$0xff] }
 0x264   :  { %v1581_v46 = vld [vmem:[#allocation3 + $0x178] sm:$0xff] }
 0x265   :  { %1037 = vmatmul.mubr.f32.vlgmr.msra.gmra.mrb[18].mxu0 %v907_v30  ;;  %1108 = vmatmul.mubr.f32.vlgmr.msra.gmra.mrb[18].mxu1 %v907_v30 }
 0x266   :  { %5365 = vmatpush1.bf16.msra.mxu0 %v7138_v8  ;;  %5369 = vmatpush1.bf16.msra.mxu1 %v7140_v17 }
 0x267   :  { %1189 = vmatprep.mubr.f32.mxu0 %v8130_v15  ;;  %1260 = vmatprep.mubr.f32.mxu1 %v8130_v15 }
 0x268   :  { %5371 = vmatprep.subr.bf16.mxu0 %v6949_v9  ;;  %5403 = vmatprep.subr.bf16.mxu1 %v6967_v61  ;;  %v8149_v9 = vld [vmem:[#allocation32_spill] sm:$0xff]  ;;  %v8150_v61 = vld [vmem:[#allocation27_spill] sm:$0xff] }
 0x26d   :  { %5107 = vmatmul.mubr.msk.f32.vlgmr.msra.gmra.mrb[18].mxu0 %vm98_vm0, %v668_v21  ;;  %5108 = vmatmul.mubr.msk.f32.vlgmr.msra.gmra.mrb[18].mxu1 %vm98_vm0, %v668_v21 }
 0x26e   :  { %5373 = vmatpush1.bf16.msra.mxu0 %v8144_v55  ;;  %5405 = vmatpush1.bf16.msra.mxu1 %v8145_v54  ;;  %v1557_v55 = vld [vmem:[#allocation3 + $0xb8] sm:$0xff] }
 0x26f   :  { %5375 = vmatprep.subr.bf16.mxu0 %v8146_v23  ;;  %5407 = vmatprep.subr.bf16.mxu1 %v8147_v7  ;;  %v7212_v23 = vpack.c.bf16 %v1557_v55, %v1553_v48  ;;  %v1552_v7 = vld [vmem:[#allocation3 + $0x90] sm:$0xff]  ;;  %v7246_v48 = vpack.c.bf16 %v1578_v14, %v1574_v59 }
 0x270   :  { %1428 = vmatprep.mubr.f32.mxu0 %v8130_v15  ;;  %1499 = vmatprep.mubr.f32.mxu1 %v8130_v15  ;;  %v1580_v55 = vld [vmem:[#allocation3 + $0x170] sm:$0xff] }
 0x271   :  { %v1592_v59 = vld [vmem:[#allocation3 + $0x1d0] sm:$0xff] }
 0x272   :  { %5377 = vmatpush1.bf16.msra.mxu0 %v8148_v16  ;;  %5409 = vmatpush1.bf16.msra.mxu1 %v8149_v9  ;;  %v1556_v16 = vld [vmem:[#allocation3 + $0xb0] sm:$0xff] }
 0x273   :  { %5379 = vmatprep.subr.bf16.mxu0 %v8150_v61  ;;  %5411 = vmatprep.subr.bf16.mxu1 %v8151_v39  ;;  %v7215_v9 = vpack.c.bf16 %v1556_v16, %v1552_v7  ;;  %v1559_v61 = vld [vmem:[#allocation3 + $0xc8] sm:$0xff]  ;;  %v1596_v14 = vld [vmem:[#allocation3 + $0x1f0] sm:$0xff] }
 0x274   :  { %v1563_v39 = vld [vmem:[#allocation3 + $0xe8] sm:$0xff] }
 0x275   :  { %v1583_v7 = vld [vmem:[#allocation3 + $0x188] sm:$0xff] }
 0x276   :  { %5381 = vmatpush1.bf16.msra.mxu0 %v8152_v57  ;;  %5413 = vmatpush1.bf16.msra.mxu1 %v8153_v19  ;;  %v1561_v57 = vld [vmem:[#allocation3 + $0xd8] sm:$0xff]  ;;  %v7220_v19 = vpack.c.bf16 %v1563_v39, %v1559_v61  ;;  %v1587_v61 = vld [vmem:[#allocation3 + $0x1a8] sm:$0xff]  ;;  %v1582_v39 = vld [vmem:[#allocation3 + $0x180] sm:$0xff] }
 0x277   :  { %5383 = vmatprep.subr.bf16.mxu0 %v8154_v12  ;;  %5415 = vmatprep.subr.bf16.mxu1 %v8155_v49  ;;  %v1558_v12 = vld [vmem:[#allocation3 + $0xc0] sm:$0xff] }
 0x278   :  { %v1562_v49 = vld [vmem:[#allocation3 + $0xe0] sm:$0xff] }
 0x27a   :  { %5385 = vmatpush1.bf16.msra.mxu0 %v8156_v24  ;;  %5417 = vmatpush1.bf16.msra.mxu1 %v8157_v52  ;;  %v1565_v24 = vld [vmem:[#allocation3 + $0xf8] sm:$0xff]  ;;  %v7222_v52 = vpack.c.bf16 %v1562_v49, %v1558_v12  ;;  %v7254_v12 = vpack.c.bf16 %v1587_v61, %v1583_v7 }
 0x27b   :  { %5387 = vmatprep.subr.bf16.mxu0 %v8158_v0  ;;  %5419 = vmatprep.subr.bf16.mxu1 %v8159_v58  ;;  %v7224_v0 = vpack.c.bf16 %v1565_v24, %v1561_v57  ;;  %v1560_v58 = vld [vmem:[#allocation3 + $0xd0] sm:$0xff]  ;;  %v1586_v57 = vld [vmem:[#allocation3 + $0x1a0] sm:$0xff]  ;;  %v1585_v49 = vld [vmem:[#allocation3 + $0x198] sm:$0xff] }
 0x27c   :  { %v1589_v24 = vld [vmem:[#allocation3 + $0x1b8] sm:$0xff] }
 0x27e   :  { %5389 = vmatpush1.bf16.msra.mxu0 %v8160_v4  ;;  %5421 = vmatpush1.bf16.msra.mxu1 %v7028_v37  ;;  %v1535_v37 = vld [vmem:[#allocation3 + $0x8] sm:$0xff]  ;;  %v1564_v4 = vld [vmem:[#allocation3 + $0xf0] sm:$0xff] }
 0x27f   :  { %5391 = vmatprep.subr.bf16.mxu0 %v8161_v5  ;;  %5423 = vmatprep.subr.bf16.mxu1 %v7031_v3  ;;  %v1537_v3 = vld [vmem:[#allocation3 + $0x18] sm:$0xff]  ;;  %v7227_v5 = vpack.c.bf16 %v1564_v4, %v1560_v58  ;;  %v1584_v58 = vld [vmem:[#allocation3 + $0x190] sm:$0xff]  ;;  %v7257_v4 = vpack.c.bf16 %v1586_v57, %v1582_v39 }
 0x282   :  { %5393 = vmatpush1.bf16.msra.mxu0 %v8162_v13  ;;  %5425 = vmatpush1.bf16.msra.mxu1 %v7040_v33  ;;  %v1534_v33 = vld [vmem:[#allocation3] sm:$0xff]  ;;  %v1567_v13 = vld [vmem:[#allocation3 + $0x108] sm:$0xff] }
 0x283   :  { %5395 = vmatprep.subr.bf16.mxu0 %v7025_v26  ;;  %5427 = vmatprep.subr.bf16.mxu1 %v7043_v45  ;;  %v1539_v26 = vld [vmem:[#allocation3 + $0x28] sm:$0xff]  ;;  %v1538_v45 = vld [vmem:[#allocation3 + $0x20] sm:$0xff] }
 0x286   :  { %5397 = vmatpush1.bf16.msra.mxu0 %v7034_v31  ;;  %5429 = vmatpush1.bf16.msra.mxu1 %v7050_v43  ;;  %v7184_v31 = vpack.c.bf16 %v1539_v26, %v1535_v37  ;;  %v7186_v43 = vpack.c.bf16 %v1538_v45, %v1534_v33  ;;  %v1571_v37 = vld [vmem:[#allocation3 + $0x128] sm:$0xff]  ;;  %v1569_v26 = vld [vmem:[#allocation3 + $0x118] sm:$0xff]  ;;  %v1566_v33 = vld [vmem:[#allocation3 + $0x100] sm:$0xff] }
 0x287   :  { %5399 = vmatprep.subr.bf16.mxu0 %v7037_v44  ;;  %5431 = vmatprep.subr.bf16.mxu1 %v7053_v29  ;;  %v1541_v44 = vld [vmem:[#allocation3 + $0x38] sm:$0xff]  ;;  %v1570_v45 = vld [vmem:[#allocation3 + $0x120] sm:$0xff] }
 0x288   :  { %v7188_v29 = vpack.c.bf16 %v1541_v44, %v1537_v3  ;;  %v7232_v3 = vpack.c.bf16 %v1571_v37, %v1567_v13  ;;  %v1573_v44 = vld [vmem:[#allocation3 + $0x138] sm:$0xff]  ;;  %v7259_v13 = vpack.c.bf16 %v1589_v24, %v1585_v49  ;;  %v1588_v37 = vld [vmem:[#allocation3 + $0x1b0] sm:$0xff] }
 0x28a   :  { %5401 = vmatpush1.bf16.msra.mxu0 %v7046_v40  ;;  %5433 = vmatpush1.bf16.msra.mxu1 %v7057_v2  ;;  %v1536_v40 = vld [vmem:[#allocation3 + $0x10] sm:$0xff] }
 0x28b   :  { %v1540_v2 = vld [vmem:[#allocation3 + $0x30] sm:$0xff]  ;;  %5435 = vmatprep.subr.bf16.mxu0 %v7184_v31  ;;  %5467 = vmatprep.subr.bf16.mxu1 %v7188_v29 }
 0x28c   :  { %v7191_v21 = vpack.c.bf16 %v1540_v2, %v1536_v40  ;;  %v7234_v40 = vpack.c.bf16 %v1570_v45, %v1566_v33  ;;  %v7236_v2 = vpack.c.bf16 %v1573_v44, %v1569_v26  ;;  %v1591_v26 = vld [vmem:[#allocation3 + $0x1c8] sm:$0xff]  ;;  %v7263_v45 = vpack.c.bf16 %v1588_v37, %v1584_v58 }
 0x28d   :  { %1429 = vmatmul.mubr.f32.vlgmr.msra.gmra.mrb[4].mxu0 %v907_v30  ;;  %1500 = vmatmul.mubr.f32.vlgmr.msra.gmra.mrb[4].mxu1 %v907_v30  ;;  %v1554_v30 = vld [vmem:[#allocation3 + $0xa0] sm:$0xff]  ;;  %v1595_v33 = vld [vmem:[#allocation3 + $0x1e8] sm:$0xff] }
 0x28e   :  { %1662 = vmatprep.mubr.f32.mxu0 %v8130_v15  ;;  %1733 = vmatprep.mubr.f32.mxu1 %v8130_v15  ;;  %v7210_v54 = vpack.c.bf16 %v1554_v30, %v1550_v60  ;;  %v7248_v60 = vpack.c.bf16 %v1581_v46, %v1577_v38  ;;  %v1576_v30 = vld [vmem:[#allocation3 + $0x150] sm:$0xff]  ;;  %v7265_v44 = vpack.c.bf16 %v1595_v33, %v1591_v26 }
 0x28f   :  { %5437 = vmatpush1.bf16.msra.mxu0 %v7186_v43  ;;  %5469 = vmatpush1.bf16.msra.mxu1 %v7191_v21  ;;  %v7251_v16 = vpack.c.bf16 %v1580_v55, %v1576_v30  ;;  %v7268_v38 = vpack.c.bf16 %v1597_v51, %v1593_v50  ;;  %v7271_v46 = vpack.c.bf16 %v1594_v35, %v1590_v32 }
 0x290   :  { %5439 = vmatprep.subr.bf16.mxu0 %v7196_v47  ;;  %5471 = vmatprep.subr.bf16.mxu1 %v7200_v6  ;;  %v7275_v30 = vpack.c.bf16 %v1596_v14, %v1592_v59 }
 0x293   :  { %5441 = vmatpush1.bf16.msra.mxu0 %v7198_v63  ;;  %5473 = vmatpush1.bf16.msra.mxu1 %v7203_v34 }
 0x294   :  { %5443 = vmatprep.subr.bf16.mxu0 %v7208_v56  ;;  %5475 = vmatprep.subr.bf16.mxu1 %v7212_v23 }
 0x297   :  { %5445 = vmatpush1.bf16.msra.mxu0 %v7210_v54  ;;  %5477 = vmatpush1.bf16.msra.mxu1 %v7215_v9 }
 0x298   :  { %5447 = vmatprep.subr.bf16.mxu0 %v7220_v19  ;;  %5479 = vmatprep.subr.bf16.mxu1 %v7224_v0 }
 0x29b   :  { %5449 = vmatpush1.bf16.msra.mxu0 %v7222_v52  ;;  %5481 = vmatpush1.bf16.msra.mxu1 %v7227_v5 }
 0x29c   :  { %5451 = vmatprep.subr.bf16.mxu0 %v7232_v3  ;;  %5483 = vmatprep.subr.bf16.mxu1 %v7236_v2 }
 0x29f   :  { %5453 = vmatpush1.bf16.msra.mxu0 %v7234_v40  ;;  %5485 = vmatpush1.bf16.msra.mxu1 %v7239_v42 }
 0x2a0   :  { %5455 = vmatprep.subr.bf16.mxu0 %v7243_v11  ;;  %5487 = vmatprep.subr.bf16.mxu1 %v7248_v60 }
 0x2a3   :  { %5457 = vmatpush1.bf16.msra.mxu0 %v7246_v48  ;;  %5489 = vmatpush1.bf16.msra.mxu1 %v7251_v16 }
 0x2a4   :  { %5459 = vmatprep.subr.bf16.mxu0 %v7254_v12  ;;  %5491 = vmatprep.subr.bf16.mxu1 %v7259_v13 }
 0x2a7   :  { %5461 = vmatpush1.bf16.msra.mxu0 %v7257_v4  ;;  %5493 = vmatpush1.bf16.msra.mxu1 %v7263_v45 }
 0x2a8   :  { %5463 = vmatprep.subr.bf16.mxu0 %v7265_v44  ;;  %5495 = vmatprep.subr.bf16.mxu1 %v7268_v38 }
 0x2ab   :  { %5465 = vmatpush1.bf16.msra.mxu0 %v7271_v46  ;;  %5497 = vmatpush1.bf16.msra.mxu1 %v7275_v30 }
 0x2ac   :  { %5499 = vmatprep.subr.bf16.mxu0 %v7097_v62  ;;  %5503 = vmatprep.subr.bf16.mxu1 %v7100_v10 }
 0x340   :  { %v1191_v55 = vpop.f32.mrb[18].mxu0  ;;  %v1262_v7 = vpop.f32.mrb[18].mxu1 }
 0x341   :  { %v6214_v61 = vadd.f32 %v1191_v55, %v7106_v18  ;;  %v1193_v39 = vpop.f32.mrb[19].mxu0  ;;  %v1264_v57 = vpop.f32.mrb[19].mxu1  ;;  %v6216_v33 = vadd.f32 %v1262_v7, %v7124_v20 }
 0x342   :  { %v6215_v49 = vadd.f32 %v1193_v39, %v7111_v22  ;;  %v6217_v37 = vadd.f32 %v1264_v57, %v7118_v53 }
 0x343   :  { %v5109_v24 = vmul.f32 -1.442695, %v6214_v61 }
 0x344   :  { %v5110_v58 = vmul.f32 -1.442695, %v6215_v49  ;;  %v5111_v26 = vmul.f32 -1.442695, %v6217_v37 }
 0x345   :  { %6355 = vpow2.f32 %v5109_v24 }
 0x346   :  { %6357 = vpow2.f32 %v5110_v58 }
 0x347   :  { %6359 = vpow2.f32 %v5111_v26 }
 0x348   :  { %6361 = vtanh.f32 %v6216_v33 }
 0x34f   :  { %v6356_v62 = vpop.eup %6355 }
 0x350   :  { %v6358_v32 = vpop.eup %6357  ;;  %v1274_v10 = vadd.f32 1.0, %v6356_v62 }
 0x351   :  { %v1280_v35 = vadd.f32 1.0, %v6358_v32  ;;  %v6360_v50 = vpop.eup %6359 }
 0x352   :  { %6363 = vrcp.f32 %v1274_v10  ;;  %v6362_v51 = vpop.eup %6361  ;;  %v1287_v61 = vadd.f32 1.0, %v6360_v50 }
 0x353   :  { %6365 = vrcp.f32 %v1280_v35 }
 0x354   :  { %6367 = vrcp.f32 %v1287_v61 }
 0x35c   :  { %v6364_v59 = vpop.eup %6363 }
 0x35d   :  { %v6366_v14 = vpop.eup %6365  ;;  %v1291_v55 = vmul.f32 %v6364_v59, %v6362_v51 }
 0x35e   :  { %v1290_v39 = vmul.f32 %v6366_v14, %v7127_v1  ;;  %v6368_v1 = vpop.eup %6367 }
 0x360   :  { %v7287_v57 = vadd.f32 %v1291_v55, %v1290_v39  ;;  %v1430_v49 = vpop.f32.mrb[4].mxu0  ;;  %v1501_v7 = vpop.f32.mrb[4].mxu1 }
 0x361   :  { %v6188_v24 = vadd.f32 %v1430_v49, %v6838_v27  ;;  %v1432_v58 = vpop.f32.mrb[5].mxu0  ;;  %v1503_v37 = vpop.f32.mrb[5].mxu1  ;;  %v6202_v50 = vadd.f32 %v1501_v7, %v6855_v41  ;;  %v1927_v7 = vld [vmem:[#allocation6 + $0x8] sm:$0xff]  ;;  %v1949_v41 = vld [vmem:[#allocation6 + $0xb8] sm:$0xff] }
 0x362   :  { %v6189_v26 = vadd.f32 %v1432_v58, %v6842_v28  ;;  %6369 = vtanh.f32 %v7287_v57  ;;  %v6203_v32 = vadd.f32 %v1503_v37, %v6849_v36 }
 0x363   :  { %v5112_v33 = vmul.f32 -1.442695, %v6188_v24 }
 0x364   :  { %v5113_v62 = vmul.f32 -1.442695, %v6189_v26  ;;  %v5114_v35 = vmul.f32 -1.442695, %v6203_v32 }
 0x365   :  { %6371 = vpow2.f32 %v5112_v33 }
 0x366   :  { %6373 = vpow2.f32 %v5113_v62 }
 0x367   :  { %6375 = vpow2.f32 %v5114_v35  ;;  %v1933_v35 = vld [vmem:[#allocation6 + $0x38] sm:$0xff] }
 0x368   :  { %6377 = vtanh.f32 %v6202_v50 }
 0x36c   :  { %v6370_v10 = vpop.eup %6369 }
 0x36d   :  { %v1294_v51 = vmul.f32 %v6370_v10, %v6368_v1  ;;  %v1931_v1 = vld [vmem:[#allocation6 + $0x28] sm:$0xff]  ;;  %v1929_v10 = vld [vmem:[#allocation6 + $0x18] sm:$0xff] }
 0x36f   :  { %v6372_v59 = vpop.eup %6371  ;;  %1295 = vst [vmem:[#allocation9 + $0x8] sm:$0xff] %v1294_v51 }
 0x370   :  { %v6374_v14 = vpop.eup %6373  ;;  %v1513_v55 = vadd.f32 1.0, %v6372_v59 }
 0x371   :  { %v1519_v61 = vadd.f32 1.0, %v6374_v14  ;;  %v6376_v39 = vpop.eup %6375  ;;  %v7300_v14 = vpack.c.bf16 %v1931_v1, %v1927_v7  ;;  %v1938_v7 = vld [vmem:[#allocation6 + $0x60] sm:$0xff] }
 0x372   :  { %6379 = vrcp.f32 %v1513_v55  ;;  %v6378_v49 = vpop.eup %6377  ;;  %v1526_v26 = vadd.f32 1.0, %v6376_v39  ;;  %v7302_v55 = vpack.c.bf16 %v1933_v35, %v1929_v10  ;;  %v1928_v39 = vld [vmem:[#allocation6 + $0x10] sm:$0xff] }
 0x373   :  { %6381 = vrcp.f32 %v1519_v61  ;;  %8164 = vst [vmem:[#allocation28_spill] sm:$0xff] %v7300_v14  ;;  %v1930_v61 = vld [vmem:[#allocation6 + $0x20] sm:$0xff]  ;;  %v1936_v10 = vld [vmem:[#allocation6 + $0x50] sm:$0xff] }
 0x374   :  { %6383 = vrcp.f32 %v1526_v26  ;;  %8165 = vst [vmem:[#allocation25_spill] sm:$0xff] %v7302_v55  ;;  %v1941_v26 = vld [vmem:[#allocation6 + $0x78] sm:$0xff]  ;;  %v1940_v35 = vld [vmem:[#allocation6 + $0x70] sm:$0xff] }
 0x37c   :  { %v6380_v24 = vpop.eup %6379 }
 0x37d   :  { %v6382_v58 = vpop.eup %6381  ;;  %v1530_v37 = vmul.f32 %v6380_v24, %v6378_v49  ;;  %v1932_v49 = vld [vmem:[#allocation6 + $0x30] sm:$0xff]  ;;  %v1935_v24 = vld [vmem:[#allocation6 + $0x48] sm:$0xff] }
 0x37e   :  { %v1529_v33 = vmul.f32 %v6382_v58, %v7135_v25  ;;  %v6384_v32 = vpop.eup %6383  ;;  %v1926_v25 = vld [vmem:[#allocation6] sm:$0xff]  ;;  %v1939_v58 = vld [vmem:[#allocation6 + $0x68] sm:$0xff] }
 0x380   :  { %v7295_v62 = vadd.f32 %v1530_v37, %v1529_v33  ;;  %v1937_v37 = vld [vmem:[#allocation6 + $0x58] sm:$0xff]  ;;  %v7312_v33 = vpack.c.bf16 %v1930_v61, %v1926_v25  ;;  %v7326_v61 = vpack.c.bf16 %v1940_v35, %v1936_v10  ;;  %v1952_v35 = vld [vmem:[#allocation6 + $0xd0] sm:$0xff] }
 0x381   :  { %v7318_v1 = vpack.c.bf16 %v1941_v26, %v1937_v37  ;;  %v1944_v37 = vld [vmem:[#allocation6 + $0x90] sm:$0xff]  ;;  %v1951_v26 = vld [vmem:[#allocation6 + $0xc8] sm:$0xff] }
 0x382   :  { %8163 = vst [vmem:[#allocation24_spill] sm:$0xff] %v7295_v62  ;;  %6385 = vtanh.f32 %v7295_v62  ;;  %8166 = vst [vmem:[#allocation29_spill] sm:$0xff] %v7312_v33  ;;  %v1947_v62 = vld [vmem:[#allocation6 + $0xa8] sm:$0xff] }
 0x383   :  { %8169 = vst [vmem:[#allocation27_spill] sm:$0xff] %v7318_v1  ;;  %8171 = vst [vmem:[#allocation30_spill] sm:$0xff] %v7326_v61 }
 0x38c   :  { %v6386_v50 = vpop.eup %6385 }
 0x38d   :  { %v7298_v59 = vmul.f32 %v6386_v50, %v6384_v32  ;;  %v7316_v32 = vpack.c.bf16 %v1939_v58, %v1935_v24  ;;  %v1943_v50 = vld [vmem:[#allocation6 + $0x88] sm:$0xff] }
 0x38e   :  { %v7330_v24 = vpack.c.bf16 %v1947_v62, %v1943_v50  ;;  %v1956_v50 = vld [vmem:[#allocation6 + $0xf0] sm:$0xff] }
 0x38f   :  { %1663 = vmatmul.mubr.f32.vlgmr.msra.gmra.mrb[20].mxu0 %v7298_v59  ;;  %1734 = vmatmul.mubr.f32.vlgmr.msra.gmra.mrb[20].mxu1 %v7298_v59  ;;  %8168 = vst [vmem:[#allocation32_spill] sm:$0xff] %v7316_v32 }
 0x390   :  { %5501 = vmatpush1.bf16.msra.mxu0 %v7138_v8  ;;  %5505 = vmatpush1.bf16.msra.mxu1 %v7140_v17  ;;  %v7314_v8 = vpack.c.bf16 %v1932_v49, %v1928_v39  ;;  %v1934_v17 = vld [vmem:[#allocation6 + $0x40] sm:$0xff]  ;;  %8172 = vst [vmem:[#allocation36_spill] sm:$0xff] %v7330_v24 }
 0x391   :  { %1815 = vmatprep.mubr.f32.mxu0 %v8130_v15  ;;  %1886 = vmatprep.mubr.f32.mxu1 %v8130_v15  ;;  %v7324_v25 = vpack.c.bf16 %v1938_v7, %v1934_v17  ;;  %v1942_v39 = vld [vmem:[#allocation6 + $0x80] sm:$0xff] }
 0x392   :  { %5507 = vmatprep.subr.bf16.mxu0 %v7300_v14  ;;  %5539 = vmatprep.subr.bf16.mxu1 %v7302_v55  ;;  %8167 = vst [vmem:[#allocation26_spill] sm:$0xff] %v7314_v8  ;;  %v1945_v14 = vld [vmem:[#allocation6 + $0x98] sm:$0xff]  ;;  %v1946_v49 = vld [vmem:[#allocation6 + $0xa0] sm:$0xff] }
 0x393   :  { %8170 = vst [vmem:[#allocation33_spill] sm:$0xff] %v7324_v25  ;;  %v7332_v58 = vpack.c.bf16 %v1949_v41, %v1945_v14  ;;  %v1953_v55 = vld [vmem:[#allocation6 + $0xd8] sm:$0xff]  ;;  %v7338_v17 = vpack.c.bf16 %v1946_v49, %v1942_v39  ;;  %v1950_v41 = vld [vmem:[#allocation6 + $0xc0] sm:$0xff]  ;;  %v7352_v49 = vpack.c.bf16 %v1956_v50, %v1952_v35 }
 0x394   :  { %v1954_v14 = vld [vmem:[#allocation6 + $0xe0] sm:$0xff] }
 0x395   :  { %8173 = vst [vmem:[#allocation31_spill] sm:$0xff] %v7332_v58  ;;  %8174 = vst [vmem:[#allocation37_spill] sm:$0xff] %v7338_v17  ;;  %v7350_v39 = vpack.c.bf16 %v1954_v14, %v1950_v41  ;;  %v1966_v35 = vld [vmem:[#allocation6 + $0x140] sm:$0xff] }
 0x396   :  { %8179 = vst [vmem:[#allocation38_spill] sm:$0xff] %v7352_v49  ;;  %v1970_v50 = vld [vmem:[#allocation6 + $0x160] sm:$0xff] }
 0x397   :  { %5115 = vmatmul.mubr.msk.f32.vlgmr.msra.gmra.mrb[20].mxu0 %vm98_vm0, %v1294_v51  ;;  %5116 = vmatmul.mubr.msk.f32.vlgmr.msra.gmra.mrb[20].mxu1 %vm98_vm0, %v1294_v51  ;;  %v1948_v51 = vld [vmem:[#allocation6 + $0xb0] sm:$0xff]  ;;  %8178 = vst [vmem:[#allocation41_spill] sm:$0xff] %v7350_v39 }
 0x398   :  { %5509 = vmatpush1.bf16.msra.mxu0 %v7312_v33  ;;  %5541 = vmatpush1.bf16.msra.mxu1 %v7314_v8  ;;  %v1955_v33 = vld [vmem:[#allocation6 + $0xe8] sm:$0xff]  ;;  %v1957_v8 = vld [vmem:[#allocation6 + $0xf8] sm:$0xff]  ;;  %v7340_v62 = vpack.c.bf16 %v1948_v51, %v1944_v37  ;;  %v1958_v37 = vld [vmem:[#allocation6 + $0x100] sm:$0xff] }
 0x399   :  { %5511 = vmatprep.subr.bf16.mxu0 %v7316_v32  ;;  %5543 = vmatprep.subr.bf16.mxu1 %v7318_v1  ;;  %v7344_v7 = vpack.c.bf16 %v1955_v33, %v1951_v26  ;;  %v7346_v10 = vpack.c.bf16 %v1957_v8, %v1953_v55  ;;  %v1959_v1 = vld [vmem:[#allocation6 + $0x108] sm:$0xff]  ;;  %v1961_v32 = vld [vmem:[#allocation6 + $0x118] sm:$0xff]  ;;  %v1962_v51 = vld [vmem:[#allocation6 + $0x120] sm:$0xff] }
 0x39a   :  { %2054 = vmatprep.mubr.f32.mxu0 %v8130_v15  ;;  %2125 = vmatprep.mubr.f32.mxu1 %v8130_v15  ;;  %8175 = vst [vmem:[#allocation34_spill] sm:$0xff] %v7340_v62  ;;  %v1960_v8 = vld [vmem:[#allocation6 + $0x110] sm:$0xff]  ;;  %v7362_v41 = vpack.c.bf16 %v1962_v51, %v1958_v37  ;;  %v7374_v37 = vpack.c.bf16 %v1970_v50, %v1966_v35 }
 0x39b   :  { %8176 = vst [vmem:[#allocation40_spill] sm:$0xff] %v7344_v7  ;;  %8177 = vst [vmem:[#allocation35_spill] sm:$0xff] %v7346_v10  ;;  %v1964_v26 = vld [vmem:[#allocation6 + $0x130] sm:$0xff] }
 0x39c   :  { %5513 = vmatpush1.bf16.msra.mxu0 %v7324_v25  ;;  %5545 = vmatpush1.bf16.msra.mxu1 %v7326_v61  ;;  %v1963_v25 = vld [vmem:[#allocation6 + $0x128] sm:$0xff]  ;;  %v1965_v61 = vld [vmem:[#allocation6 + $0x138] sm:$0xff]  ;;  %8182 = vst [vmem:[#allocation43_spill] sm:$0xff] %v7362_v41  ;;  %v7364_v14 = vpack.c.bf16 %v1964_v26, %v1960_v8  ;;  %v1974_v8 = vld [vmem:[#allocation6 + $0x180] sm:$0xff] }
 0x39d   :  { %5515 = vmatprep.subr.bf16.mxu0 %v7330_v24  ;;  %5547 = vmatprep.subr.bf16.mxu1 %v7332_v58  ;;  %v7356_v55 = vpack.c.bf16 %v1963_v25, %v1959_v1  ;;  %v7358_v33 = vpack.c.bf16 %v1965_v61, %v1961_v32  ;;  %v1967_v58 = vld [vmem:[#allocation6 + $0x148] sm:$0xff]  ;;  %v1969_v24 = vld [vmem:[#allocation6 + $0x158] sm:$0xff]  ;;  %v1968_v25 = vld [vmem:[#allocation6 + $0x150] sm:$0xff] }
 0x39e   :  { %8183 = vst [vmem:[#allocation44_spill] sm:$0xff] %v7364_v14  ;;  %v1972_v61 = vld [vmem:[#allocation6 + $0x170] sm:$0xff]  ;;  %v1978_v26 = vld [vmem:[#allocation6 + $0x1a0] sm:$0xff] }
 0x39f   :  { %8180 = vst [vmem:[#allocation39_spill] sm:$0xff] %v7356_v55  ;;  %8181 = vst [vmem:[#allocation42_spill] sm:$0xff] %v7358_v33  ;;  %v7376_v51 = vpack.c.bf16 %v1972_v61, %v1968_v25  ;;  %v7386_v35 = vpack.c.bf16 %v1978_v26, %v1974_v8  ;;  %v1982_v25 = vld [vmem:[#allocation6 + $0x1c0] sm:$0xff]  ;;  %v1988_v61 = vld [vmem:[#allocation6 + $0x1f0] sm:$0xff] }
 0x3a0   :  { %5517 = vmatpush1.bf16.msra.mxu0 %v7338_v17  ;;  %5549 = vmatpush1.bf16.msra.mxu1 %v7340_v62  ;;  %v1971_v17 = vld [vmem:[#allocation6 + $0x168] sm:$0xff]  ;;  %v1973_v62 = vld [vmem:[#allocation6 + $0x178] sm:$0xff] }
 0x3a1   :  { %5519 = vmatprep.subr.bf16.mxu0 %v7344_v7  ;;  %5551 = vmatprep.subr.bf16.mxu1 %v7346_v10  ;;  %v7368_v32 = vpack.c.bf16 %v1971_v17, %v1967_v58  ;;  %v7370_v1 = vpack.c.bf16 %v1973_v62, %v1969_v24  ;;  %v1975_v10 = vld [vmem:[#allocation6 + $0x188] sm:$0xff]  ;;  %v1977_v7 = vld [vmem:[#allocation6 + $0x198] sm:$0xff]  ;;  %v1976_v17 = vld [vmem:[#allocation6 + $0x190] sm:$0xff] }
 0x3a2   :  { %v1980_v62 = vld [vmem:[#allocation6 + $0x1b0] sm:$0xff] }
 0x3a3   :  { %v7388_v50 = vpack.c.bf16 %v1980_v62, %v1976_v17 }
 0x3a4   :  { %5521 = vmatpush1.bf16.msra.mxu0 %v7350_v39  ;;  %5553 = vmatpush1.bf16.msra.mxu1 %v7352_v49  ;;  %v1979_v39 = vld [vmem:[#allocation6 + $0x1a8] sm:$0xff]  ;;  %v1981_v49 = vld [vmem:[#allocation6 + $0x1b8] sm:$0xff] }
 0x3a5   :  { %5523 = vmatprep.subr.bf16.mxu0 %v7356_v55  ;;  %5555 = vmatprep.subr.bf16.mxu1 %v7358_v33  ;;  %v7380_v24 = vpack.c.bf16 %v1979_v39, %v1975_v10  ;;  %v7382_v58 = vpack.c.bf16 %v1981_v49, %v1977_v7  ;;  %v1983_v33 = vld [vmem:[#allocation6 + $0x1c8] sm:$0xff]  ;;  %v1985_v55 = vld [vmem:[#allocation6 + $0x1d8] sm:$0xff]  ;;  %v1986_v39 = vld [vmem:[#allocation6 + $0x1e0] sm:$0xff] }
 0x3a6   :  { %v1984_v49 = vld [vmem:[#allocation6 + $0x1d0] sm:$0xff]  ;;  %v7398_v8 = vpack.c.bf16 %v1986_v39, %v1982_v25  ;;  %v8184_v39 = vld [vmem:[#allocation23_spill] sm:$0xff] }
 0x3a7   :  { %v7400_v26 = vpack.c.bf16 %v1988_v61, %v1984_v49 }
 0x3a8   :  { %5525 = vmatpush1.bf16.msra.mxu0 %v7362_v41  ;;  %5557 = vmatpush1.bf16.msra.mxu1 %v7364_v14  ;;  %v1987_v41 = vld [vmem:[#allocation6 + $0x1e8] sm:$0xff]  ;;  %v1989_v14 = vld [vmem:[#allocation6 + $0x1f8] sm:$0xff] }
 0x3a9   :  { %5527 = vmatprep.subr.bf16.mxu0 %v7368_v32  ;;  %5559 = vmatprep.subr.bf16.mxu1 %v7370_v1  ;;  %v7392_v7 = vpack.c.bf16 %v1987_v41, %v1983_v33  ;;  %v7394_v10 = vpack.c.bf16 %v1989_v14, %v1985_v55 }
 0x3ac   :  { %5529 = vmatpush1.bf16.msra.mxu0 %v7374_v37  ;;  %5561 = vmatpush1.bf16.msra.mxu1 %v7376_v51 }
 0x3ad   :  { %5531 = vmatprep.subr.bf16.mxu0 %v7380_v24  ;;  %5563 = vmatprep.subr.bf16.mxu1 %v7382_v58 }
 0x3b0   :  { %5533 = vmatpush1.bf16.msra.mxu0 %v7386_v35  ;;  %5565 = vmatpush1.bf16.msra.mxu1 %v7388_v50 }
 0x3b1   :  { %5535 = vmatprep.subr.bf16.mxu0 %v7392_v7  ;;  %5567 = vmatprep.subr.bf16.mxu1 %v7394_v10 }
 0x3b4   :  { %5537 = vmatpush1.bf16.msra.mxu0 %v7398_v8  ;;  %5569 = vmatpush1.bf16.msra.mxu1 %v7400_v26 }
 0x3b5   :  { %5571 = vmatprep.subr.bf16.mxu0 %v7184_v31  ;;  %5603 = vmatprep.subr.bf16.mxu1 %v7188_v29  ;;  %v2367_v31 = vld [vmem:[#allocation4 + $0x8] sm:$0xff] }
 0x3b7   :  { %2055 = vmatmul.mubr.f32.vlgmr.msra.gmra.mrb[6].mxu0 %v7298_v59  ;;  %2126 = vmatmul.mubr.f32.vlgmr.msra.gmra.mrb[6].mxu1 %v7298_v59 }
 0x3b8   :  { %5573 = vmatpush1.bf16.msra.mxu0 %v7186_v43  ;;  %5605 = vmatpush1.bf16.msra.mxu1 %v7191_v21  ;;  %v2371_v43 = vld [vmem:[#allocation4 + $0x28] sm:$0xff]  ;;  %v2369_v21 = vld [vmem:[#allocation4 + $0x18] sm:$0xff] }
 0x3b9   :  { %5575 = vmatprep.subr.bf16.mxu0 %v7196_v47  ;;  %5607 = vmatprep.subr.bf16.mxu1 %v7200_v6  ;;  %v7442_v29 = vpack.c.bf16 %v2371_v43, %v2367_v31  ;;  %v2373_v47 = vld [vmem:[#allocation4 + $0x38] sm:$0xff] }
 0x3ba   :  { %2288 = vmatprep.mubr.f32.mxu0 %v8130_v15  ;;  %2359 = vmatprep.mubr.f32.mxu1 %v8130_v15 }
 0x3bc   :  { %5577 = vmatpush1.bf16.msra.mxu0 %v7198_v63  ;;  %5609 = vmatpush1.bf16.msra.mxu1 %v7203_v34  ;;  %v7445_v63 = vpack.c.bf16 %v2373_v47, %v2369_v21 }
 0x3bd   :  { %5579 = vmatprep.subr.bf16.mxu0 %v7208_v56  ;;  %5611 = vmatprep.subr.bf16.mxu1 %v7212_v23 }
 0x3c0   :  { %5581 = vmatpush1.bf16.msra.mxu0 %v7210_v54  ;;  %5613 = vmatpush1.bf16.msra.mxu1 %v7215_v9 }
 0x3c1   :  { %5583 = vmatprep.subr.bf16.mxu0 %v7220_v19  ;;  %5615 = vmatprep.subr.bf16.mxu1 %v7224_v0 }
 0x3c4   :  { %5585 = vmatpush1.bf16.msra.mxu0 %v7222_v52  ;;  %5617 = vmatpush1.bf16.msra.mxu1 %v7227_v5 }
 0x3c5   :  { %5587 = vmatprep.subr.bf16.mxu0 %v7232_v3  ;;  %5619 = vmatprep.subr.bf16.mxu1 %v7236_v2 }
 0x3c8   :  { %5589 = vmatpush1.bf16.msra.mxu0 %v7234_v40  ;;  %5621 = vmatpush1.bf16.msra.mxu1 %v7239_v42 }
 0x3c9   :  { %5591 = vmatprep.subr.bf16.mxu0 %v7243_v11  ;;  %5623 = vmatprep.subr.bf16.mxu1 %v7248_v60 }
 0x3cc   :  { %5593 = vmatpush1.bf16.msra.mxu0 %v7246_v48  ;;  %5625 = vmatpush1.bf16.msra.mxu1 %v7251_v16 }
 0x3cd   :  { %5595 = vmatprep.subr.bf16.mxu0 %v7254_v12  ;;  %5627 = vmatprep.subr.bf16.mxu1 %v7259_v13 }
 0x3d0   :  { %5597 = vmatpush1.bf16.msra.mxu0 %v7257_v4  ;;  %5629 = vmatpush1.bf16.msra.mxu1 %v7263_v45 }
 0x3d1   :  { %5599 = vmatprep.subr.bf16.mxu0 %v7265_v44  ;;  %5631 = vmatprep.subr.bf16.mxu1 %v7268_v38 }
 0x3d4   :  { %5601 = vmatpush1.bf16.msra.mxu0 %v7271_v46  ;;  %5633 = vmatpush1.bf16.msra.mxu1 %v7275_v30 }
 0x3d5   :  { %5635 = vmatprep.subr.bf16.mxu0 %v7442_v29  ;;  %5639 = vmatprep.subr.bf16.mxu1 %v7445_v63 }
 0x46a   :  { %v1817_v6 = vpop.f32.mrb[20].mxu0  ;;  %v1888_v34 = vpop.f32.mrb[20].mxu1 }
 0x46b   :  { %v6218_v56 = vadd.f32 %v1817_v6, %v7106_v18  ;;  %v1819_v54 = vpop.f32.mrb[21].mxu0  ;;  %v1890_v23 = vpop.f32.mrb[21].mxu1  ;;  %v6220_v3 = vadd.f32 %v1888_v34, %v7124_v20 }
 0x46c   :  { %v6219_v9 = vadd.f32 %v1819_v54, %v7111_v22  ;;  %v6221_v0 = vadd.f32 %v1890_v23, %v7118_v53 }
 0x46d   :  { %v5117_v19 = vmul.f32 -1.442695, %v6218_v56 }
 0x46e   :  { %v5118_v52 = vmul.f32 -1.442695, %v6219_v9  ;;  %v5119_v5 = vmul.f32 -1.442695, %v6221_v0 }
 0x46f   :  { %6387 = vpow2.f32 %v5117_v19  ;;  %v8185_v19 = vld [vmem:[#allocation24_spill] sm:$0xff] }
 0x470   :  { %6389 = vpow2.f32 %v5118_v52 }
 0x471   :  { %6391 = vpow2.f32 %v5119_v5  ;;  %v2366_v5 = vld [vmem:[#allocation4] sm:$0xff] }
 0x472   :  { %6393 = vtanh.f32 %v6220_v3  ;;  %v2370_v3 = vld [vmem:[#allocation4 + $0x20] sm:$0xff] }
 0x479   :  { %v6388_v40 = vpop.eup %6387 }
 0x47a   :  { %v6390_v2 = vpop.eup %6389  ;;  %v1900_v42 = vadd.f32 1.0, %v6388_v40  ;;  %v2368_v40 = vld [vmem:[#allocation4 + $0x10] sm:$0xff] }
 0x47b   :  { %v1906_v11 = vadd.f32 1.0, %v6390_v2  ;;  %v6392_v48 = vpop.eup %6391  ;;  %v2372_v2 = vld [vmem:[#allocation4 + $0x30] sm:$0xff] }
 0x47c   :  { %6395 = vrcp.f32 %v1900_v42  ;;  %v6394_v60 = vpop.eup %6393  ;;  %v1913_v13 = vadd.f32 1.0, %v6392_v48  ;;  %v7464_v48 = vpack.c.bf16 %v2370_v3, %v2366_v5  ;;  %v2800_v5 = vld [vmem:[#allocation3 + $0x70] sm:$0xff] }
 0x47d   :  { %6397 = vrcp.f32 %v1906_v11 }
 0x47e   :  { %6399 = vrcp.f32 %v1913_v13  ;;  %v8188_v13 = vld [vmem:[#allocation29_spill] sm:$0xff] }
 0x486   :  { %v6396_v16 = vpop.eup %6395 }
 0x487   :  { %v6398_v12 = vpop.eup %6397  ;;  %v1917_v4 = vmul.f32 %v6396_v16, %v6394_v60  ;;  %v7466_v60 = vpack.c.bf16 %v2372_v2, %v2368_v40  ;;  %v2803_v40 = vld [vmem:[#allocation3 + $0x88] sm:$0xff] }
 0x488   :  { %v1916_v45 = vmul.f32 %v6398_v12, %v7287_v57  ;;  %v6400_v57 = vpop.eup %6399  ;;  %v8186_v12 = vld [vmem:[#allocation28_spill] sm:$0xff]  ;;  %v2807_v2 = vld [vmem:[#allocation3 + $0xa8] sm:$0xff] }
 0x48a   :  { %v7453_v44 = vadd.f32 %v1917_v4, %v1916_v45  ;;  %v2056_v38 = vpop.f32.mrb[6].mxu0  ;;  %v2127_v46 = vpop.f32.mrb[6].mxu1  ;;  %v8187_v4 = vld [vmem:[#allocation25_spill] sm:$0xff]  ;;  %v8189_v45 = vld [vmem:[#allocation26_spill] sm:$0xff] }
 0x48b   :  { %v6190_v30 = vadd.f32 %v2056_v38, %v6838_v27  ;;  %v2058_v59 = vpop.f32.mrb[7].mxu0  ;;  %v2129_v55 = vpop.f32.mrb[7].mxu1  ;;  %v6204_v49 = vadd.f32 %v2127_v46, %v8184_v39  ;;  %v8190_v38 = vld [vmem:[#allocation32_spill] sm:$0xff]  ;;  %v8191_v46 = vld [vmem:[#allocation27_spill] sm:$0xff] }
 0x48c   :  { %v6191_v33 = vadd.f32 %v2058_v59, %v6842_v28  ;;  %6401 = vtanh.f32 %v7453_v44  ;;  %v6205_v17 = vadd.f32 %v2129_v55, %v6849_v36  ;;  %v8193_v59 = vld [vmem:[#allocation30_spill] sm:$0xff]  ;;  %v8194_v55 = vld [vmem:[#allocation36_spill] sm:$0xff] }
 0x48d   :  { %v5120_v41 = vmul.f32 -1.442695, %v6190_v30  ;;  %v8192_v30 = vld [vmem:[#allocation33_spill] sm:$0xff] }
 0x48e   :  { %v5121_v14 = vmul.f32 -1.442695, %v6191_v33  ;;  %v5122_v25 = vmul.f32 -1.442695, %v6205_v17  ;;  %v8195_v33 = vld [vmem:[#allocation31_spill] sm:$0xff]  ;;  %v8198_v17 = vld [vmem:[#allocation40_spill] sm:$0xff] }
 0x48f   :  { %6403 = vpow2.f32 %v5120_v41  ;;  %v8196_v41 = vld [vmem:[#allocation37_spill] sm:$0xff] }
 0x490   :  { %6405 = vpow2.f32 %v5121_v14  ;;  %v8197_v14 = vld [vmem:[#allocation34_spill] sm:$0xff] }
 0x491   :  { %6407 = vpow2.f32 %v5122_v25  ;;  %v8201_v25 = vld [vmem:[#allocation38_spill] sm:$0xff] }
 0x492   :  { %6409 = vtanh.f32 %v6204_v49  ;;  %v8202_v49 = vld [vmem:[#allocation39_spill] sm:$0xff] }
 0x496   :  { %v6402_v62 = vpop.eup %6401 }
 0x497   :  { %v1920_v61 = vmul.f32 %v6402_v62, %v6400_v57  ;;  %v8199_v57 = vld [vmem:[#allocation35_spill] sm:$0xff]  ;;  %v8200_v62 = vld [vmem:[#allocation41_spill] sm:$0xff] }
 0x499   :  { %v6404_v31 = vpop.eup %6403  ;;  %1921 = vst [vmem:[#allocation9 + $0x10] sm:$0xff] %v1920_v61 }
 0x49a   :  { %v6406_v43 = vpop.eup %6405  ;;  %v2139_v21 = vadd.f32 1.0, %v6404_v31  ;;  %v8204_v31 = vld [vmem:[#allocation43_spill] sm:$0xff] }
 0x49b   :  { %v2145_v47 = vadd.f32 1.0, %v6406_v43  ;;  %v6408_v6 = vpop.eup %6407  ;;  %v8205_v43 = vld [vmem:[#allocation44_spill] sm:$0xff] }
 0x49c   :  { %6411 = vrcp.f32 %v2139_v21  ;;  %v6410_v34 = vpop.eup %6409  ;;  %v2152_v9 = vadd.f32 1.0, %v6408_v6  ;;  %v2795_v21 = vld [vmem:[#allocation3 + $0x48] sm:$0xff]  ;;  %v2797_v6 = vld [vmem:[#allocation3 + $0x58] sm:$0xff] }
 0x49d   :  { %6413 = vrcp.f32 %v2145_v47  ;;  %v2799_v47 = vld [vmem:[#allocation3 + $0x68] sm:$0xff] }
 0x49e   :  { %6415 = vrcp.f32 %v2152_v9 }
 0x4a6   :  { %v6412_v56 = vpop.eup %6411 }
 0x4a7   :  { %v6414_v54 = vpop.eup %6413  ;;  %v2156_v23 = vmul.f32 %v6412_v56, %v6410_v34  ;;  %v7522_v34 = vpack.c.bf16 %v2799_v47, %v2795_v21  ;;  %v2794_v56 = vld [vmem:[#allocation3 + $0x40] sm:$0xff]  ;;  %v2820_v21 = vld [vmem:[#allocation3 + $0x110] sm:$0xff] }
 0x4a8   :  { %v2155_v52 = vmul.f32 %v6414_v54, %v8185_v19  ;;  %v6416_v42 = vpop.eup %6415  ;;  %v2798_v54 = vld [vmem:[#allocation3 + $0x60] sm:$0xff]  ;;  %v2824_v47 = vld [vmem:[#allocation3 + $0x130] sm:$0xff] }
 0x4a9   :  { %v7524_v9 = vpack.c.bf16 %v2798_v54, %v2794_v56  ;;  %v2827_v56 = vld [vmem:[#allocation3 + $0x148] sm:$0xff] }
 0x4aa   :  { %v7461_v0 = vadd.f32 %v2156_v23, %v2155_v52  ;;  %v2801_v23 = vld [vmem:[#allocation3 + $0x78] sm:$0xff]  ;;  %v2796_v52 = vld [vmem:[#allocation3 + $0x50] sm:$0xff]  ;;  %v2831_v54 = vld [vmem:[#allocation3 + $0x168] sm:$0xff] }
 0x4ab   :  { %v7526_v19 = vpack.c.bf16 %v2801_v23, %v2797_v6  ;;  %v7529_v3 = vpack.c.bf16 %v2800_v5, %v2796_v52  ;;  %v7565_v6 = vpack.c.bf16 %v2824_v47, %v2820_v21  ;;  %v2826_v23 = vld [vmem:[#allocation3 + $0x140] sm:$0xff]  ;;  %v7569_v52 = vpack.c.bf16 %v2831_v54, %v2827_v56  ;;  %v2845_v56 = vld [vmem:[#allocation3 + $0x1d8] sm:$0xff] }
 0x4ac   :  { %6417 = vtanh.f32 %v7461_v0  ;;  %v2830_v5 = vld [vmem:[#allocation3 + $0x160] sm:$0xff]  ;;  %v2849_v54 = vld [vmem:[#allocation3 + $0x1f8] sm:$0xff] }
 0x4ad   :  { %v2842_v21 = vld [vmem:[#allocation3 + $0x1c0] sm:$0xff] }
 0x4ae   :  { %v2846_v47 = vld [vmem:[#allocation3 + $0x1e0] sm:$0xff] }
 0x4b6   :  { %v6418_v11 = vpop.eup %6417 }
 0x4b7   :  { %v2159_v16 = vmul.f32 %v6418_v11, %v6416_v42  ;;  %v2805_v42 = vld [vmem:[#allocation3 + $0x98] sm:$0xff]  ;;  %v7534_v11 = vpack.c.bf16 %v2807_v2, %v2803_v40 }
 0x4b8   :  { %v2829_v40 = vld [vmem:[#allocation3 + $0x158] sm:$0xff] }
 0x4b9   :  { %2289 = vmatmul.mubr.f32.vlgmr.msra.gmra.mrb[22].mxu0 %v2159_v16  ;;  %2360 = vmatmul.mubr.f32.vlgmr.msra.gmra.mrb[22].mxu1 %v2159_v16  ;;  %v2833_v2 = vld [vmem:[#allocation3 + $0x178] sm:$0xff] }
 0x4ba   :  { %5637 = vmatpush1.bf16.msra.mxu0 %v7464_v48  ;;  %5641 = vmatpush1.bf16.msra.mxu1 %v7466_v60 }
 0x4bb   :  { %2441 = vmatprep.mubr.f32.mxu0 %v8130_v15  ;;  %2512 = vmatprep.mubr.f32.mxu1 %v8130_v15 }
 0x4bc   :  { %5643 = vmatprep.subr.bf16.mxu0 %v8186_v12  ;;  %5675 = vmatprep.subr.bf16.mxu1 %v8187_v4  ;;  %v2806_v12 = vld [vmem:[#allocation3 + $0xa0] sm:$0xff]  ;;  %v2809_v4 = vld [vmem:[#allocation3 + $0xb8] sm:$0xff] }
 0x4c1   :  { %5123 = vmatmul.mubr.msk.f32.vlgmr.msra.gmra.mrb[22].mxu0 %vm98_vm0, %v1920_v61  ;;  %5124 = vmatmul.mubr.msk.f32.vlgmr.msra.gmra.mrb[22].mxu1 %vm98_vm0, %v1920_v61  ;;  %v8203_v61 = vld [vmem:[#allocation42_spill] sm:$0xff] }
 0x4c2   :  { %5645 = vmatpush1.bf16.msra.mxu0 %v8188_v13  ;;  %5677 = vmatpush1.bf16.msra.mxu1 %v8189_v45  ;;  %v7538_v45 = vpack.c.bf16 %v2809_v4, %v2805_v42  ;;  %v7572_v42 = vpack.c.bf16 %v2830_v5, %v2826_v23  ;;  %v2832_v4 = vld [vmem:[#allocation3 + $0x170] sm:$0xff] }
 0x4c3   :  { %5647 = vmatprep.subr.bf16.mxu0 %v8190_v38  ;;  %5679 = vmatprep.subr.bf16.mxu1 %v8191_v46  ;;  %v2804_v38 = vld [vmem:[#allocation3 + $0x90] sm:$0xff] }
 0x4c4   :  { %2680 = vmatprep.mubr.f32.mxu0 %v8130_v15  ;;  %2751 = vmatprep.mubr.f32.mxu1 %v8130_v15  ;;  %v2808_v46 = vld [vmem:[#allocation3 + $0xb0] sm:$0xff] }
 0x4c5   :  { %v2844_v23 = vld [vmem:[#allocation3 + $0x1d0] sm:$0xff] }
 0x4c6   :  { %5649 = vmatpush1.bf16.msra.mxu0 %v8192_v30  ;;  %5681 = vmatpush1.bf16.msra.mxu1 %v8193_v59  ;;  %v7541_v30 = vpack.c.bf16 %v2808_v46, %v2804_v38  ;;  %v2811_v59 = vld [vmem:[#allocation3 + $0xc8] sm:$0xff]  ;;  %v2848_v5 = vld [vmem:[#allocation3 + $0x1f0] sm:$0xff] }
 0x4c7   :  { %5651 = vmatprep.subr.bf16.mxu0 %v8194_v55  ;;  %5683 = vmatprep.subr.bf16.mxu1 %v8195_v33  ;;  %v2815_v55 = vld [vmem:[#allocation3 + $0xe8] sm:$0xff]  ;;  %v2813_v33 = vld [vmem:[#allocation3 + $0xd8] sm:$0xff] }
 0x4c8   :  { %v2835_v38 = vld [vmem:[#allocation3 + $0x188] sm:$0xff] }
 0x4ca   :  { %5653 = vmatpush1.bf16.msra.mxu0 %v8196_v41  ;;  %5685 = vmatpush1.bf16.msra.mxu1 %v8197_v14  ;;  %v7546_v41 = vpack.c.bf16 %v2815_v55, %v2811_v59  ;;  %v2810_v14 = vld [vmem:[#allocation3 + $0xc0] sm:$0xff]  ;;  %v2839_v59 = vld [vmem:[#allocation3 + $0x1a8] sm:$0xff] }
 0x4cb   :  { %5655 = vmatprep.subr.bf16.mxu0 %v8198_v17  ;;  %5687 = vmatprep.subr.bf16.mxu1 %v8199_v57  ;;  %v2814_v17 = vld [vmem:[#allocation3 + $0xe0] sm:$0xff]  ;;  %v2817_v57 = vld [vmem:[#allocation3 + $0xf8] sm:$0xff] }
 0x4cc   :  { %v2834_v55 = vld [vmem:[#allocation3 + $0x180] sm:$0xff] }
 0x4ce   :  { %5657 = vmatpush1.bf16.msra.mxu0 %v8200_v62  ;;  %5689 = vmatpush1.bf16.msra.mxu1 %v8201_v25  ;;  %v7548_v62 = vpack.c.bf16 %v2814_v17, %v2810_v14  ;;  %v7550_v25 = vpack.c.bf16 %v2817_v57, %v2813_v33  ;;  %v2838_v33 = vld [vmem:[#allocation3 + $0x1a0] sm:$0xff]  ;;  %v7580_v14 = vpack.c.bf16 %v2839_v59, %v2835_v38  ;;  %v2837_v17 = vld [vmem:[#allocation3 + $0x198] sm:$0xff] }
 0x4cf   :  { %5659 = vmatprep.subr.bf16.mxu0 %v8202_v49  ;;  %5691 = vmatprep.subr.bf16.mxu1 %v8203_v61  ;;  %v2812_v49 = vld [vmem:[#allocation3 + $0xd0] sm:$0xff]  ;;  %v2841_v57 = vld [vmem:[#allocation3 + $0x1b8] sm:$0xff] }
 0x4d0   :  { %v2816_v61 = vld [vmem:[#allocation3 + $0xf0] sm:$0xff] }
 0x4d2   :  { %5661 = vmatpush1.bf16.msra.mxu0 %v8204_v31  ;;  %5693 = vmatpush1.bf16.msra.mxu1 %v8205_v43  ;;  %v7553_v31 = vpack.c.bf16 %v2816_v61, %v2812_v49  ;;  %v2819_v43 = vld [vmem:[#allocation3 + $0x108] sm:$0xff]  ;;  %v2836_v49 = vld [vmem:[#allocation3 + $0x190] sm:$0xff]  ;;  %v7583_v61 = vpack.c.bf16 %v2838_v33, %v2834_v55 }
 0x4d3   :  { %5663 = vmatprep.subr.bf16.mxu0 %v7368_v32  ;;  %5695 = vmatprep.subr.bf16.mxu1 %v7370_v1  ;;  %v2787_v32 = vld [vmem:[#allocation3 + $0x8] sm:$0xff] }
 0x4d4   :  { %v2791_v1 = vld [vmem:[#allocation3 + $0x28] sm:$0xff] }
 0x4d6   :  { %5665 = vmatpush1.bf16.msra.mxu0 %v7374_v37  ;;  %5697 = vmatpush1.bf16.msra.mxu1 %v7376_v51  ;;  %v2789_v37 = vld [vmem:[#allocation3 + $0x18] sm:$0xff]  ;;  %v7510_v51 = vpack.c.bf16 %v2791_v1, %v2787_v32  ;;  %v2823_v32 = vld [vmem:[#allocation3 + $0x128] sm:$0xff] }
 0x4d7   :  { %5667 = vmatprep.subr.bf16.mxu0 %v7380_v24  ;;  %5699 = vmatprep.subr.bf16.mxu1 %v7382_v58  ;;  %v2786_v24 = vld [vmem:[#allocation3] sm:$0xff]  ;;  %v2821_v1 = vld [vmem:[#allocation3 + $0x118] sm:$0xff] }
 0x4d8   :  { %v2790_v58 = vld [vmem:[#allocation3 + $0x20] sm:$0xff] }
 0x4da   :  { %5669 = vmatpush1.bf16.msra.mxu0 %v7386_v35  ;;  %5701 = vmatpush1.bf16.msra.mxu1 %v7388_v50  ;;  %v2793_v35 = vld [vmem:[#allocation3 + $0x38] sm:$0xff]  ;;  %v7512_v50 = vpack.c.bf16 %v2790_v58, %v2786_v24  ;;  %v2818_v24 = vld [vmem:[#allocation3 + $0x100] sm:$0xff] }
 0x4db   :  { %5671 = vmatprep.subr.bf16.mxu0 %v7392_v7  ;;  %5703 = vmatprep.subr.bf16.mxu1 %v7394_v10  ;;  %v7514_v7 = vpack.c.bf16 %v2793_v35, %v2789_v37  ;;  %v2788_v10 = vld [vmem:[#allocation3 + $0x10] sm:$0xff]  ;;  %v7558_v37 = vpack.c.bf16 %v2823_v32, %v2819_v43  ;;  %v2822_v58 = vld [vmem:[#allocation3 + $0x120] sm:$0xff]  ;;  %v2825_v35 = vld [vmem:[#allocation3 + $0x138] sm:$0xff]  ;;  %v7585_v43 = vpack.c.bf16 %v2841_v57, %v2837_v17 }
 0x4dc   :  { %v2840_v32 = vld [vmem:[#allocation3 + $0x1b0] sm:$0xff] }
 0x4de   :  { %5673 = vmatpush1.bf16.msra.mxu0 %v7398_v8  ;;  %5705 = vmatpush1.bf16.msra.mxu1 %v7400_v26  ;;  %v2792_v8 = vld [vmem:[#allocation3 + $0x30] sm:$0xff] }
 0x4df   :  { %5707 = vmatprep.subr.bf16.mxu0 %v7510_v51  ;;  %v7517_v26 = vpack.c.bf16 %v2792_v8, %v2788_v10  ;;  %5739 = vmatprep.subr.bf16.mxu1 %v7514_v7  ;;  %v7560_v10 = vpack.c.bf16 %v2822_v58, %v2818_v24  ;;  %v7562_v8 = vpack.c.bf16 %v2825_v35, %v2821_v1  ;;  %v2843_v1 = vld [vmem:[#allocation3 + $0x1c8] sm:$0xff] }
 0x4e0   :  { %v2847_v24 = vld [vmem:[#allocation3 + $0x1e8] sm:$0xff]  ;;  %v7589_v58 = vpack.c.bf16 %v2840_v32, %v2836_v49 }
 0x4e1   :  { %2681 = vmatmul.mubr.f32.vlgmr.msra.gmra.mrb[8].mxu0 %v2159_v16  ;;  %2752 = vmatmul.mubr.f32.vlgmr.msra.gmra.mrb[8].mxu1 %v2159_v16  ;;  %v2802_v16 = vld [vmem:[#allocation3 + $0x80] sm:$0xff]  ;;  %v7591_v35 = vpack.c.bf16 %v2847_v24, %v2843_v1 }
 0x4e2   :  { %2914 = vmatprep.mubr.f32.mxu0 %v8130_v15  ;;  %2985 = vmatprep.mubr.f32.mxu1 %v8130_v15  ;;  %v7536_v13 = vpack.c.bf16 %v2806_v12, %v2802_v16  ;;  %v7574_v16 = vpack.c.bf16 %v2833_v2, %v2829_v40  ;;  %v2828_v12 = vld [vmem:[#allocation3 + $0x150] sm:$0xff]  ;;  %v7594_v40 = vpack.c.bf16 %v2849_v54, %v2845_v56 }
 0x4e3   :  { %5709 = vmatpush1.bf16.msra.mxu0 %v7512_v50  ;;  %5741 = vmatpush1.bf16.msra.mxu1 %v7517_v26  ;;  %v7577_v46 = vpack.c.bf16 %v2832_v4, %v2828_v12  ;;  %v7597_v2 = vpack.c.bf16 %v2846_v47, %v2842_v21  ;;  %v7601_v12 = vpack.c.bf16 %v2848_v5, %v2844_v23 }
 0x4e4   :  { %5711 = vmatprep.subr.bf16.mxu0 %v7522_v34  ;;  %5743 = vmatprep.subr.bf16.mxu1 %v7526_v19 }
 0x4e7   :  { %5713 = vmatpush1.bf16.msra.mxu0 %v7524_v9  ;;  %5745 = vmatpush1.bf16.msra.mxu1 %v7529_v3 }
 0x4e8   :  { %5715 = vmatprep.subr.bf16.mxu0 %v7534_v11  ;;  %5747 = vmatprep.subr.bf16.mxu1 %v7538_v45 }
 0x4eb   :  { %5717 = vmatpush1.bf16.msra.mxu0 %v7536_v13  ;;  %5749 = vmatpush1.bf16.msra.mxu1 %v7541_v30 }
 0x4ec   :  { %5719 = vmatprep.subr.bf16.mxu0 %v7546_v41  ;;  %5751 = vmatprep.subr.bf16.mxu1 %v7550_v25 }
 0x4ef   :  { %5721 = vmatpush1.bf16.msra.mxu0 %v7548_v62  ;;  %5753 = vmatpush1.bf16.msra.mxu1 %v7553_v31 }
 0x4f0   :  { %5723 = vmatprep.subr.bf16.mxu0 %v7558_v37  ;;  %5755 = vmatprep.subr.bf16.mxu1 %v7562_v8 }
 0x4f3   :  { %5725 = vmatpush1.bf16.msra.mxu0 %v7560_v10  ;;  %5757 = vmatpush1.bf16.msra.mxu1 %v7565_v6 }
 0x4f4   :  { %5727 = vmatprep.subr.bf16.mxu0 %v7569_v52  ;;  %5759 = vmatprep.subr.bf16.mxu1 %v7574_v16 }
 0x4f7   :  { %5729 = vmatpush1.bf16.msra.mxu0 %v7572_v42  ;;  %5761 = vmatpush1.bf16.msra.mxu1 %v7577_v46 }
 0x4f8   :  { %5731 = vmatprep.subr.bf16.mxu0 %v7580_v14  ;;  %5763 = vmatprep.subr.bf16.mxu1 %v7585_v43 }
 0x4fb   :  { %5733 = vmatpush1.bf16.msra.mxu0 %v7583_v61  ;;  %5765 = vmatpush1.bf16.msra.mxu1 %v7589_v58 }
 0x4fc   :  { %5735 = vmatprep.subr.bf16.mxu0 %v7591_v35  ;;  %5767 = vmatprep.subr.bf16.mxu1 %v7594_v40 }
 0x4ff   :  { %5737 = vmatpush1.bf16.msra.mxu0 %v7597_v2  ;;  %5769 = vmatpush1.bf16.msra.mxu1 %v7601_v12 }
 0x500   :  { %5771 = vmatprep.subr.bf16.mxu0 %v7442_v29  ;;  %5775 = vmatprep.subr.bf16.mxu1 %v7445_v63 }
 0x594   :  { %v2443_v4 = vpop.f32.mrb[22].mxu0  ;;  %v2514_v38 = vpop.f32.mrb[22].mxu1 }
 0x595   :  { %v6222_v59 = vadd.f32 %v2443_v4, %v7106_v18  ;;  %v2445_v55 = vpop.f32.mrb[23].mxu0  ;;  %v2516_v33 = vpop.f32.mrb[23].mxu1  ;;  %v6224_v24 = vadd.f32 %v2514_v38, %v7124_v20 }
 0x596   :  { %v6223_v17 = vadd.f32 %v2445_v55, %v7111_v22  ;;  %v6225_v32 = vadd.f32 %v2516_v33, %v7118_v53 }
 0x597   :  { %v5125_v57 = vmul.f32 -1.442695, %v6222_v59 }
 0x598   :  { %v5126_v49 = vmul.f32 -1.442695, %v6223_v17  ;;  %v5127_v1 = vmul.f32 -1.442695, %v6225_v32 }
 0x599   :  { %6419 = vpow2.f32 %v5125_v57 }
 0x59a   :  { %6421 = vpow2.f32 %v5126_v49 }
 0x59b   :  { %6423 = vpow2.f32 %v5127_v1 }
 0x59c   :  { %6425 = vtanh.f32 %v6224_v24 }
 0x5a3   :  { %v6420_v29 = vpop.eup %6419 }
 0x5a4   :  { %v6422_v21 = vpop.eup %6421  ;;  %v2526_v63 = vadd.f32 1.0, %v6420_v29 }
 0x5a5   :  { %v2532_v47 = vadd.f32 1.0, %v6422_v21  ;;  %v6424_v56 = vpop.eup %6423 }
 0x5a6   :  { %6427 = vrcp.f32 %v2526_v63  ;;  %v6426_v54 = vpop.eup %6425  ;;  %v2539_v59 = vadd.f32 1.0, %v6424_v56 }
 0x5a7   :  { %6429 = vrcp.f32 %v2532_v47 }
 0x5a8   :  { %6431 = vrcp.f32 %v2539_v59 }
 0x5b0   :  { %v6428_v23 = vpop.eup %6427 }
 0x5b1   :  { %v6430_v5 = vpop.eup %6429  ;;  %v2543_v4 = vmul.f32 %v6428_v23, %v6426_v54 }
 0x5b2   :  { %v2542_v55 = vmul.f32 %v6430_v5, %v7453_v44  ;;  %v6432_v44 = vpop.eup %6431 }
 0x5b4   :  { %v7613_v33 = vadd.f32 %v2543_v4, %v2542_v55  ;;  %v2682_v17 = vpop.f32.mrb[8].mxu0  ;;  %v2753_v38 = vpop.f32.mrb[8].mxu1 }
 0x5b5   :  { %v6192_v57 = vadd.f32 %v2682_v17, %v6838_v27  ;;  %v2684_v49 = vpop.f32.mrb[9].mxu0  ;;  %v2755_v32 = vpop.f32.mrb[9].mxu1  ;;  %v6206_v56 = vadd.f32 %v2753_v38, %v8184_v39  ;;  %v3179_v38 = vld [vmem:[#allocation6 + $0x8] sm:$0xff]  ;;  %v3201_v39 = vld [vmem:[#allocation6 + $0xb8] sm:$0xff] }
 0x5b6   :  { %v6193_v1 = vadd.f32 %v2684_v49, %v6842_v28  ;;  %6433 = vtanh.f32 %v7613_v33  ;;  %v6207_v21 = vadd.f32 %v2755_v32, %v6849_v36 }
 0x5b7   :  { %v5128_v24 = vmul.f32 -1.442695, %v6192_v57 }
 0x5b8   :  { %v5129_v29 = vmul.f32 -1.442695, %v6193_v1  ;;  %v5130_v47 = vmul.f32 -1.442695, %v6207_v21 }
 0x5b9   :  { %6435 = vpow2.f32 %v5128_v24 }
 0x5ba   :  { %6437 = vpow2.f32 %v5129_v29 }
 0x5bb   :  { %6439 = vpow2.f32 %v5130_v47  ;;  %v3185_v47 = vld [vmem:[#allocation6 + $0x38] sm:$0xff] }
 0x5bc   :  { %6441 = vtanh.f32 %v6206_v56 }
 0x5c0   :  { %v6434_v63 = vpop.eup %6433 }
 0x5c1   :  { %v2546_v54 = vmul.f32 %v6434_v63, %v6432_v44  ;;  %v3183_v44 = vld [vmem:[#allocation6 + $0x28] sm:$0xff]  ;;  %v3181_v63 = vld [vmem:[#allocation6 + $0x18] sm:$0xff] }
 0x5c3   :  { %v6436_v23 = vpop.eup %6435  ;;  %2547 = vst [vmem:[#allocation9 + $0x18] sm:$0xff] %v2546_v54 }
 0x5c4   :  { %v6438_v5 = vpop.eup %6437  ;;  %v2765_v4 = vadd.f32 1.0, %v6436_v23 }
 0x5c5   :  { %v2771_v59 = vadd.f32 1.0, %v6438_v5  ;;  %v6440_v55 = vpop.eup %6439  ;;  %v7626_v5 = vpack.c.bf16 %v3183_v44, %v3179_v38  ;;  %v3190_v38 = vld [vmem:[#allocation6 + $0x60] sm:$0xff] }
 0x5c6   :  { %6443 = vrcp.f32 %v2765_v4  ;;  %v6442_v17 = vpop.eup %6441  ;;  %v2778_v1 = vadd.f32 1.0, %v6440_v55  ;;  %v7628_v4 = vpack.c.bf16 %v3185_v47, %v3181_v63  ;;  %v3180_v55 = vld [vmem:[#allocation6 + $0x10] sm:$0xff] }
 0x5c7   :  { %6445 = vrcp.f32 %v2771_v59  ;;  %8207 = vst [vmem:[#allocation28_spill] sm:$0xff] %v7626_v5  ;;  %v3182_v59 = vld [vmem:[#allocation6 + $0x20] sm:$0xff]  ;;  %v3188_v63 = vld [vmem:[#allocation6 + $0x50] sm:$0xff] }
 0x5c8   :  { %6447 = vrcp.f32 %v2778_v1  ;;  %8208 = vst [vmem:[#allocation25_spill] sm:$0xff] %v7628_v4  ;;  %v3193_v1 = vld [vmem:[#allocation6 + $0x78] sm:$0xff]  ;;  %v3192_v47 = vld [vmem:[#allocation6 + $0x70] sm:$0xff] }
 0x5d0   :  { %v6444_v57 = vpop.eup %6443 }
 0x5d1   :  { %v6446_v49 = vpop.eup %6445  ;;  %v2782_v32 = vmul.f32 %v6444_v57, %v6442_v17  ;;  %v3184_v17 = vld [vmem:[#allocation6 + $0x30] sm:$0xff]  ;;  %v3187_v57 = vld [vmem:[#allocation6 + $0x48] sm:$0xff] }
 0x5d2   :  { %v2781_v24 = vmul.f32 %v6446_v49, %v7461_v0  ;;  %v6448_v21 = vpop.eup %6447  ;;  %v3178_v0 = vld [vmem:[#allocation6] sm:$0xff]  ;;  %v3191_v49 = vld [vmem:[#allocation6 + $0x68] sm:$0xff] }
 0x5d4   :  { %v7621_v29 = vadd.f32 %v2782_v32, %v2781_v24  ;;  %v3189_v32 = vld [vmem:[#allocation6 + $0x58] sm:$0xff]  ;;  %v7638_v24 = vpack.c.bf16 %v3182_v59, %v3178_v0  ;;  %v7652_v59 = vpack.c.bf16 %v3192_v47, %v3188_v63  ;;  %v3204_v47 = vld [vmem:[#allocation6 + $0xd0] sm:$0xff] }
 0x5d5   :  { %v7644_v44 = vpack.c.bf16 %v3193_v1, %v3189_v32  ;;  %v3196_v32 = vld [vmem:[#allocation6 + $0x90] sm:$0xff]  ;;  %v3203_v1 = vld [vmem:[#allocation6 + $0xc8] sm:$0xff] }
 0x5d6   :  { %8206 = vst [vmem:[#allocation24_spill] sm:$0xff] %v7621_v29  ;;  %6449 = vtanh.f32 %v7621_v29  ;;  %8209 = vst [vmem:[#allocation29_spill] sm:$0xff] %v7638_v24  ;;  %v3199_v29 = vld [vmem:[#allocation6 + $0xa8] sm:$0xff] }
 0x5d7   :  { %8212 = vst [vmem:[#allocation27_spill] sm:$0xff] %v7644_v44  ;;  %8214 = vst [vmem:[#allocation30_spill] sm:$0xff] %v7652_v59 }
 0x5e0   :  { %v6450_v56 = vpop.eup %6449 }
 0x5e1   :  { %v7624_v23 = vmul.f32 %v6450_v56, %v6448_v21  ;;  %v7642_v21 = vpack.c.bf16 %v3191_v49, %v3187_v57  ;;  %v3195_v56 = vld [vmem:[#allocation6 + $0x88] sm:$0xff] }
 0x5e2   :  { %v7656_v57 = vpack.c.bf16 %v3199_v29, %v3195_v56  ;;  %v3208_v56 = vld [vmem:[#allocation6 + $0xf0] sm:$0xff] }
 0x5e3   :  { %2915 = vmatmul.mubr.f32.vlgmr.msra.gmra.mrb[24].mxu0 %v7624_v23  ;;  %2986 = vmatmul.mubr.f32.vlgmr.msra.gmra.mrb[24].mxu1 %v7624_v23  ;;  %8211 = vst [vmem:[#allocation32_spill] sm:$0xff] %v7642_v21 }
 0x5e4   :  { %5773 = vmatpush1.bf16.msra.mxu0 %v7464_v48  ;;  %5777 = vmatpush1.bf16.msra.mxu1 %v7466_v60  ;;  %v7640_v48 = vpack.c.bf16 %v3184_v17, %v3180_v55  ;;  %v3186_v60 = vld [vmem:[#allocation6 + $0x40] sm:$0xff]  ;;  %8215 = vst [vmem:[#allocation36_spill] sm:$0xff] %v7656_v57 }
 0x5e5   :  { %3067 = vmatprep.mubr.f32.mxu0 %v8130_v15  ;;  %3138 = vmatprep.mubr.f32.mxu1 %v8130_v15  ;;  %v7650_v0 = vpack.c.bf16 %v3190_v38, %v3186_v60  ;;  %v3194_v55 = vld [vmem:[#allocation6 + $0x80] sm:$0xff] }
 0x5e6   :  { %5779 = vmatprep.subr.bf16.mxu0 %v7626_v5  ;;  %5811 = vmatprep.subr.bf16.mxu1 %v7628_v4  ;;  %8210 = vst [vmem:[#allocation26_spill] sm:$0xff] %v7640_v48  ;;  %v3197_v5 = vld [vmem:[#allocation6 + $0x98] sm:$0xff]  ;;  %v3198_v17 = vld [vmem:[#allocation6 + $0xa0] sm:$0xff] }
 0x5e7   :  { %8213 = vst [vmem:[#allocation33_spill] sm:$0xff] %v7650_v0  ;;  %v7658_v49 = vpack.c.bf16 %v3201_v39, %v3197_v5  ;;  %v3205_v4 = vld [vmem:[#allocation6 + $0xd8] sm:$0xff]  ;;  %v7664_v60 = vpack.c.bf16 %v3198_v17, %v3194_v55  ;;  %v3202_v39 = vld [vmem:[#allocation6 + $0xc0] sm:$0xff]  ;;  %v7678_v17 = vpack.c.bf16 %v3208_v56, %v3204_v47 }
 0x5e8   :  { %v3206_v5 = vld [vmem:[#allocation6 + $0xe0] sm:$0xff] }
 0x5e9   :  { %8216 = vst [vmem:[#allocation31_spill] sm:$0xff] %v7658_v49  ;;  %8217 = vst [vmem:[#allocation37_spill] sm:$0xff] %v7664_v60  ;;  %v7676_v55 = vpack.c.bf16 %v3206_v5, %v3202_v39  ;;  %v3218_v47 = vld [vmem:[#allocation6 + $0x140] sm:$0xff] }
 0x5ea   :  { %8222 = vst [vmem:[#allocation38_spill] sm:$0xff] %v7678_v17  ;;  %v3222_v56 = vld [vmem:[#allocation6 + $0x160] sm:$0xff] }
 0x5eb   :  { %5131 = vmatmul.mubr.msk.f32.vlgmr.msra.gmra.mrb[24].mxu0 %vm98_vm0, %v2546_v54  ;;  %5132 = vmatmul.mubr.msk.f32.vlgmr.msra.gmra.mrb[24].mxu1 %vm98_vm0, %v2546_v54  ;;  %v3200_v54 = vld [vmem:[#allocation6 + $0xb0] sm:$0xff]  ;;  %8221 = vst [vmem:[#allocation41_spill] sm:$0xff] %v7676_v55 }
 0x5ec   :  { %5781 = vmatpush1.bf16.msra.mxu0 %v7638_v24  ;;  %5813 = vmatpush1.bf16.msra.mxu1 %v7640_v48  ;;  %v3207_v24 = vld [vmem:[#allocation6 + $0xe8] sm:$0xff]  ;;  %v3209_v48 = vld [vmem:[#allocation6 + $0xf8] sm:$0xff]  ;;  %v7666_v29 = vpack.c.bf16 %v3200_v54, %v3196_v32  ;;  %v3210_v32 = vld [vmem:[#allocation6 + $0x100] sm:$0xff] }
 0x5ed   :  { %5783 = vmatprep.subr.bf16.mxu0 %v7642_v21  ;;  %5815 = vmatprep.subr.bf16.mxu1 %v7644_v44  ;;  %v7670_v38 = vpack.c.bf16 %v3207_v24, %v3203_v1  ;;  %v7672_v63 = vpack.c.bf16 %v3209_v48, %v3205_v4  ;;  %v3211_v44 = vld [vmem:[#allocation6 + $0x108] sm:$0xff]  ;;  %v3213_v21 = vld [vmem:[#allocation6 + $0x118] sm:$0xff]  ;;  %v3214_v54 = vld [vmem:[#allocation6 + $0x120] sm:$0xff] }
 0x5ee   :  { %3306 = vmatprep.mubr.f32.mxu0 %v8130_v15  ;;  %3377 = vmatprep.mubr.f32.mxu1 %v8130_v15  ;;  %8218 = vst [vmem:[#allocation34_spill] sm:$0xff] %v7666_v29  ;;  %v3212_v48 = vld [vmem:[#allocation6 + $0x110] sm:$0xff]  ;;  %v7688_v39 = vpack.c.bf16 %v3214_v54, %v3210_v32  ;;  %v7700_v32 = vpack.c.bf16 %v3222_v56, %v3218_v47 }
 0x5ef   :  { %8219 = vst [vmem:[#allocation40_spill] sm:$0xff] %v7670_v38  ;;  %8220 = vst [vmem:[#allocation35_spill] sm:$0xff] %v7672_v63  ;;  %v3216_v1 = vld [vmem:[#allocation6 + $0x130] sm:$0xff] }
 0x5f0   :  { %5785 = vmatpush1.bf16.msra.mxu0 %v7650_v0  ;;  %5817 = vmatpush1.bf16.msra.mxu1 %v7652_v59  ;;  %v3215_v0 = vld [vmem:[#allocation6 + $0x128] sm:$0xff]  ;;  %v3217_v59 = vld [vmem:[#allocation6 + $0x138] sm:$0xff]  ;;  %8225 = vst [vmem:[#allocation43_spill] sm:$0xff] %v7688_v39  ;;  %v7690_v5 = vpack.c.bf16 %v3216_v1, %v3212_v48  ;;  %v3226_v48 = vld [vmem:[#allocation6 + $0x180] sm:$0xff] }
 0x5f1   :  { %5787 = vmatprep.subr.bf16.mxu0 %v7656_v57  ;;  %5819 = vmatprep.subr.bf16.mxu1 %v7658_v49  ;;  %v7682_v4 = vpack.c.bf16 %v3215_v0, %v3211_v44  ;;  %v7684_v24 = vpack.c.bf16 %v3217_v59, %v3213_v21  ;;  %v3219_v49 = vld [vmem:[#allocation6 + $0x148] sm:$0xff]  ;;  %v3221_v57 = vld [vmem:[#allocation6 + $0x158] sm:$0xff]  ;;  %v3220_v0 = vld [vmem:[#allocation6 + $0x150] sm:$0xff] }
 0x5f2   :  { %8226 = vst [vmem:[#allocation44_spill] sm:$0xff] %v7690_v5  ;;  %v3224_v59 = vld [vmem:[#allocation6 + $0x170] sm:$0xff]  ;;  %v3230_v1 = vld [vmem:[#allocation6 + $0x1a0] sm:$0xff] }
 0x5f3   :  { %8223 = vst [vmem:[#allocation39_spill] sm:$0xff] %v7682_v4  ;;  %8224 = vst [vmem:[#allocation42_spill] sm:$0xff] %v7684_v24  ;;  %v7702_v54 = vpack.c.bf16 %v3224_v59, %v3220_v0  ;;  %v7712_v47 = vpack.c.bf16 %v3230_v1, %v3226_v48  ;;  %v3234_v0 = vld [vmem:[#allocation6 + $0x1c0] sm:$0xff]  ;;  %v3240_v59 = vld [vmem:[#allocation6 + $0x1f0] sm:$0xff] }
 0x5f4   :  { %5789 = vmatpush1.bf16.msra.mxu0 %v7664_v60  ;;  %5821 = vmatpush1.bf16.msra.mxu1 %v7666_v29  ;;  %v3223_v60 = vld [vmem:[#allocation6 + $0x168] sm:$0xff]  ;;  %v3225_v29 = vld [vmem:[#allocation6 + $0x178] sm:$0xff] }
 0x5f5   :  { %5791 = vmatprep.subr.bf16.mxu0 %v7670_v38  ;;  %5823 = vmatprep.subr.bf16.mxu1 %v7672_v63  ;;  %v7694_v21 = vpack.c.bf16 %v3223_v60, %v3219_v49  ;;  %v7696_v44 = vpack.c.bf16 %v3225_v29, %v3221_v57  ;;  %v3227_v63 = vld [vmem:[#allocation6 + $0x188] sm:$0xff]  ;;  %v3229_v38 = vld [vmem:[#allocation6 + $0x198] sm:$0xff]  ;;  %v3228_v60 = vld [vmem:[#allocation6 + $0x190] sm:$0xff] }
 0x5f6   :  { %v3232_v29 = vld [vmem:[#allocation6 + $0x1b0] sm:$0xff] }
 0x5f7   :  { %v7714_v56 = vpack.c.bf16 %v3232_v29, %v3228_v60 }
 0x5f8   :  { %5793 = vmatpush1.bf16.msra.mxu0 %v7676_v55  ;;  %5825 = vmatpush1.bf16.msra.mxu1 %v7678_v17  ;;  %v3231_v55 = vld [vmem:[#allocation6 + $0x1a8] sm:$0xff]  ;;  %v3233_v17 = vld [vmem:[#allocation6 + $0x1b8] sm:$0xff] }
 0x5f9   :  { %5795 = vmatprep.subr.bf16.mxu0 %v7682_v4  ;;  %5827 = vmatprep.subr.bf16.mxu1 %v7684_v24  ;;  %v7706_v57 = vpack.c.bf16 %v3231_v55, %v3227_v63  ;;  %v7708_v49 = vpack.c.bf16 %v3233_v17, %v3229_v38  ;;  %v3235_v24 = vld [vmem:[#allocation6 + $0x1c8] sm:$0xff]  ;;  %v3237_v4 = vld [vmem:[#allocation6 + $0x1d8] sm:$0xff]  ;;  %v3238_v55 = vld [vmem:[#allocation6 + $0x1e0] sm:$0xff] }
 0x5fa   :  { %v3236_v17 = vld [vmem:[#allocation6 + $0x1d0] sm:$0xff]  ;;  %v7724_v48 = vpack.c.bf16 %v3238_v55, %v3234_v0  ;;  %v8227_v55 = vld [vmem:[#allocation23_spill] sm:$0xff] }
 0x5fb   :  { %v7726_v1 = vpack.c.bf16 %v3240_v59, %v3236_v17 }
 0x5fc   :  { %5797 = vmatpush1.bf16.msra.mxu0 %v7688_v39  ;;  %5829 = vmatpush1.bf16.msra.mxu1 %v7690_v5  ;;  %v3239_v39 = vld [vmem:[#allocation6 + $0x1e8] sm:$0xff]  ;;  %v3241_v5 = vld [vmem:[#allocation6 + $0x1f8] sm:$0xff] }
 0x5fd   :  { %5799 = vmatprep.subr.bf16.mxu0 %v7694_v21  ;;  %5831 = vmatprep.subr.bf16.mxu1 %v7696_v44  ;;  %v7718_v38 = vpack.c.bf16 %v3239_v39, %v3235_v24  ;;  %v7720_v63 = vpack.c.bf16 %v3241_v5, %v3237_v4 }
 0x600   :  { %5801 = vmatpush1.bf16.msra.mxu0 %v7700_v32  ;;  %5833 = vmatpush1.bf16.msra.mxu1 %v7702_v54 }
 0x601   :  { %5803 = vmatprep.subr.bf16.mxu0 %v7706_v57  ;;  %5835 = vmatprep.subr.bf16.mxu1 %v7708_v49 }
 0x604   :  { %5805 = vmatpush1.bf16.msra.mxu0 %v7712_v47  ;;  %5837 = vmatpush1.bf16.msra.mxu1 %v7714_v56 }
 0x605   :  { %5807 = vmatprep.subr.bf16.mxu0 %v7718_v38  ;;  %5839 = vmatprep.subr.bf16.mxu1 %v7720_v63 }
 0x608   :  { %5809 = vmatpush1.bf16.msra.mxu0 %v7724_v48  ;;  %5841 = vmatpush1.bf16.msra.mxu1 %v7726_v1 }
 0x609   :  { %5843 = vmatprep.subr.bf16.mxu0 %v7510_v51  ;;  %5875 = vmatprep.subr.bf16.mxu1 %v7514_v7  ;;  %v3619_v51 = vld [vmem:[#allocation4 + $0x8] sm:$0xff] }
 0x60b   :  { %3307 = vmatmul.mubr.f32.vlgmr.msra.gmra.mrb[10].mxu0 %v7624_v23  ;;  %3378 = vmatmul.mubr.f32.vlgmr.msra.gmra.mrb[10].mxu1 %v7624_v23 }
 0x60c   :  { %5845 = vmatpush1.bf16.msra.mxu0 %v7512_v50  ;;  %5877 = vmatpush1.bf16.msra.mxu1 %v7517_v26  ;;  %v3623_v50 = vld [vmem:[#allocation4 + $0x28] sm:$0xff]  ;;  %v3621_v26 = vld [vmem:[#allocation4 + $0x18] sm:$0xff] }
 0x60d   :  { %5847 = vmatprep.subr.bf16.mxu0 %v7522_v34  ;;  %5879 = vmatprep.subr.bf16.mxu1 %v7526_v19  ;;  %v7768_v7 = vpack.c.bf16 %v3623_v50, %v3619_v51  ;;  %v3625_v34 = vld [vmem:[#allocation4 + $0x38] sm:$0xff] }
 0x60e   :  { %3540 = vmatprep.mubr.f32.mxu0 %v8130_v15  ;;  %3611 = vmatprep.mubr.f32.mxu1 %v8130_v15 }
 0x610   :  { %5849 = vmatpush1.bf16.msra.mxu0 %v7524_v9  ;;  %5881 = vmatpush1.bf16.msra.mxu1 %v7529_v3  ;;  %v7771_v9 = vpack.c.bf16 %v3625_v34, %v3621_v26 }
 0x611   :  { %5851 = vmatprep.subr.bf16.mxu0 %v7534_v11  ;;  %5883 = vmatprep.subr.bf16.mxu1 %v7538_v45 }
 0x614   :  { %5853 = vmatpush1.bf16.msra.mxu0 %v7536_v13  ;;  %5885 = vmatpush1.bf16.msra.mxu1 %v7541_v30 }
 0x615   :  { %5855 = vmatprep.subr.bf16.mxu0 %v7546_v41  ;;  %5887 = vmatprep.subr.bf16.mxu1 %v7550_v25 }
 0x618   :  { %5857 = vmatpush1.bf16.msra.mxu0 %v7548_v62  ;;  %5889 = vmatpush1.bf16.msra.mxu1 %v7553_v31 }
 0x619   :  { %5859 = vmatprep.subr.bf16.mxu0 %v7558_v37  ;;  %5891 = vmatprep.subr.bf16.mxu1 %v7562_v8 }
 0x61c   :  { %5861 = vmatpush1.bf16.msra.mxu0 %v7560_v10  ;;  %5893 = vmatpush1.bf16.msra.mxu1 %v7565_v6 }
 0x61d   :  { %5863 = vmatprep.subr.bf16.mxu0 %v7569_v52  ;;  %5895 = vmatprep.subr.bf16.mxu1 %v7574_v16 }
 0x620   :  { %5865 = vmatpush1.bf16.msra.mxu0 %v7572_v42  ;;  %5897 = vmatpush1.bf16.msra.mxu1 %v7577_v46 }
 0x621   :  { %5867 = vmatprep.subr.bf16.mxu0 %v7580_v14  ;;  %5899 = vmatprep.subr.bf16.mxu1 %v7585_v43 }
 0x624   :  { %5869 = vmatpush1.bf16.msra.mxu0 %v7583_v61  ;;  %5901 = vmatpush1.bf16.msra.mxu1 %v7589_v58 }
 0x625   :  { %5871 = vmatprep.subr.bf16.mxu0 %v7591_v35  ;;  %5903 = vmatprep.subr.bf16.mxu1 %v7594_v40 }
 0x628   :  { %5873 = vmatpush1.bf16.msra.mxu0 %v7597_v2  ;;  %5905 = vmatpush1.bf16.msra.mxu1 %v7601_v12 }
 0x629   :  { %5907 = vmatprep.subr.bf16.mxu0 %v7768_v7  ;;  %5911 = vmatprep.subr.bf16.mxu1 %v7771_v9 }
 0x6be   :  { %v3069_v19 = vpop.f32.mrb[24].mxu0  ;;  %v3140_v3 = vpop.f32.mrb[24].mxu1 }
 0x6bf   :  { %v6226_v11 = vadd.f32 %v3069_v19, %v7106_v18  ;;  %v3071_v13 = vpop.f32.mrb[25].mxu0  ;;  %v3142_v45 = vpop.f32.mrb[25].mxu1  ;;  %v6228_v37 = vadd.f32 %v3140_v3, %v7124_v20 }
 0x6c0   :  { %v6227_v30 = vadd.f32 %v3071_v13, %v7111_v22  ;;  %v6229_v25 = vadd.f32 %v3142_v45, %v7118_v53 }
 0x6c1   :  { %v5133_v41 = vmul.f32 -1.442695, %v6226_v11 }
 0x6c2   :  { %v5134_v62 = vmul.f32 -1.442695, %v6227_v30  ;;  %v5135_v31 = vmul.f32 -1.442695, %v6229_v25 }
 0x6c3   :  { %6451 = vpow2.f32 %v5133_v41  ;;  %v8228_v41 = vld [vmem:[#allocation24_spill] sm:$0xff] }
 0x6c4   :  { %6453 = vpow2.f32 %v5134_v62 }
 0x6c5   :  { %6455 = vpow2.f32 %v5135_v31  ;;  %v3618_v31 = vld [vmem:[#allocation4] sm:$0xff] }
 0x6c6   :  { %6457 = vtanh.f32 %v6228_v37  ;;  %v3622_v37 = vld [vmem:[#allocation4 + $0x20] sm:$0xff] }
 0x6cd   :  { %v6452_v10 = vpop.eup %6451 }
 0x6ce   :  { %v6454_v8 = vpop.eup %6453  ;;  %v3152_v6 = vadd.f32 1.0, %v6452_v10  ;;  %v3620_v10 = vld [vmem:[#allocation4 + $0x10] sm:$0xff] }
 0x6cf   :  { %v3158_v52 = vadd.f32 1.0, %v6454_v8  ;;  %v6456_v42 = vpop.eup %6455  ;;  %v3624_v8 = vld [vmem:[#allocation4 + $0x30] sm:$0xff] }
 0x6d0   :  { %6459 = vrcp.f32 %v3152_v6  ;;  %v6458_v16 = vpop.eup %6457  ;;  %v3165_v43 = vadd.f32 1.0, %v6456_v42  ;;  %v7790_v42 = vpack.c.bf16 %v3622_v37, %v3618_v31  ;;  %v4052_v31 = vld [vmem:[#allocation3 + $0x70] sm:$0xff] }
 0x6d1   :  { %6461 = vrcp.f32 %v3158_v52 }
 0x6d2   :  { %6463 = vrcp.f32 %v3165_v43  ;;  %v8231_v43 = vld [vmem:[#allocation29_spill] sm:$0xff] }
 0x6da   :  { %v6460_v46 = vpop.eup %6459 }
 0x6db   :  { %v6462_v14 = vpop.eup %6461  ;;  %v3169_v61 = vmul.f32 %v6460_v46, %v6458_v16  ;;  %v7792_v16 = vpack.c.bf16 %v3624_v8, %v3620_v10  ;;  %v4055_v10 = vld [vmem:[#allocation3 + $0x88] sm:$0xff] }
 0x6dc   :  { %v3168_v58 = vmul.f32 %v6462_v14, %v7613_v33  ;;  %v6464_v33 = vpop.eup %6463  ;;  %v8229_v14 = vld [vmem:[#allocation28_spill] sm:$0xff]  ;;  %v4059_v8 = vld [vmem:[#allocation3 + $0xa8] sm:$0xff] }
 0x6de   :  { %v7779_v35 = vadd.f32 %v3169_v61, %v3168_v58  ;;  %v3308_v40 = vpop.f32.mrb[10].mxu0  ;;  %v3379_v2 = vpop.f32.mrb[10].mxu1  ;;  %v8230_v61 = vld [vmem:[#allocation25_spill] sm:$0xff]  ;;  %v8232_v58 = vld [vmem:[#allocation26_spill] sm:$0xff] }
 0x6df   :  { %v6194_v12 = vadd.f32 %v3308_v40, %v6838_v27  ;;  %v3310_v23 = vpop.f32.mrb[11].mxu0  ;;  %v3381_v4 = vpop.f32.mrb[11].mxu1  ;;  %v6208_v17 = vadd.f32 %v3379_v2, %v8227_v55  ;;  %v8233_v40 = vld [vmem:[#allocation32_spill] sm:$0xff]  ;;  %v8234_v2 = vld [vmem:[#allocation27_spill] sm:$0xff] }
 0x6e0   :  { %v6195_v24 = vadd.f32 %v3310_v23, %v6842_v28  ;;  %6465 = vtanh.f32 %v7779_v35  ;;  %v6209_v60 = vadd.f32 %v3381_v4, %v6849_v36  ;;  %v8236_v23 = vld [vmem:[#allocation30_spill] sm:$0xff]  ;;  %v8237_v4 = vld [vmem:[#allocation36_spill] sm:$0xff] }
 0x6e1   :  { %v5136_v39 = vmul.f32 -1.442695, %v6194_v12  ;;  %v8235_v12 = vld [vmem:[#allocation33_spill] sm:$0xff] }
 0x6e2   :  { %v5137_v5 = vmul.f32 -1.442695, %v6195_v24  ;;  %v5138_v0 = vmul.f32 -1.442695, %v6209_v60  ;;  %v8238_v24 = vld [vmem:[#allocation31_spill] sm:$0xff]  ;;  %v8241_v60 = vld [vmem:[#allocation40_spill] sm:$0xff] }
 0x6e3   :  { %6467 = vpow2.f32 %v5136_v39  ;;  %v8239_v39 = vld [vmem:[#allocation37_spill] sm:$0xff] }
 0x6e4   :  { %6469 = vpow2.f32 %v5137_v5  ;;  %v8240_v5 = vld [vmem:[#allocation34_spill] sm:$0xff] }
 0x6e5   :  { %6471 = vpow2.f32 %v5138_v0  ;;  %v8244_v0 = vld [vmem:[#allocation38_spill] sm:$0xff] }
 0x6e6   :  { %6473 = vtanh.f32 %v6208_v17  ;;  %v8245_v17 = vld [vmem:[#allocation39_spill] sm:$0xff] }
 0x6ea   :  { %v6466_v29 = vpop.eup %6465 }
 0x6eb   :  { %v3172_v59 = vmul.f32 %v6466_v29, %v6464_v33  ;;  %v8242_v33 = vld [vmem:[#allocation35_spill] sm:$0xff]  ;;  %v8243_v29 = vld [vmem:[#allocation41_spill] sm:$0xff] }
 0x6ed   :  { %v6468_v51 = vpop.eup %6467  ;;  %3173 = vst [vmem:[#allocation9 + $0x20] sm:$0xff] %v3172_v59 }
 0x6ee   :  { %v6470_v50 = vpop.eup %6469  ;;  %v3391_v26 = vadd.f32 1.0, %v6468_v51  ;;  %v8247_v51 = vld [vmem:[#allocation43_spill] sm:$0xff] }
 0x6ef   :  { %v3397_v34 = vadd.f32 1.0, %v6470_v50  ;;  %v6472_v19 = vpop.eup %6471  ;;  %v8248_v50 = vld [vmem:[#allocation44_spill] sm:$0xff] }
 0x6f0   :  { %6475 = vrcp.f32 %v3391_v26  ;;  %v6474_v3 = vpop.eup %6473  ;;  %v3404_v30 = vadd.f32 1.0, %v6472_v19  ;;  %v4047_v26 = vld [vmem:[#allocation3 + $0x48] sm:$0xff]  ;;  %v4049_v19 = vld [vmem:[#allocation3 + $0x58] sm:$0xff] }
 0x6f1   :  { %6477 = vrcp.f32 %v3397_v34  ;;  %v4051_v34 = vld [vmem:[#allocation3 + $0x68] sm:$0xff] }
 0x6f2   :  { %6479 = vrcp.f32 %v3404_v30 }
 0x6fa   :  { %v6476_v11 = vpop.eup %6475 }
 0x6fb   :  { %v6478_v13 = vpop.eup %6477  ;;  %v3408_v45 = vmul.f32 %v6476_v11, %v6474_v3  ;;  %v7848_v3 = vpack.c.bf16 %v4051_v34, %v4047_v26  ;;  %v4046_v11 = vld [vmem:[#allocation3 + $0x40] sm:$0xff]  ;;  %v4072_v26 = vld [vmem:[#allocation3 + $0x110] sm:$0xff] }
 0x6fc   :  { %v3407_v62 = vmul.f32 %v6478_v13, %v8228_v41  ;;  %v6480_v6 = vpop.eup %6479  ;;  %v4050_v13 = vld [vmem:[#allocation3 + $0x60] sm:$0xff]  ;;  %v4076_v34 = vld [vmem:[#allocation3 + $0x130] sm:$0xff] }
 0x6fd   :  { %v7850_v30 = vpack.c.bf16 %v4050_v13, %v4046_v11  ;;  %v4079_v11 = vld [vmem:[#allocation3 + $0x148] sm:$0xff] }
 0x6fe   :  { %v7787_v25 = vadd.f32 %v3408_v45, %v3407_v62  ;;  %v4053_v45 = vld [vmem:[#allocation3 + $0x78] sm:$0xff]  ;;  %v4048_v62 = vld [vmem:[#allocation3 + $0x50] sm:$0xff]  ;;  %v4083_v13 = vld [vmem:[#allocation3 + $0x168] sm:$0xff] }
 0x6ff   :  { %v7852_v41 = vpack.c.bf16 %v4053_v45, %v4049_v19  ;;  %v7855_v37 = vpack.c.bf16 %v4052_v31, %v4048_v62  ;;  %v7891_v19 = vpack.c.bf16 %v4076_v34, %v4072_v26  ;;  %v4078_v45 = vld [vmem:[#allocation3 + $0x140] sm:$0xff]  ;;  %v7895_v62 = vpack.c.bf16 %v4083_v13, %v4079_v11  ;;  %v4097_v11 = vld [vmem:[#allocation3 + $0x1d8] sm:$0xff] }
 0x700   :  { %6481 = vtanh.f32 %v7787_v25  ;;  %v4082_v31 = vld [vmem:[#allocation3 + $0x160] sm:$0xff]  ;;  %v4101_v13 = vld [vmem:[#allocation3 + $0x1f8] sm:$0xff] }
 0x701   :  { %v4094_v26 = vld [vmem:[#allocation3 + $0x1c0] sm:$0xff] }
 0x702   :  { %v4098_v34 = vld [vmem:[#allocation3 + $0x1e0] sm:$0xff] }
 0x70a   :  { %v6482_v52 = vpop.eup %6481 }
 0x70b   :  { %v3411_v46 = vmul.f32 %v6482_v52, %v6480_v6  ;;  %v4057_v6 = vld [vmem:[#allocation3 + $0x98] sm:$0xff]  ;;  %v7860_v52 = vpack.c.bf16 %v4059_v8, %v4055_v10 }
 0x70c   :  { %v4081_v10 = vld [vmem:[#allocation3 + $0x158] sm:$0xff] }
 0x70d   :  { %3541 = vmatmul.mubr.f32.vlgmr.msra.gmra.mrb[26].mxu0 %v3411_v46  ;;  %3612 = vmatmul.mubr.f32.vlgmr.msra.gmra.mrb[26].mxu1 %v3411_v46  ;;  %v4085_v8 = vld [vmem:[#allocation3 + $0x178] sm:$0xff] }
 0x70e   :  { %5909 = vmatpush1.bf16.msra.mxu0 %v7790_v42  ;;  %5913 = vmatpush1.bf16.msra.mxu1 %v7792_v16 }
 0x70f   :  { %3693 = vmatprep.mubr.f32.mxu0 %v8130_v15  ;;  %3764 = vmatprep.mubr.f32.mxu1 %v8130_v15 }
 0x710   :  { %5915 = vmatprep.subr.bf16.mxu0 %v8229_v14  ;;  %5947 = vmatprep.subr.bf16.mxu1 %v8230_v61  ;;  %v4058_v14 = vld [vmem:[#allocation3 + $0xa0] sm:$0xff]  ;;  %v4061_v61 = vld [vmem:[#allocation3 + $0xb8] sm:$0xff] }
 0x715   :  { %5139 = vmatmul.mubr.msk.f32.vlgmr.msra.gmra.mrb[26].mxu0 %vm98_vm0, %v3172_v59  ;;  %5140 = vmatmul.mubr.msk.f32.vlgmr.msra.gmra.mrb[26].mxu1 %vm98_vm0, %v3172_v59  ;;  %v8246_v59 = vld [vmem:[#allocation42_spill] sm:$0xff] }
 0x716   :  { %5917 = vmatpush1.bf16.msra.mxu0 %v8231_v43  ;;  %5949 = vmatpush1.bf16.msra.mxu1 %v8232_v58  ;;  %v7864_v58 = vpack.c.bf16 %v4061_v61, %v4057_v6  ;;  %v7898_v6 = vpack.c.bf16 %v4082_v31, %v4078_v45  ;;  %v4084_v61 = vld [vmem:[#allocation3 + $0x170] sm:$0xff] }
 0x717   :  { %5919 = vmatprep.subr.bf16.mxu0 %v8233_v40  ;;  %5951 = vmatprep.subr.bf16.mxu1 %v8234_v2  ;;  %v4056_v40 = vld [vmem:[#allocation3 + $0x90] sm:$0xff] }
 0x718   :  { %3932 = vmatprep.mubr.f32.mxu0 %v8130_v15  ;;  %4003 = vmatprep.mubr.f32.mxu1 %v8130_v15  ;;  %v4060_v2 = vld [vmem:[#allocation3 + $0xb0] sm:$0xff] }
 0x719   :  { %v4096_v45 = vld [vmem:[#allocation3 + $0x1d0] sm:$0xff] }
 0x71a   :  { %5921 = vmatpush1.bf16.msra.mxu0 %v8235_v12  ;;  %5953 = vmatpush1.bf16.msra.mxu1 %v8236_v23  ;;  %v7867_v12 = vpack.c.bf16 %v4060_v2, %v4056_v40  ;;  %v4063_v23 = vld [vmem:[#allocation3 + $0xc8] sm:$0xff]  ;;  %v4100_v31 = vld [vmem:[#allocation3 + $0x1f0] sm:$0xff] }
 0x71b   :  { %5923 = vmatprep.subr.bf16.mxu0 %v8237_v4  ;;  %5955 = vmatprep.subr.bf16.mxu1 %v8238_v24  ;;  %v4067_v4 = vld [vmem:[#allocation3 + $0xe8] sm:$0xff]  ;;  %v4065_v24 = vld [vmem:[#allocation3 + $0xd8] sm:$0xff] }
 0x71c   :  { %v4087_v40 = vld [vmem:[#allocation3 + $0x188] sm:$0xff] }
 0x71e   :  { %5925 = vmatpush1.bf16.msra.mxu0 %v8239_v39  ;;  %5957 = vmatpush1.bf16.msra.mxu1 %v8240_v5  ;;  %v7872_v39 = vpack.c.bf16 %v4067_v4, %v4063_v23  ;;  %v4062_v5 = vld [vmem:[#allocation3 + $0xc0] sm:$0xff]  ;;  %v4091_v23 = vld [vmem:[#allocation3 + $0x1a8] sm:$0xff] }
 0x71f   :  { %5927 = vmatprep.subr.bf16.mxu0 %v8241_v60  ;;  %5959 = vmatprep.subr.bf16.mxu1 %v8242_v33  ;;  %v4066_v60 = vld [vmem:[#allocation3 + $0xe0] sm:$0xff]  ;;  %v4069_v33 = vld [vmem:[#allocation3 + $0xf8] sm:$0xff] }
 0x720   :  { %v4086_v4 = vld [vmem:[#allocation3 + $0x180] sm:$0xff] }
 0x722   :  { %5929 = vmatpush1.bf16.msra.mxu0 %v8243_v29  ;;  %5961 = vmatpush1.bf16.msra.mxu1 %v8244_v0  ;;  %v7874_v29 = vpack.c.bf16 %v4066_v60, %v4062_v5  ;;  %v7876_v0 = vpack.c.bf16 %v4069_v33, %v4065_v24  ;;  %v4090_v24 = vld [vmem:[#allocation3 + $0x1a0] sm:$0xff]  ;;  %v7906_v5 = vpack.c.bf16 %v4091_v23, %v4087_v40  ;;  %v4089_v60 = vld [vmem:[#allocation3 + $0x198] sm:$0xff] }
 0x723   :  { %5931 = vmatprep.subr.bf16.mxu0 %v8245_v17  ;;  %5963 = vmatprep.subr.bf16.mxu1 %v8246_v59  ;;  %v4064_v17 = vld [vmem:[#allocation3 + $0xd0] sm:$0xff]  ;;  %v4093_v33 = vld [vmem:[#allocation3 + $0x1b8] sm:$0xff] }
 0x724   :  { %v4068_v59 = vld [vmem:[#allocation3 + $0xf0] sm:$0xff] }
 0x726   :  { %5933 = vmatpush1.bf16.msra.mxu0 %v8247_v51  ;;  %5965 = vmatpush1.bf16.msra.mxu1 %v8248_v50  ;;  %v7879_v51 = vpack.c.bf16 %v4068_v59, %v4064_v17  ;;  %v4071_v50 = vld [vmem:[#allocation3 + $0x108] sm:$0xff]  ;;  %v4088_v17 = vld [vmem:[#allocation3 + $0x190] sm:$0xff]  ;;  %v7909_v59 = vpack.c.bf16 %v4090_v24, %v4086_v4 }
 0x727   :  { %5935 = vmatprep.subr.bf16.mxu0 %v7694_v21  ;;  %5967 = vmatprep.subr.bf16.mxu1 %v7696_v44  ;;  %v4039_v21 = vld [vmem:[#allocation3 + $0x8] sm:$0xff] }
 0x728   :  { %v4043_v44 = vld [vmem:[#allocation3 + $0x28] sm:$0xff] }
 0x72a   :  { %5937 = vmatpush1.bf16.msra.mxu0 %v7700_v32  ;;  %5969 = vmatpush1.bf16.msra.mxu1 %v7702_v54  ;;  %v4041_v32 = vld [vmem:[#allocation3 + $0x18] sm:$0xff]  ;;  %v7836_v54 = vpack.c.bf16 %v4043_v44, %v4039_v21  ;;  %v4075_v21 = vld [vmem:[#allocation3 + $0x128] sm:$0xff] }
 0x72b   :  { %5939 = vmatprep.subr.bf16.mxu0 %v7706_v57  ;;  %5971 = vmatprep.subr.bf16.mxu1 %v7708_v49  ;;  %v4038_v57 = vld [vmem:[#allocation3] sm:$0xff]  ;;  %v4073_v44 = vld [vmem:[#allocation3 + $0x118] sm:$0xff] }
 0x72c   :  { %v4042_v49 = vld [vmem:[#allocation3 + $0x20] sm:$0xff] }
 0x72e   :  { %5941 = vmatpush1.bf16.msra.mxu0 %v7712_v47  ;;  %5973 = vmatpush1.bf16.msra.mxu1 %v7714_v56  ;;  %v4045_v47 = vld [vmem:[#allocation3 + $0x38] sm:$0xff]  ;;  %v7838_v56 = vpack.c.bf16 %v4042_v49, %v4038_v57  ;;  %v4070_v57 = vld [vmem:[#allocation3 + $0x100] sm:$0xff] }
 0x72f   :  { %5943 = vmatprep.subr.bf16.mxu0 %v7718_v38  ;;  %5975 = vmatprep.subr.bf16.mxu1 %v7720_v63  ;;  %v7840_v38 = vpack.c.bf16 %v4045_v47, %v4041_v32  ;;  %v4040_v63 = vld [vmem:[#allocation3 + $0x10] sm:$0xff]  ;;  %v7884_v32 = vpack.c.bf16 %v4075_v21, %v4071_v50  ;;  %v4074_v49 = vld [vmem:[#allocation3 + $0x120] sm:$0xff]  ;;  %v4077_v47 = vld [vmem:[#allocation3 + $0x138] sm:$0xff]  ;;  %v7911_v50 = vpack.c.bf16 %v4093_v33, %v4089_v60 }
 0x730   :  { %v4092_v21 = vld [vmem:[#allocation3 + $0x1b0] sm:$0xff] }
 0x732   :  { %5945 = vmatpush1.bf16.msra.mxu0 %v7724_v48  ;;  %5977 = vmatpush1.bf16.msra.mxu1 %v7726_v1  ;;  %v4044_v48 = vld [vmem:[#allocation3 + $0x30] sm:$0xff] }
 0x733   :  { %5979 = vmatprep.subr.bf16.mxu0 %v7836_v54  ;;  %v7843_v1 = vpack.c.bf16 %v4044_v48, %v4040_v63  ;;  %6011 = vmatprep.subr.bf16.mxu1 %v7840_v38  ;;  %v7886_v63 = vpack.c.bf16 %v4074_v49, %v4070_v57  ;;  %v7888_v48 = vpack.c.bf16 %v4077_v47, %v4073_v44  ;;  %v4095_v44 = vld [vmem:[#allocation3 + $0x1c8] sm:$0xff] }
 0x734   :  { %v4099_v57 = vld [vmem:[#allocation3 + $0x1e8] sm:$0xff]  ;;  %v7915_v49 = vpack.c.bf16 %v4092_v21, %v4088_v17 }
 0x735   :  { %3933 = vmatmul.mubr.f32.vlgmr.msra.gmra.mrb[12].mxu0 %v3411_v46  ;;  %4004 = vmatmul.mubr.f32.vlgmr.msra.gmra.mrb[12].mxu1 %v3411_v46  ;;  %v4054_v46 = vld [vmem:[#allocation3 + $0x80] sm:$0xff]  ;;  %v7917_v47 = vpack.c.bf16 %v4099_v57, %v4095_v44 }
 0x736   :  { %4166 = vmatprep.mubr.f32.mxu0 %v8130_v15  ;;  %4237 = vmatprep.mubr.f32.mxu1 %v8130_v15  ;;  %v7862_v43 = vpack.c.bf16 %v4058_v14, %v4054_v46  ;;  %v7900_v46 = vpack.c.bf16 %v4085_v8, %v4081_v10  ;;  %v4080_v14 = vld [vmem:[#allocation3 + $0x150] sm:$0xff]  ;;  %v7920_v10 = vpack.c.bf16 %v4101_v13, %v4097_v11 }
 0x737   :  { %5981 = vmatpush1.bf16.msra.mxu0 %v7838_v56  ;;  %6013 = vmatpush1.bf16.msra.mxu1 %v7843_v1  ;;  %v7903_v2 = vpack.c.bf16 %v4084_v61, %v4080_v14  ;;  %v7923_v8 = vpack.c.bf16 %v4098_v34, %v4094_v26  ;;  %v7927_v14 = vpack.c.bf16 %v4100_v31, %v4096_v45 }
 0x738   :  { %5983 = vmatprep.subr.bf16.mxu0 %v7848_v3  ;;  %6015 = vmatprep.subr.bf16.mxu1 %v7852_v41 }
 0x73b   :  { %5985 = vmatpush1.bf16.msra.mxu0 %v7850_v30  ;;  %6017 = vmatpush1.bf16.msra.mxu1 %v7855_v37 }
 0x73c   :  { %5987 = vmatprep.subr.bf16.mxu0 %v7860_v52  ;;  %6019 = vmatprep.subr.bf16.mxu1 %v7864_v58 }
 0x73f   :  { %5989 = vmatpush1.bf16.msra.mxu0 %v7862_v43  ;;  %6021 = vmatpush1.bf16.msra.mxu1 %v7867_v12 }
 0x740   :  { %5991 = vmatprep.subr.bf16.mxu0 %v7872_v39  ;;  %6023 = vmatprep.subr.bf16.mxu1 %v7876_v0 }
 0x743   :  { %5993 = vmatpush1.bf16.msra.mxu0 %v7874_v29  ;;  %6025 = vmatpush1.bf16.msra.mxu1 %v7879_v51 }
 0x744   :  { %5995 = vmatprep.subr.bf16.mxu0 %v7884_v32  ;;  %6027 = vmatprep.subr.bf16.mxu1 %v7888_v48 }
 0x747   :  { %5997 = vmatpush1.bf16.msra.mxu0 %v7886_v63  ;;  %6029 = vmatpush1.bf16.msra.mxu1 %v7891_v19 }
 0x748   :  { %5999 = vmatprep.subr.bf16.mxu0 %v7895_v62  ;;  %6031 = vmatprep.subr.bf16.mxu1 %v7900_v46 }
 0x74b   :  { %6001 = vmatpush1.bf16.msra.mxu0 %v7898_v6  ;;  %6033 = vmatpush1.bf16.msra.mxu1 %v7903_v2 }
 0x74c   :  { %6003 = vmatprep.subr.bf16.mxu0 %v7906_v5  ;;  %6035 = vmatprep.subr.bf16.mxu1 %v7911_v50 }
 0x74f   :  { %6005 = vmatpush1.bf16.msra.mxu0 %v7909_v59  ;;  %6037 = vmatpush1.bf16.msra.mxu1 %v7915_v49 }
 0x750   :  { %6007 = vmatprep.subr.bf16.mxu0 %v7917_v47  ;;  %6039 = vmatprep.subr.bf16.mxu1 %v7920_v10 }
 0x753   :  { %6009 = vmatpush1.bf16.msra.mxu0 %v7923_v8  ;;  %6041 = vmatpush1.bf16.msra.mxu1 %v7927_v14 }
 0x754   :  { %6043 = vmatprep.subr.bf16.mxu0 %v7768_v7  ;;  %6047 = vmatprep.subr.bf16.mxu1 %v7771_v9 }
 0x7e8   :  { %v3695_v61 = vpop.f32.mrb[26].mxu0  ;;  %v3766_v40 = vpop.f32.mrb[26].mxu1 }
 0x7e9   :  { %v6230_v23 = vadd.f32 %v3695_v61, %v7106_v18  ;;  %v3697_v4 = vpop.f32.mrb[27].mxu0  ;;  %v3768_v24 = vpop.f32.mrb[27].mxu1  ;;  %v6232_v57 = vadd.f32 %v3766_v40, %v7124_v20 }
 0x7ea   :  { %v6231_v60 = vadd.f32 %v3697_v4, %v7111_v22  ;;  %v6233_v21 = vadd.f32 %v3768_v24, %v7118_v53 }
 0x7eb   :  { %v5141_v33 = vmul.f32 -1.442695, %v6230_v23 }
 0x7ec   :  { %v5142_v17 = vmul.f32 -1.442695, %v6231_v60  ;;  %v5143_v44 = vmul.f32 -1.442695, %v6233_v21 }
 0x7ed   :  { %6483 = vpow2.f32 %v5141_v33 }
 0x7ee   :  { %6485 = vpow2.f32 %v5142_v17 }
 0x7ef   :  { %6487 = vpow2.f32 %v5143_v44 }
 0x7f0   :  { %6489 = vtanh.f32 %v6232_v57 }
 0x7f7   :  { %v6484_v7 = vpop.eup %6483 }
 0x7f8   :  { %v6486_v26 = vpop.eup %6485  ;;  %v3778_v9 = vadd.f32 1.0, %v6484_v7 }
 0x7f9   :  { %v3784_v34 = vadd.f32 1.0, %v6486_v26  ;;  %v6488_v11 = vpop.eup %6487 }
 0x7fa   :  { %6491 = vrcp.f32 %v3778_v9  ;;  %v6490_v13 = vpop.eup %6489  ;;  %v3791_v23 = vadd.f32 1.0, %v6488_v11 }
 0x7fb   :  { %6493 = vrcp.f32 %v3784_v34 }
 0x7fc   :  { %6495 = vrcp.f32 %v3791_v23 }
 0x804   :  { %v6492_v45 = vpop.eup %6491 }
 0x805   :  { %v6494_v31 = vpop.eup %6493  ;;  %v3795_v61 = vmul.f32 %v6492_v45, %v6490_v13 }
 0x806   :  { %v3794_v4 = vmul.f32 %v6494_v31, %v7779_v35  ;;  %v6496_v35 = vpop.eup %6495 }
 0x808   :  { %v7939_v24 = vadd.f32 %v3795_v61, %v3794_v4  ;;  %v3934_v60 = vpop.f32.mrb[12].mxu0  ;;  %v4005_v40 = vpop.f32.mrb[12].mxu1 }
 0x809   :  { %v6196_v33 = vadd.f32 %v3934_v60, %v6838_v27  ;;  %v3936_v17 = vpop.f32.mrb[13].mxu0  ;;  %v4007_v21 = vpop.f32.mrb[13].mxu1  ;;  %v6210_v11 = vadd.f32 %v4005_v40, %v8227_v55  ;;  %v4431_v40 = vld [vmem:[#allocation6 + $0x8] sm:$0xff]  ;;  %v4449_v55 = vld [vmem:[#allocation6 + $0x98] sm:$0xff] }
 0x80a   :  { %8249 = vst [vmem:[#allocation24_spill] sm:$0xff] %v7939_v24  ;;  %v6197_v44 = vadd.f32 %v3936_v17, %v6842_v28  ;;  %6497 = vtanh.f32 %v7939_v24  ;;  %v6211_v26 = vadd.f32 %v4007_v21, %v6849_v36  ;;  %v4453_v36 = vld [vmem:[#allocation6 + $0xb8] sm:$0xff] }
 0x80b   :  { %v5144_v57 = vmul.f32 -1.442695, %v6196_v33  ;;  %v4457_v28 = vld [vmem:[#allocation6 + $0xd8] sm:$0xff] }
 0x80c   :  { %v5145_v7 = vmul.f32 -1.442695, %v6197_v44  ;;  %v5146_v34 = vmul.f32 -1.442695, %v6211_v26  ;;  %v4461_v27 = vld [vmem:[#allocation6 + $0xf8] sm:$0xff] }
 0x80d   :  { %6499 = vpow2.f32 %v5144_v57 }
 0x80e   :  { %6501 = vpow2.f32 %v5145_v7 }
 0x80f   :  { %6503 = vpow2.f32 %v5146_v34  ;;  %v4437_v34 = vld [vmem:[#allocation6 + $0x38] sm:$0xff] }
 0x810   :  { %6505 = vtanh.f32 %v6210_v11 }
 0x814   :  { %v6498_v9 = vpop.eup %6497 }
 0x815   :  { %v3798_v13 = vmul.f32 %v6498_v9, %v6496_v35  ;;  %v4435_v35 = vld [vmem:[#allocation6 + $0x28] sm:$0xff]  ;;  %v4433_v9 = vld [vmem:[#allocation6 + $0x18] sm:$0xff] }
 0x817   :  { %v6500_v45 = vpop.eup %6499  ;;  %3799 = vst [vmem:[#allocation9 + $0x28] sm:$0xff] %v3798_v13 }
 0x818   :  { %v6502_v31 = vpop.eup %6501  ;;  %v4017_v61 = vadd.f32 1.0, %v6500_v45 }
 0x819   :  { %v4023_v23 = vadd.f32 1.0, %v6502_v31  ;;  %v6504_v4 = vpop.eup %6503  ;;  %v6050_v31 = vpack.c.bf16 %v4435_v35, %v4431_v40 }
 0x81a   :  { %6507 = vrcp.f32 %v4017_v61  ;;  %v6506_v60 = vpop.eup %6505  ;;  %v4030_v44 = vadd.f32 1.0, %v6504_v4  ;;  %v6082_v61 = vpack.c.bf16 %v4437_v34, %v4433_v9  ;;  %v4432_v4 = vld [vmem:[#allocation6 + $0x10] sm:$0xff] }
 0x81b   :  { %6509 = vrcp.f32 %v4023_v23  ;;  %v4434_v23 = vld [vmem:[#allocation6 + $0x20] sm:$0xff]  ;;  %v4440_v9 = vld [vmem:[#allocation6 + $0x50] sm:$0xff] }
 0x81c   :  { %6511 = vrcp.f32 %v4030_v44  ;;  %v4445_v44 = vld [vmem:[#allocation6 + $0x78] sm:$0xff]  ;;  %v4444_v34 = vld [vmem:[#allocation6 + $0x70] sm:$0xff] }
 0x824   :  { %v6508_v33 = vpop.eup %6507 }
 0x825   :  { %v6510_v17 = vpop.eup %6509  ;;  %v4034_v21 = vmul.f32 %v6508_v33, %v6506_v60  ;;  %v4436_v60 = vld [vmem:[#allocation6 + $0x30] sm:$0xff]  ;;  %v4439_v33 = vld [vmem:[#allocation6 + $0x48] sm:$0xff] }
 0x826   :  { %v4033_v57 = vmul.f32 %v6510_v17, %v7787_v25  ;;  %v6512_v26 = vpop.eup %6511  ;;  %v4430_v25 = vld [vmem:[#allocation6] sm:$0xff]  ;;  %v4443_v17 = vld [vmem:[#allocation6 + $0x68] sm:$0xff]  ;;  %v6084_v40 = vpack.c.bf16 %v4436_v60, %v4432_v4  ;;  %v6090_v60 = vpack.c.bf16 %v4453_v36, %v4449_v55  ;;  %v6094_v36 = vpack.c.bf16 %v4461_v27, %v4457_v28  ;;  %v4456_v55 = vld [vmem:[#allocation6 + $0xd0] sm:$0xff] }
 0x827   :  { %v6054_v35 = vpack.c.bf16 %v4443_v17, %v4439_v33  ;;  %v4448_v33 = vld [vmem:[#allocation6 + $0x90] sm:$0xff]  ;;  %v4475_v27 = vld [vmem:[#allocation6 + $0x168] sm:$0xff]  ;;  %v4473_v28 = vld [vmem:[#allocation6 + $0x158] sm:$0xff] }
 0x828   :  { %v7947_v7 = vadd.f32 %v4034_v21, %v4033_v57  ;;  %v4441_v21 = vld [vmem:[#allocation6 + $0x58] sm:$0xff]  ;;  %v6052_v57 = vpack.c.bf16 %v4434_v23, %v4430_v25  ;;  %v4446_v25 = vld [vmem:[#allocation6 + $0x80] sm:$0xff]  ;;  %v4452_v17 = vld [vmem:[#allocation6 + $0xb0] sm:$0xff] }
 0x829   :  { %v4450_v23 = vld [vmem:[#allocation6 + $0xa0] sm:$0xff] }
 0x82a   :  { %8250 = vst [vmem:[#allocation28_spill] sm:$0xff] %v7947_v7  ;;  %6513 = vtanh.f32 %v7947_v7  ;;  %v4451_v7 = vld [vmem:[#allocation6 + $0xa8] sm:$0xff] }
 0x834   :  { %v6514_v11 = vpop.eup %6513 }
 0x835   :  { %v7950_v45 = vmul.f32 %v6514_v11, %v6512_v26  ;;  %v4438_v26 = vld [vmem:[#allocation6 + $0x40] sm:$0xff]  ;;  %v4447_v11 = vld [vmem:[#allocation6 + $0x88] sm:$0xff] }
 0x836   :  { %v6058_v4 = vpack.c.bf16 %v4451_v7, %v4447_v11 }
 0x837   :  { %4167 = vmatmul.mubr.f32.vlgmr.msra.gmra.mrb[28].mxu0 %v7950_v45  ;;  %4238 = vmatmul.mubr.f32.vlgmr.msra.gmra.mrb[28].mxu1 %v7950_v45 }
 0x838   :  { %6045 = vmatpush1.bf16.msra.mxu0 %v7790_v42  ;;  %6049 = vmatpush1.bf16.msra.mxu1 %v7792_v16  ;;  %v4442_v42 = vld [vmem:[#allocation6 + $0x60] sm:$0xff]  ;;  %v6086_v16 = vpack.c.bf16 %v4445_v44, %v4441_v21  ;;  %v4455_v21 = vld [vmem:[#allocation6 + $0xc8] sm:$0xff] }
 0x839   :  { %4319 = vmatprep.mubr.f32.mxu0 %v8130_v15  ;;  %4390 = vmatprep.mubr.f32.mxu1 %v8130_v15  ;;  %v4459_v44 = vld [vmem:[#allocation6 + $0xe8] sm:$0xff] }
 0x83a   :  { %6051 = vmatprep.subr.bf16.mxu0 %v6050_v31  ;;  %6083 = vmatprep.subr.bf16.mxu1 %v6082_v61  ;;  %v6056_v31 = vpack.c.bf16 %v4442_v42, %v4438_v26  ;;  %v6088_v61 = vpack.c.bf16 %v4444_v34, %v4440_v9  ;;  %v4458_v26 = vld [vmem:[#allocation6 + $0xe0] sm:$0xff]  ;;  %v6062_v7 = vpack.c.bf16 %v4459_v44, %v4455_v21  ;;  %v4460_v42 = vld [vmem:[#allocation6 + $0xf0] sm:$0xff]  ;;  %v4465_v9 = vld [vmem:[#allocation6 + $0x118] sm:$0xff] }
 0x83b   :  { %v4469_v34 = vld [vmem:[#allocation6 + $0x138] sm:$0xff]  ;;  %v6096_v24 = vpack.c.bf16 %v4460_v42, %v4456_v55  ;;  %v4479_v55 = vld [vmem:[#allocation6 + $0x188] sm:$0xff] }
 0x83c   :  { %v4483_v42 = vld [vmem:[#allocation6 + $0x1a8] sm:$0xff] }
 0x83f   :  { %5147 = vmatmul.mubr.msk.f32.vlgmr.msra.gmra.mrb[28].mxu0 %vm98_vm0, %v3798_v13  ;;  %5148 = vmatmul.mubr.msk.f32.vlgmr.msra.gmra.mrb[28].mxu1 %vm98_vm0, %v3798_v13  ;;  %v6060_v13 = vpack.c.bf16 %v4450_v23, %v4446_v25  ;;  %v6098_v23 = vpack.c.bf16 %v4469_v34, %v4465_v9 }
 0x840   :  { %6053 = vmatpush1.bf16.msra.mxu0 %v6052_v57  ;;  %6085 = vmatpush1.bf16.msra.mxu1 %v6084_v40  ;;  %v6092_v57 = vpack.c.bf16 %v4452_v17, %v4448_v33  ;;  %v4454_v40 = vld [vmem:[#allocation6 + $0xc0] sm:$0xff]  ;;  %v4471_v33 = vld [vmem:[#allocation6 + $0x148] sm:$0xff]  ;;  %v4477_v17 = vld [vmem:[#allocation6 + $0x178] sm:$0xff] }
 0x841   :  { %6055 = vmatprep.subr.bf16.mxu0 %v6054_v35  ;;  %6087 = vmatprep.subr.bf16.mxu1 %v6086_v16  ;;  %v4463_v35 = vld [vmem:[#allocation6 + $0x108] sm:$0xff]  ;;  %v6064_v11 = vpack.c.bf16 %v4458_v26, %v4454_v40  ;;  %v6070_v40 = vpack.c.bf16 %v4475_v27, %v4471_v33  ;;  %v6102_v26 = vpack.c.bf16 %v4477_v17, %v4473_v28  ;;  %v4489_v33 = vld [vmem:[#allocation6 + $0x1d8] sm:$0xff] }
 0x842   :  { %4558 = vmatprep.mubr.f32.mxu0 %v8130_v15  ;;  %4629 = vmatprep.mubr.f32.mxu1 %v8130_v15  ;;  %v4467_v16 = vld [vmem:[#allocation6 + $0x128] sm:$0xff]  ;;  %v4493_v27 = vld [vmem:[#allocation6 + $0x1f8] sm:$0xff] }
 0x843   :  { %v6066_v25 = vpack.c.bf16 %v4467_v16, %v4463_v35  ;;  %v4481_v35 = vld [vmem:[#allocation6 + $0x198] sm:$0xff] }
 0x844   :  { %6057 = vmatpush1.bf16.msra.mxu0 %v6056_v31  ;;  %6089 = vmatpush1.bf16.msra.mxu1 %v6088_v61  ;;  %v4462_v31 = vld [vmem:[#allocation6 + $0x100] sm:$0xff]  ;;  %v4485_v16 = vld [vmem:[#allocation6 + $0x1b8] sm:$0xff] }
 0x845   :  { %6059 = vmatprep.subr.bf16.mxu0 %v6058_v4  ;;  %6091 = vmatprep.subr.bf16.mxu1 %v6090_v60  ;;  %v4466_v61 = vld [vmem:[#allocation6 + $0x120] sm:$0xff]  ;;  %v4464_v4 = vld [vmem:[#allocation6 + $0x110] sm:$0xff] }
 0x846   :  { %v4468_v60 = vld [vmem:[#allocation6 + $0x130] sm:$0xff]  ;;  %v6068_v21 = vpack.c.bf16 %v4466_v61, %v4462_v31  ;;  %v6074_v31 = vpack.c.bf16 %v4483_v42, %v4479_v55  ;;  %v6106_v61 = vpack.c.bf16 %v4485_v16, %v4481_v35  ;;  %v8253_v16 = vld [vmem:[#allocation21_spill] sm:$0xff] }
 0x847   :  { %v6100_v44 = vpack.c.bf16 %v4468_v60, %v4464_v4  ;;  %v4487_v4 = vld [vmem:[#allocation6 + $0x1c8] sm:$0xff] }
 0x848   :  { %6061 = vmatpush1.bf16.msra.mxu0 %v6060_v13  ;;  %6093 = vmatpush1.bf16.msra.mxu1 %v6092_v57  ;;  %v4470_v13 = vld [vmem:[#allocation6 + $0x140] sm:$0xff]  ;;  %v4491_v60 = vld [vmem:[#allocation6 + $0x1e8] sm:$0xff] }
 0x849   :  { %6063 = vmatprep.subr.bf16.mxu0 %v6062_v7  ;;  %6095 = vmatprep.subr.bf16.mxu1 %v6094_v36  ;;  %v4474_v57 = vld [vmem:[#allocation6 + $0x160] sm:$0xff]  ;;  %v4472_v7 = vld [vmem:[#allocation6 + $0x150] sm:$0xff] }
 0x84a   :  { %v4476_v36 = vld [vmem:[#allocation6 + $0x170] sm:$0xff]  ;;  %v6072_v9 = vpack.c.bf16 %v4474_v57, %v4470_v13  ;;  %v6110_v13 = vpack.c.bf16 %v4493_v27, %v4489_v33  ;;  %v4490_v57 = vld [vmem:[#allocation6 + $0x1e0] sm:$0xff] }
 0x84b   :  { %v6104_v34 = vpack.c.bf16 %v4476_v36, %v4472_v7 }
 0x84c   :  { %6065 = vmatpush1.bf16.msra.mxu0 %v6064_v11  ;;  %6097 = vmatpush1.bf16.msra.mxu1 %v6096_v24  ;;  %v4478_v11 = vld [vmem:[#allocation6 + $0x180] sm:$0xff] }
 0x84d   :  { %6067 = vmatprep.subr.bf16.mxu0 %v6066_v25  ;;  %6099 = vmatprep.subr.bf16.mxu1 %v6098_v23  ;;  %v4482_v24 = vld [vmem:[#allocation6 + $0x1a0] sm:$0xff]  ;;  %v4480_v25 = vld [vmem:[#allocation6 + $0x190] sm:$0xff] }
 0x84e   :  { %v4484_v23 = vld [vmem:[#allocation6 + $0x1b0] sm:$0xff]  ;;  %v6076_v28 = vpack.c.bf16 %v4482_v24, %v4478_v11 }
 0x84f   :  { %v6108_v17 = vpack.c.bf16 %v4484_v23, %v4480_v25  ;;  %v8254_v24 = vld [vmem:[#allocation22_spill] sm:$0xff] }
 0x850   :  { %6069 = vmatpush1.bf16.msra.mxu0 %v6068_v21  ;;  %6101 = vmatpush1.bf16.msra.mxu1 %v6100_v44  ;;  %v4486_v21 = vld [vmem:[#allocation6 + $0x1c0] sm:$0xff]  ;;  %v6078_v44 = vpack.c.bf16 %v4491_v60, %v4487_v4  ;;  %v8255_v4 = vld [vmem:[#allocation23_spill] sm:$0xff] }
 0x851   :  { %6071 = vmatprep.subr.bf16.mxu0 %v6070_v40  ;;  %6103 = vmatprep.subr.bf16.mxu1 %v6102_v26  ;;  %v4488_v40 = vld [vmem:[#allocation6 + $0x1d0] sm:$0xff]  ;;  %v6080_v7 = vpack.c.bf16 %v4490_v57, %v4486_v21 }
 0x852   :  { %v4492_v26 = vld [vmem:[#allocation6 + $0x1f0] sm:$0xff] }
 0x853   :  { %v6112_v36 = vpack.c.bf16 %v4492_v26, %v4488_v40 }
 0x854   :  { %6073 = vmatpush1.bf16.msra.mxu0 %v6072_v9  ;;  %6105 = vmatpush1.bf16.msra.mxu1 %v6104_v34 }
 0x855   :  { %6075 = vmatprep.subr.bf16.mxu0 %v6074_v31  ;;  %6107 = vmatprep.subr.bf16.mxu1 %v6106_v61 }
 0x858   :  { %6077 = vmatpush1.bf16.msra.mxu0 %v6076_v28  ;;  %6109 = vmatpush1.bf16.msra.mxu1 %v6108_v17 }
 0x859   :  { %6079 = vmatprep.subr.bf16.mxu0 %v6078_v44  ;;  %6111 = vmatprep.subr.bf16.mxu1 %v6110_v13 }
 0x85c   :  { %6081 = vmatpush1.bf16.msra.mxu0 %v6080_v7  ;;  %6113 = vmatpush1.bf16.msra.mxu1 %v6112_v36  ;;  %v8256_v36 = vld [vmem:[#allocation28_spill] sm:$0xff] }
 0x85d   :  { %6115 = vmatprep.subr.bf16.mxu0 %v7836_v54  ;;  %6147 = vmatprep.subr.bf16.mxu1 %v7840_v38  ;;  %v4871_v54 = vld [vmem:[#allocation4 + $0x8] sm:$0xff] }
 0x85f   :  { %4559 = vmatmul.mubr.f32.vlgmr.msra.gmra.mrb[14].mxu0 %v7950_v45  ;;  %4630 = vmatmul.mubr.f32.vlgmr.msra.gmra.mrb[14].mxu1 %v7950_v45  ;;  %v8252_v45 = vld [vmem:[#allocation20_spill] sm:$0xff] }
 0x860   :  { %6117 = vmatpush1.bf16.msra.mxu0 %v7838_v56  ;;  %6149 = vmatpush1.bf16.msra.mxu1 %v7843_v1  ;;  %v4875_v56 = vld [vmem:[#allocation4 + $0x28] sm:$0xff]  ;;  %v4873_v1 = vld [vmem:[#allocation4 + $0x18] sm:$0xff] }
 0x861   :  { %6119 = vmatprep.subr.bf16.mxu0 %v7848_v3  ;;  %6151 = vmatprep.subr.bf16.mxu1 %v7852_v41  ;;  %v6178_v38 = vpack.c.bf16 %v4875_v56, %v4871_v54  ;;  %v4877_v3 = vld [vmem:[#allocation4 + $0x38] sm:$0xff] }
 0x862   :  { %4792 = vmatprep.mubr.f32.mxu0 %v8130_v15  ;;  %4863 = vmatprep.mubr.f32.mxu1 %v8130_v15 }
 0x864   :  { %6121 = vmatpush1.bf16.msra.mxu0 %v7850_v30  ;;  %6153 = vmatpush1.bf16.msra.mxu1 %v7855_v37  ;;  %v6182_v30 = vpack.c.bf16 %v4877_v3, %v4873_v1  ;;  %v4874_v1 = vld [vmem:[#allocation4 + $0x20] sm:$0xff]  ;;  %v4872_v3 = vld [vmem:[#allocation4 + $0x10] sm:$0xff] }
 0x865   :  { %6123 = vmatprep.subr.bf16.mxu0 %v7860_v52  ;;  %6155 = vmatprep.subr.bf16.mxu1 %v7864_v58 }
 0x868   :  { %6125 = vmatpush1.bf16.msra.mxu0 %v7862_v43  ;;  %6157 = vmatpush1.bf16.msra.mxu1 %v7867_v12 }
 0x869   :  { %6127 = vmatprep.subr.bf16.mxu0 %v7872_v39  ;;  %6159 = vmatprep.subr.bf16.mxu1 %v7876_v0 }
 0x86c   :  { %6129 = vmatpush1.bf16.msra.mxu0 %v7874_v29  ;;  %6161 = vmatpush1.bf16.msra.mxu1 %v7879_v51 }
 0x86d   :  { %6131 = vmatprep.subr.bf16.mxu0 %v7884_v32  ;;  %6163 = vmatprep.subr.bf16.mxu1 %v7888_v48 }
 0x870   :  { %6133 = vmatpush1.bf16.msra.mxu0 %v7886_v63  ;;  %6165 = vmatpush1.bf16.msra.mxu1 %v7891_v19 }
 0x871   :  { %6135 = vmatprep.subr.bf16.mxu0 %v7895_v62  ;;  %6167 = vmatprep.subr.bf16.mxu1 %v7900_v46 }
 0x874   :  { %6137 = vmatpush1.bf16.msra.mxu0 %v7898_v6  ;;  %6169 = vmatpush1.bf16.msra.mxu1 %v7903_v2 }
 0x875   :  { %6139 = vmatprep.subr.bf16.mxu0 %v7906_v5  ;;  %6171 = vmatprep.subr.bf16.mxu1 %v7911_v50 }
 0x878   :  { %6141 = vmatpush1.bf16.msra.mxu0 %v7909_v59  ;;  %6173 = vmatpush1.bf16.msra.mxu1 %v7915_v49  ;;  %v8251_v49 = vld [vmem:[#allocation24_spill] sm:$0xff] }
 0x879   :  { %6143 = vmatprep.subr.bf16.mxu0 %v7917_v47  ;;  %6175 = vmatprep.subr.bf16.mxu1 %v7920_v10 }
 0x87c   :  { %6145 = vmatpush1.bf16.msra.mxu0 %v7923_v8  ;;  %6177 = vmatpush1.bf16.msra.mxu1 %v7927_v14 }
 0x87d   :  { %6179 = vmatprep.subr.bf16.mxu0 %v6178_v38  ;;  %6183 = vmatprep.subr.bf16.mxu1 %v6182_v30  ;;  %v4870_v38 = vld [vmem:[#allocation4] sm:$0xff]  ;;  %v4876_v30 = vld [vmem:[#allocation4 + $0x30] sm:$0xff] }
 0x912   :  { %v4321_v41 = vpop.f32.mrb[28].mxu0  ;;  %v4392_v37 = vpop.f32.mrb[28].mxu1 }
 0x913   :  { %v6234_v52 = vadd.f32 %v4321_v41, %v7106_v18  ;;  %v4323_v43 = vpop.f32.mrb[29].mxu0  ;;  %v4394_v58 = vpop.f32.mrb[29].mxu1  ;;  %v6236_v32 = vadd.f32 %v4392_v37, %v7124_v20 }
 0x914   :  { %v6235_v12 = vadd.f32 %v4323_v43, %v7111_v22  ;;  %v6237_v0 = vadd.f32 %v4394_v58, %v7118_v53  ;;  %v6184_v43 = vpack.c.bf16 %v4876_v30, %v4872_v3 }
 0x915   :  { %v5149_v39 = vmul.f32 -1.442695, %v6234_v52  ;;  %v6180_v52 = vpack.c.bf16 %v4874_v1, %v4870_v38 }
 0x916   :  { %v5150_v29 = vmul.f32 -1.442695, %v6235_v12  ;;  %v5151_v51 = vmul.f32 -1.442695, %v6237_v0 }
 0x917   :  { %6515 = vpow2.f32 %v5149_v39 }
 0x918   :  { %6517 = vpow2.f32 %v5150_v29 }
 0x919   :  { %6519 = vpow2.f32 %v5151_v51 }
 0x91a   :  { %6521 = vtanh.f32 %v6236_v32 }
 0x921   :  { %v6516_v63 = vpop.eup %6515 }
 0x922   :  { %v6518_v48 = vpop.eup %6517  ;;  %v4404_v19 = vadd.f32 1.0, %v6516_v63 }
 0x923   :  { %v4410_v62 = vadd.f32 1.0, %v6518_v48  ;;  %v6520_v6 = vpop.eup %6519 }
 0x924   :  { %6523 = vrcp.f32 %v4404_v19  ;;  %v6522_v46 = vpop.eup %6521  ;;  %v4417_v50 = vadd.f32 1.0, %v6520_v6 }
 0x925   :  { %6525 = vrcp.f32 %v4410_v62 }
 0x926   :  { %6527 = vrcp.f32 %v4417_v50 }
 0x92e   :  { %v6524_v2 = vpop.eup %6523 }
 0x92f   :  { %v6526_v5 = vpop.eup %6525  ;;  %v4421_v59 = vmul.f32 %v6524_v2, %v6522_v46 }
 0x930   :  { %v4420_v47 = vmul.f32 %v6526_v5, %v8251_v49  ;;  %v6528_v61 = vpop.eup %6527 }
 0x932   :  { %v8003_v10 = vadd.f32 %v4421_v59, %v4420_v47  ;;  %v4560_v8 = vpop.f32.mrb[14].mxu0  ;;  %v4631_v14 = vpop.f32.mrb[14].mxu1 }
 0x933   :  { %v6198_v55 = vadd.f32 %v4560_v8, %v8252_v45  ;;  %v4562_v42 = vpop.f32.mrb[15].mxu0  ;;  %v4633_v35 = vpop.f32.mrb[15].mxu1  ;;  %v6212_v60 = vadd.f32 %v4631_v14, %v8255_v4 }
 0x934   :  { %v6199_v9 = vadd.f32 %v4562_v42, %v8253_v16  ;;  %6529 = vtanh.f32 %v8003_v10  ;;  %v6213_v31 = vadd.f32 %v4633_v35, %v8254_v24 }
 0x935   :  { %v5152_v34 = vmul.f32 -1.442695, %v6198_v55 }
 0x936   :  { %v5153_v11 = vmul.f32 -1.442695, %v6199_v9  ;;  %v5154_v23 = vmul.f32 -1.442695, %v6213_v31 }
 0x937   :  { %6531 = vpow2.f32 %v5152_v34 }
 0x938   :  { %6533 = vpow2.f32 %v5153_v11 }
 0x939   :  { %6535 = vpow2.f32 %v5154_v23 }
 0x93a   :  { %6537 = vtanh.f32 %v6212_v60 }
 0x93e   :  { %v6530_v25 = vpop.eup %6529 }
 0x93f   :  { %v4424_v33 = vmul.f32 %v6530_v25, %v6528_v61 }
 0x941   :  { %v6532_v27 = vpop.eup %6531  ;;  %4425 = vst [vmem:[#allocation9 + $0x30] sm:$0xff] %v4424_v33 }
 0x942   :  { %v6534_v28 = vpop.eup %6533  ;;  %v4643_v17 = vadd.f32 1.0, %v6532_v27 }
 0x943   :  { %v4649_v21 = vadd.f32 1.0, %v6534_v28  ;;  %v6536_v44 = vpop.eup %6535 }
 0x944   :  { %6539 = vrcp.f32 %v4643_v17  ;;  %v6538_v13 = vpop.eup %6537  ;;  %v4656_v7 = vadd.f32 1.0, %v6536_v44 }
 0x945   :  { %6541 = vrcp.f32 %v4649_v21 }
 0x946   :  { %6543 = vrcp.f32 %v4656_v7 }
 0x94e   :  { %v6540_v57 = vpop.eup %6539 }
 0x94f   :  { %v6542_v40 = vpop.eup %6541  ;;  %v4660_v26 = vmul.f32 %v6540_v57, %v6538_v13 }
 0x950   :  { %v4659_v54 = vmul.f32 %v6542_v40, %v8256_v36  ;;  %v6544_v41 = vpop.eup %6543 }
 0x952   :  { %v4661_v56 = vadd.f32 %v4660_v26, %v4659_v54 }
 0x954   :  { %6545 = vtanh.f32 %v4661_v56 }
 0x95e   :  { %v6546_v37 = vpop.eup %6545 }
 0x95f   :  { %v4663_v58 = vmul.f32 %v6546_v37, %v6544_v41 }
 0x961   :  { %4793 = vmatmul.mubr.f32.vlgmr.msra.gmra.mrb[30].mxu0 %v4663_v58  ;;  %4864 = vmatmul.mubr.f32.vlgmr.msra.gmra.mrb[30].mxu1 %v4663_v58 }
 0x962   :  { %6181 = vmatpush1.bf16.msra.mxu0 %v6180_v52  ;;  %6185 = vmatpush1.bf16.msra.mxu1 %v6184_v43 }
 0x963   :  { %4945 = vmatprep.mubr.f32.mxu0 %v8130_v15  ;;  %5016 = vmatprep.mubr.f32.mxu1 %v8130_v15 }
 0x969   :  { %5155 = vmatmul.mubr.msk.f32.vlgmr.msra.gmra.mrb[30].mxu0 %vm98_vm0, %v4424_v33  ;;  %5156 = vmatmul.mubr.msk.f32.vlgmr.msra.gmra.mrb[30].mxu1 %vm98_vm0, %v4424_v33 }
 0xa3c   :  { %v4947_v12 = vpop.f32.mrb[30].mxu0  ;;  %v5018_v39 = vpop.f32.mrb[30].mxu1 }
 0xa3d   :  { %v6238_v29 = vadd.f32 %v4947_v12, %v7106_v18  ;;  %v4949_v0 = vpop.f32.mrb[31].mxu0  ;;  %v5020_v51 = vpop.f32.mrb[31].mxu1  ;;  %v6240_v15 = vadd.f32 %v5018_v39, %v7124_v20 }
 0xa3e   :  { %v6239_v32 = vadd.f32 %v4949_v0, %v7111_v22  ;;  %v6241_v19 = vadd.f32 %v5020_v51, %v7118_v53 }
 0xa3f   :  { %v5157_v63 = vmul.f32 -1.442695, %v6238_v29 }
 0xa40   :  { %v5158_v48 = vmul.f32 -1.442695, %v6239_v32  ;;  %v5159_v62 = vmul.f32 -1.442695, %v6241_v19 }
 0xa41   :  { %6547 = vpow2.f32 %v5157_v63 }
 0xa42   :  { %6549 = vpow2.f32 %v5158_v48 }
 0xa43   :  { %6551 = vpow2.f32 %v5159_v62 }
 0xa44   :  { %6553 = vtanh.f32 %v6240_v15 }
 0xa4b   :  { %v6548_v6 = vpop.eup %6547 }
 0xa4c   :  { %v6550_v46 = vpop.eup %6549  ;;  %v5030_v2 = vadd.f32 1.0, %v6548_v6 }
 0xa4d   :  { %v5036_v5 = vadd.f32 1.0, %v6550_v46  ;;  %v6552_v18 = vpop.eup %6551 }
 0xa4e   :  { %6555 = vrcp.f32 %v5030_v2  ;;  %v6554_v59 = vpop.eup %6553  ;;  %v5043_v47 = vadd.f32 1.0, %v6552_v18 }
 0xa4f   :  { %6557 = vrcp.f32 %v5036_v5 }
 0xa50   :  { %6559 = vrcp.f32 %v5043_v47 }
 0xa58   :  { %v6556_v22 = vpop.eup %6555 }
 0xa59   :  { %v6558_v50 = vpop.eup %6557  ;;  %v5047_v49 = vmul.f32 %v6556_v22, %v6554_v59 }
 0xa5a   :  { %v5046_v8 = vmul.f32 %v6558_v50, %v8003_v10  ;;  %v6560_v20 = vpop.eup %6559 }
 0xa5c   :  { %v5048_v53 = vadd.f32 %v5047_v49, %v5046_v8 }
 0xa5e   :  { %6561 = vtanh.f32 %v5048_v53 }
 0xa68   :  { %v6562_v14 = vpop.eup %6561 }
 0xa69   :  { %v5050_v45 = vmul.f32 %v6562_v14, %v6560_v20 }
 0xa6b   :  { %5051 = vst [vmem:[#allocation9 + $0x38] sm:$0xff] %v5050_v45 }
 0xa6c   :  { %6640 = shalt.err (!%p6637_p0)
}
 0xa6d   :  { %s6641_s23 = scalar_lea.hbm %s8039_s7, 1024 }
 0xa6e   :  { %p6642_p1 = scmp.ne.s32.totalorder %s8039_s7, %s6641_s23  ;;  %p6645_p2 = scmp.lt.u32.totalorder %s6641_s23, %s8039_s7 }
 0xa70   :  { %p6647_p3 = pnand %p6645_p2, %p6642_p1 }
 0xa72   :  { %6650 = shalt.err (!%p6647_p3)
}
 0xa73   :  { %s6666_s27 = smov 128   ;;  %s6667_s28 = smov 8  }
 0xa74   :  { %5063 = dma.vmem_to_hbm [thread:$0]  %s5058_s5, 1024, %s8039_s7, [#allocation8], %s6666_s27, %s6666_s27, %s6667_s28  }
 0xa75   :  { %6657 = dma.done.wait [#allocation8], 1024  }
 0xa76   :  { %6658 = vsyncadd [#allocation8], 4294966272 }
 0xa77   :  { %5067 = vsyncpa [#allocation7], 1 }
 0xa78   :  { %5068 = vsyncpa [#allocation8], 1 }
 0xa79   :  { %5069 = vsyncmov [#allocation5] }
 0xa7c   :  { %s5070_s8 = vpop.sfrf %5069 }
 0xa7d   :  { %p5160_p4 = scmp.ne.s32.totalorder %s5070_s8, 0 }
 0xa7f   :  { %5074 = shalt.err (%p5160_p4)  }
 0xa80   :  { %5076 = vsyncmov [#allocation5 + $0x1] }
 0xa83   :  { %s5077_s9 = vpop.sfrf %5076 }
 0xa84   :  { %p5161_p5 = scmp.ne.s32.totalorder %s5077_s9, 0 }
 0xa86   :  { %5081 = shalt.err (%p5161_p5)  }

</bundles_post_ra>
